<compile_context>
chip_gen: v7x
topology: tpu7x:2x2x1
jax: 0.10.0
libtpu: 0.0.40
codegen_flags: <defaults>
</compile_context>

<pallas_src>
import functools

import numpy as np

import jax
import jax.numpy as jnp
from jax.experimental import pallas as pl
from jax.experimental.pallas import tpu as pltpu


# ----------------------------------------------------------------------------
# Fused forward-pass kernel (one grid step == one sample).
# ----------------------------------------------------------------------------
def _dqn_kernel(x_ref, w1_ref, b1_ref, w2_ref, b2_ref, w3_ref, b3_ref,
                w4_hbm, b4_ref, w5_ref, b5_ref,
                o_ref,
                a1_ref, a2_ref, w4_vmem, dma_sem):
    f32 = jnp.float32
    bf16 = jnp.bfloat16

    # Kick off the fc1-weight DMA (3.2 MB bf16, HBM -> VMEM).  It overlaps
    # conv1 + conv2 compute and is waited on right before fc1 needs it.
    w4_copy = pltpu.make_async_copy(w4_hbm, w4_vmem, dma_sem.at[0])
    w4_copy.start()

    # ---- conv1: 8x8 stride-4 conv expressed as a 2x2 stride-1 conv over the
    # space-to-depth(4) input (21,21,64).  One output row (20 positions) per
    # step; 4 matmuls of (20,64)@(64,32) accumulate the window.
    def conv1_row(m, carry):
        acc = jnp.zeros((20, 32), f32)
        for dh in range(2):
            for dw in range(2):
                xs = x_ref[0, m + dh, dw:dw + 20, :].astype(bf16)        # (20, 64)
                acc = acc + jnp.dot(xs, w1_ref[dh, dw],
                                    preferred_element_type=f32)
        a1_ref[m] = jnp.maximum(acc + b1_ref[...], 0.0)                  # (20, 32)
        return carry

    jax.lax.fori_loop(0, 20, conv1_row, 0)

    # ---- conv2: 4x4 stride-2.  One output row (9 positions) per step; the
    # width stride is a sublane-strided load from the VMEM activation scratch.
    def conv2_row(m, carry):
        acc = jnp.zeros((9, 64), f32)
        for kh in range(4):
            for kw in range(4):
                xs = a1_ref[2 * m + kh, pl.ds(kw, 9, stride=2), :].astype(bf16)  # (9, 32)
                acc = acc + jnp.dot(xs, w2_ref[kh, kw],
                                    preferred_element_type=f32)
        a2_ref[m] = jnp.maximum(acc + b2_ref[...], 0.0)                  # (9, 64)
        return carry

    jax.lax.fori_loop(0, 9, conv2_row, 0)

    # fc1 weight must be resident in VMEM from here on.
    w4_copy.wait()

    # ---- conv3 (3x3 stride-1) + ReLU + flatten + fc1, fused: each conv3
    # output row (7 positions x 64 ch) is immediately contracted against the
    # matching 7 rows of the HWC-ordered fc1 weight, accumulating h in f32.
    def conv3_fc1_row(m, h):
        acc = jnp.zeros((7, 64), f32)
        for kh in range(3):
            for kw in range(3):
                xs = a2_ref[m + kh, kw:kw + 7, :].astype(bf16)           # (7, 64)
                acc = acc + jnp.dot(xs, w3_ref[kh, kw],
                                    preferred_element_type=f32)
        row = jnp.maximum(acc + b3_ref[...], 0.0).astype(bf16)           # (7, 64)
        for n in range(7):
            h = h + jnp.dot(row[n:n + 1, :], w4_vmem[7 * m + n],
                            preferred_element_type=f32)                  # (1, 512)
        return h

    h = jax.lax.fori_loop(0, 7, conv3_fc1_row, jnp.zeros((1, 512), f32))

    # ---- fc1 bias + ReLU, then fc2 into a lane-dense 128-wide padded output.
    h = jnp.maximum(h + b4_ref[...], 0.0).astype(bf16)                   # (1, 512)
    q = jnp.dot(h, w5_ref[...], preferred_element_type=f32) + b5_ref[...]  # (1, 128)
    o_ref[0] = q


# ----------------------------------------------------------------------------
# Wrapper: input layout prep (cheap XLA on the 113 KB observation) + pallas_call.
# ----------------------------------------------------------------------------
def dqn_forward(params, state_nchw, *, n_actions):
    """state_nchw: [B, 4, 84, 84] f32 -> qvalues [B, n_actions] f32."""
    B = state_nchw.shape[0]
    # NCHW -> NHWC, then space-to-depth(4): (B,84,84,4) -> (B,21,21,64) with
    # channel index k = rh*16 + rw*4 + c  (matches the w1r rearrangement).
    x = jnp.transpose(state_nchw, (0, 2, 3, 1))
    x = (x.reshape(B, 21, 4, 21, 4, 4)
          .transpose(0, 1, 3, 2, 4, 5)
          .reshape(B, 21, 21, 64))

    out = pl.pallas_call(
        _dqn_kernel,
        out_shape=jax.ShapeDtypeStruct((B, 1, 128), jnp.float32),
        grid=(B,),
        in_specs=[
            pl.BlockSpec((1, 21, 21, 64), lambda b: (b, 0, 0, 0)),  # x (s2d)
            pl.BlockSpec((2, 2, 64, 32), lambda b: (0, 0, 0, 0)),   # w1r
            pl.BlockSpec((1, 32), lambda b: (0, 0)),                # b1
            pl.BlockSpec((4, 4, 32, 64), lambda b: (0, 0, 0, 0)),   # w2 (HWIO)
            pl.BlockSpec((1, 64), lambda b: (0, 0)),                # b2
            pl.BlockSpec((3, 3, 64, 64), lambda b: (0, 0, 0, 0)),   # w3 (HWIO)
            pl.BlockSpec((1, 64), lambda b: (0, 0)),                # b3
            pl.BlockSpec(memory_space=pl.ANY),                      # w4r: HBM, manual DMA
            pl.BlockSpec((1, 512), lambda b: (0, 0)),               # b4
            pl.BlockSpec((512, 128), lambda b: (0, 0)),             # w5 (lane-padded)
            pl.BlockSpec((1, 128), lambda b: (0, 0)),               # b5 (lane-padded)
        ],
        out_specs=pl.BlockSpec((1, 1, 128), lambda b: (b, 0, 0)),
        scratch_shapes=[
            pltpu.VMEM((20, 20, 32), jnp.float32),    # conv1 activation
            pltpu.VMEM((9, 9, 64), jnp.float32),      # conv2 activation
            pltpu.VMEM((49, 64, 512), jnp.bfloat16),  # fc1 weight (DMA target)
            pltpu.SemaphoreType.DMA((1,)),
        ],
        compiler_params=pltpu.CompilerParams(
            dimension_semantics=("parallel",),
            vmem_limit_bytes=32 * 1024 * 1024,
        ),
    )(x, params["w1r"], params["b1"], params["w2r"], params["b2"],
      params["w3r"], params["b3"], params["w4r"], params["b4"],
      params["w5p"], params["b5p"])

    return out.reshape(B, 128)[:, :n_actions]


# ----------------------------------------------------------------------------
# Parameter init (deterministic, synthetic).  bf16 weights for the kernel,
# plus f32 copies in standard layouts for the pure-JAX reference.
# ----------------------------------------------------------------------------
def init_params(n_actions, key):
    ks = jax.random.split(key, 10)

    def he(k, shape, fan_in):
        return jax.random.normal(k, shape, jnp.float32) * ((2.0 / fan_in) ** 0.5)

    w1 = he(ks[0], (8, 8, 4, 32), 8 * 8 * 4).astype(jnp.bfloat16)      # HWIO
    w2 = he(ks[1], (4, 4, 32, 64), 4 * 4 * 32).astype(jnp.bfloat16)    # HWIO
    w3 = he(ks[2], (3, 3, 64, 64), 3 * 3 * 64).astype(jnp.bfloat16)    # HWIO
    # fc1 weight rows in PyTorch's flatten order (C, H, W) -> (3136, 512).
    w4 = he(ks[3], (64 * 7 * 7, 512), 64 * 7 * 7).astype(jnp.bfloat16)
    w5 = he(ks[4], (512, n_actions), 512).astype(jnp.bfloat16)

    b1 = 0.05 * jax.random.normal(ks[5], (32,), jnp.float32)
    b2 = 0.05 * jax.random.normal(ks[6], (64,), jnp.float32)
    b3 = 0.05 * jax.random.normal(ks[7], (64,), jnp.float32)
    b4 = 0.05 * jax.random.normal(ks[8], (512,), jnp.float32)
    b5 = 0.05 * jax.random.normal(ks[9], (n_actions,), jnp.float32)

    # Kernel layouts:
    #  w1r[a, b, rh*16 + rw*4 + c, oc] = w1[4a+rh, 4b+rw, c, oc]  (space-to-depth).
    w1r = (w1.reshape(2, 4, 2, 4, 4, 32)
             .transpose(0, 2, 1, 3, 4, 5)
             .reshape(2, 2, 64, 32))
    #  w4r[h*7 + w, c, o] = w4[c*49 + h*7 + w, o]  (HWC flatten order -> no
    #  NCHW transpose is needed before fc1 inside the kernel).
    w4r = w4.reshape(64, 49, 512).transpose(1, 0, 2)
    #  fc2 padded to 128 output lanes for a lane-dense store.
    w5p = jnp.zeros((512, 128), jnp.bfloat16).at[:, :n_actions].set(w5)
    b5p = jnp.zeros((1, 128), jnp.float32).at[0, :n_actions].set(b5)

    kparams = dict(
        w1r=w1r, b1=b1.reshape(1, 32),
        w2r=w2, b2=b2.reshape(1, 64),
        w3r=w3, b3=b3.reshape(1, 64),
        w4r=w4r, b4=b4.reshape(1, 512),
        w5p=w5p, b5p=b5p,
    )
    rparams = dict(
        w1=w1.astype(jnp.float32), w2=w2.astype(jnp.float32),
        w3=w3.astype(jnp.float32), w4=w4.astype(jnp.float32),
        w5=w5.astype(jnp.float32),
        b1=b1, b2=b2, b3=b3, b4=b4, b5=b5,
    )
    return kparams, rparams


# ----------------------------------------------------------------------------
# Pure-JAX reference (standard layouts) for a correctness sanity check.
# ----------------------------------------------------------------------------
def dqn_reference(p, state_nchw):
    x = jnp.transpose(state_nchw, (0, 2, 3, 1))
    dn = ("NHWC", "HWIO", "NHWC")
    y = jax.lax.conv_general_dilated(x, p["w1"], (4, 4), "VALID",
                                     dimension_numbers=dn) + p["b1"]
    y = jnp.maximum(y, 0.0)
    y = jax.lax.conv_general_dilated(y, p["w2"], (2, 2), "VALID",
                                     dimension_numbers=dn) + p["b2"]
    y = jnp.maximum(y, 0.0)
    y = jax.lax.conv_general_dilated(y, p["w3"], (1, 1), "VALID",
                                     dimension_numbers=dn) + p["b3"]
    B = y.shape[0]
    # PyTorch Flatten of NCHW: channel-major (C, H, W) ordering.
    y = jnp.transpose(y, (0, 3, 1, 2)).reshape(B, 64 * 7 * 7)
    y = jnp.maximum(y, 0.0)
    y = jnp.maximum(y @ p["w4"] + p["b4"], 0.0)
    return y @ p["w5"] + p["b5"]


if __name__ == "__main__":
    n_actions = 6
    key = jax.random.PRNGKey(0)
    k_params, k_input = jax.random.split(key)

    params, ref_params = init_params(n_actions, k_params)
    # Batch of 2 four-frame 84x84 observations (spatial size forced by the
    # module's Linear(64*7*7) layer).
    state = jax.random.uniform(k_input, (2, 4, 84, 84), jnp.float32)

    fwd = jax.jit(functools.partial(dqn_forward, n_actions=n_actions))
    qvalues = jax.block_until_ready(fwd(params, state))
    assert qvalues.shape == (2, n_actions), qvalues.shape
    assert qvalues.dtype == jnp.float32

    # Sanity-check against a pure-JAX f32 reference using the same (bf16-
    # rounded) weights; differences come only from bf16 activation casts.
    q_ref = jax.block_until_ready(jax.jit(dqn_reference)(ref_params, state))
    assert np.allclose(np.asarray(qvalues), np.asarray(q_ref),
                       rtol=3e-2, atol=3e-2), (qvalues, q_ref)

    print("KERNEL_OK")
</pallas_src>

<mosaic_0001>
module attributes {stable_mosaic.version = 11 : i64} {
  func.func @_dqn_kernel(%arg0: i32, %arg1: memref<1x21x21x64xf32, #tpu.memory_space<vmem>>, %arg2: memref<2x2x64x32xbf16, #tpu.memory_space<vmem>>, %arg3: memref<1x32xf32, #tpu.memory_space<vmem>>, %arg4: memref<4x4x32x64xbf16, #tpu.memory_space<vmem>>, %arg5: memref<1x64xf32, #tpu.memory_space<vmem>>, %arg6: memref<3x3x64x64xbf16, #tpu.memory_space<vmem>>, %arg7: memref<1x64xf32, #tpu.memory_space<vmem>>, %arg8: memref<49x64x512xbf16, #tpu.memory_space<any>>, %arg9: memref<1x512xf32, #tpu.memory_space<vmem>>, %arg10: memref<512x128xbf16, #tpu.memory_space<vmem>>, %arg11: memref<1x128xf32, #tpu.memory_space<vmem>>, %arg12: memref<1x1x128xf32, #tpu.memory_space<vmem>>, %arg13: memref<20x20x32xf32, #tpu.memory_space<vmem>>, %arg14: memref<9x9x64xf32, #tpu.memory_space<vmem>>, %arg15: memref<49x64x512xbf16, #tpu.memory_space<vmem>>, %arg16: memref<1x!tpu.dma_semaphore, #tpu.memory_space<semaphore_mem>>) attributes {dimension_semantics = [#tpu.dimension_semantics<parallel>], iteration_bounds = array<i64: 2>, scalar_prefetch = 0 : i64, scratch_operands = 4 : i64, tpu.core_type = #tpu.core_type<tc>, window_params = [{transform_indices = @transform_0, window_bounds = array<i64: 1, 21, 21, 64>}, {pipeline_mode = #tpu.pipeline_mode<synchronous>, transform_indices = @transform_1, window_bounds = array<i64: 2, 2, 64, 32>}, {pipeline_mode = #tpu.pipeline_mode<synchronous>, transform_indices = @transform_2, window_bounds = array<i64: 1, 32>}, {pipeline_mode = #tpu.pipeline_mode<synchronous>, transform_indices = @transform_3, window_bounds = array<i64: 4, 4, 32, 64>}, {pipeline_mode = #tpu.pipeline_mode<synchronous>, transform_indices = @transform_4, window_bounds = array<i64: 1, 64>}, {pipeline_mode = #tpu.pipeline_mode<synchronous>, transform_indices = @transform_5, window_bounds = array<i64: 3, 3, 64, 64>}, {pipeline_mode = #tpu.pipeline_mode<synchronous>, transform_indices = @transform_6, window_bounds = array<i64: 1, 64>}, {}, {pipeline_mode = #tpu.pipeline_mode<synchronous>, transform_indices = @transform_8, window_bounds = array<i64: 1, 512>}, {pipeline_mode = #tpu.pipeline_mode<synchronous>, transform_indices = @transform_9, window_bounds = array<i64: 512, 128>}, {pipeline_mode = #tpu.pipeline_mode<synchronous>, transform_indices = @transform_10, window_bounds = array<i64: 1, 128>}, {transform_indices = @transform_11, window_bounds = array<i64: 1, 1, 128>}]} {
    %c0_i32 = arith.constant 0 : i32
    %0 = tpu.memref_slice %arg16[%c0_i32] : memref<1x!tpu.dma_semaphore, #tpu.memory_space<semaphore_mem>> -> memref<1x!tpu.dma_semaphore, #tpu.memory_space<semaphore_mem>>
    %1 = tpu.memref_squeeze %0 : memref<1x!tpu.dma_semaphore, #tpu.memory_space<semaphore_mem>> -> memref<!tpu.dma_semaphore, #tpu.memory_space<semaphore_mem>>
    tpu.enqueue_dma source(%arg8 : memref<49x64x512xbf16, #tpu.memory_space<any>>) target(%arg15 : memref<49x64x512xbf16, #tpu.memory_space<vmem>>) target_semaphore(%1 : memref<!tpu.dma_semaphore, #tpu.memory_space<semaphore_mem>>)
    %c0_i32_0 = arith.constant 0 : i32
    %c20_i32 = arith.constant 20 : i32
    %2 = arith.addi %c0_i32_0, %c20_i32 : i32
    %c1_i32 = arith.constant 1 : i32
    scf.for %arg17 = %c0_i32_0 to %2 step %c1_i32  : i32 {
      %cst_19 = arith.constant 0.000000e+00 : f32
      %21 = vector.broadcast %cst_19 : f32 to vector<20x32xf32>
      %c0_i32_20 = arith.constant 0 : i32
      %22 = arith.addi %arg17, %c0_i32_20 : i32
      %c0_21 = arith.constant 0 : index
      %23 = arith.index_cast %22 : i32 to index
      %c0_22 = arith.constant 0 : index
      %c0_23 = arith.constant 0 : index
      %24 = vector.load %arg1[%c0_21, %23, %c0_22, %c0_23] : memref<1x21x21x64xf32, #tpu.memory_space<vmem>>, vector<1x1x20x64xf32>
      %25 = vector.shape_cast %24 : vector<1x1x20x64xf32> to vector<20x64xf32>
      %26 = arith.truncf %25 : vector<20x64xf32> to vector<20x64xbf16>
      %c0_24 = arith.constant 0 : index
      %c0_25 = arith.constant 0 : index
      %c0_26 = arith.constant 0 : index
      %c0_27 = arith.constant 0 : index
      %27 = vector.load %arg2[%c0_24, %c0_25, %c0_26, %c0_27] : memref<2x2x64x32xbf16, #tpu.memory_space<vmem>>, vector<1x1x64x32xbf16>
      %28 = vector.shape_cast %27 : vector<1x1x64x32xbf16> to vector<64x32xbf16>
      %cst_28 = arith.constant dense<0.000000e+00> : vector<20x32xf32>
      %29 = tpu.matmul %26, %28, %cst_28 {dimension_numbers = #tpu.dot_dimension_numbers<[1], [0], [0], [1], [0, 0, 1, 1], [], []>} : vector<20x64xbf16>, vector<64x32xbf16>, vector<20x32xf32> -> vector<20x32xf32>
      %30 = arith.addf %21, %29 : vector<20x32xf32>
      %c0_i32_29 = arith.constant 0 : i32
      %31 = arith.addi %arg17, %c0_i32_29 : i32
      %c0_30 = arith.constant 0 : index
      %32 = arith.index_cast %31 : i32 to index
      %c1 = arith.constant 1 : index
      %c0_31 = arith.constant 0 : index
      %33 = vector.load %arg1[%c0_30, %32, %c1, %c0_31] : memref<1x21x21x64xf32, #tpu.memory_space<vmem>>, vector<1x1x20x64xf32>
      %34 = vector.shape_cast %33 : vector<1x1x20x64xf32> to vector<20x64xf32>
      %35 = arith.truncf %34 : vector<20x64xf32> to vector<20x64xbf16>
      %c0_32 = arith.constant 0 : index
      %c1_33 = arith.constant 1 : index
      %c0_34 = arith.constant 0 : index
      %c0_35 = arith.constant 0 : index
      %36 = vector.load %arg2[%c0_32, %c1_33, %c0_34, %c0_35] : memref<2x2x64x32xbf16, #tpu.memory_space<vmem>>, vector<1x1x64x32xbf16>
      %37 = vector.shape_cast %36 : vector<1x1x64x32xbf16> to vector<64x32xbf16>
      %cst_36 = arith.constant dense<0.000000e+00> : vector<20x32xf32>
      %38 = tpu.matmul %35, %37, %cst_36 {dimension_numbers = #tpu.dot_dimension_numbers<[1], [0], [0], [1], [0, 0, 1, 1], [], []>} : vector<20x64xbf16>, vector<64x32xbf16>, vector<20x32xf32> -> vector<20x32xf32>
      %39 = arith.addf %30, %38 : vector<20x32xf32>
      %c1_i32_37 = arith.constant 1 : i32
      %40 = arith.addi %arg17, %c1_i32_37 : i32
      %c0_38 = arith.constant 0 : index
      %41 = arith.index_cast %40 : i32 to index
      %c0_39 = arith.constant 0 : index
      %c0_40 = arith.constant 0 : index
      %42 = vector.load %arg1[%c0_38, %41, %c0_39, %c0_40] : memref<1x21x21x64xf32, #tpu.memory_space<vmem>>, vector<1x1x20x64xf32>
      %43 = vector.shape_cast %42 : vector<1x1x20x64xf32> to vector<20x64xf32>
      %44 = arith.truncf %43 : vector<20x64xf32> to vector<20x64xbf16>
      %c1_41 = arith.constant 1 : index
      %c0_42 = arith.constant 0 : index
      %c0_43 = arith.constant 0 : index
      %c0_44 = arith.constant 0 : index
      %45 = vector.load %arg2[%c1_41, %c0_42, %c0_43, %c0_44] : memref<2x2x64x32xbf16, #tpu.memory_space<vmem>>, vector<1x1x64x32xbf16>
      %46 = vector.shape_cast %45 : vector<1x1x64x32xbf16> to vector<64x32xbf16>
      %cst_45 = arith.constant dense<0.000000e+00> : vector<20x32xf32>
      %47 = tpu.matmul %44, %46, %cst_45 {dimension_numbers = #tpu.dot_dimension_numbers<[1], [0], [0], [1], [0, 0, 1, 1], [], []>} : vector<20x64xbf16>, vector<64x32xbf16>, vector<20x32xf32> -> vector<20x32xf32>
      %48 = arith.addf %39, %47 : vector<20x32xf32>
      %c1_i32_46 = arith.constant 1 : i32
      %49 = arith.addi %arg17, %c1_i32_46 : i32
      %c0_47 = arith.constant 0 : index
      %50 = arith.index_cast %49 : i32 to index
      %c1_48 = arith.constant 1 : index
      %c0_49 = arith.constant 0 : index
      %51 = vector.load %arg1[%c0_47, %50, %c1_48, %c0_49] : memref<1x21x21x64xf32, #tpu.memory_space<vmem>>, vector<1x1x20x64xf32>
      %52 = vector.shape_cast %51 : vector<1x1x20x64xf32> to vector<20x64xf32>
      %53 = arith.truncf %52 : vector<20x64xf32> to vector<20x64xbf16>
      %c1_50 = arith.constant 1 : index
      %c1_51 = arith.constant 1 : index
      %c0_52 = arith.constant 0 : index
      %c0_53 = arith.constant 0 : index
      %54 = vector.load %arg2[%c1_50, %c1_51, %c0_52, %c0_53] : memref<2x2x64x32xbf16, #tpu.memory_space<vmem>>, vector<1x1x64x32xbf16>
      %55 = vector.shape_cast %54 : vector<1x1x64x32xbf16> to vector<64x32xbf16>
      %cst_54 = arith.constant dense<0.000000e+00> : vector<20x32xf32>
      %56 = tpu.matmul %53, %55, %cst_54 {dimension_numbers = #tpu.dot_dimension_numbers<[1], [0], [0], [1], [0, 0, 1, 1], [], []>} : vector<20x64xbf16>, vector<64x32xbf16>, vector<20x32xf32> -> vector<20x32xf32>
      %57 = arith.addf %48, %56 : vector<20x32xf32>
      %c0_55 = arith.constant 0 : index
      %c0_56 = arith.constant 0 : index
      %58 = vector.load %arg3[%c0_55, %c0_56] : memref<1x32xf32, #tpu.memory_space<vmem>>, vector<1x32xf32>
      %59 = vector.broadcast %58 : vector<1x32xf32> to vector<20x32xf32>
      %60 = arith.addf %57, %59 : vector<20x32xf32>
      %cst_57 = arith.constant 0.000000e+00 : f32
      %61 = vector.broadcast %cst_57 : f32 to vector<20x32xf32>
      %62 = arith.maximumf %60, %61 : vector<20x32xf32>
      %63 = arith.index_cast %arg17 : i32 to index
      %c0_58 = arith.constant 0 : index
      %c0_59 = arith.constant 0 : index
      %64 = vector.load %arg13[%63, %c0_58, %c0_59] : memref<20x20x32xf32, #tpu.memory_space<vmem>>, vector<1x20x32xf32>
      %65 = vector.shape_cast %64 : vector<1x20x32xf32> to vector<20x32xf32>
      %66 = vector.shape_cast %62 : vector<20x32xf32> to vector<1x20x32xf32>
      tpu.vector_store %arg13[%63, %c0_58, %c0_59], %66 {strides = array<i32>} : memref<20x20x32xf32, #tpu.memory_space<vmem>>, vector<1x20x32xf32>,
    }
    %c20_i32_1 = arith.constant 20 : i32
    %c0_i32_2 = arith.constant 0 : i32
    %c9_i32 = arith.constant 9 : i32
    %3 = arith.addi %c0_i32_2, %c9_i32 : i32
    %c1_i32_3 = arith.constant 1 : i32
    scf.for %arg17 = %c0_i32_2 to %3 step %c1_i32_3  : i32 {
      %cst_19 = arith.constant 0.000000e+00 : f32
      %21 = vector.broadcast %cst_19 : f32 to vector<9x64xf32>
      %c2_i32 = arith.constant 2 : i32
      %22 = arith.muli %c2_i32, %arg17 : i32
      %c0_i32_20 = arith.constant 0 : i32
      %23 = arith.addi %22, %c0_i32_20 : i32
      %24 = arith.index_cast %23 : i32 to index
      %c0_21 = arith.constant 0 : index
      %c0_22 = arith.constant 0 : index
      %25 = tpu.strided_load %arg13[%24, %c0_21, %c0_22] {strides = array<i32: 1, 2, 1>} : memref<20x20x32xf32, #tpu.memory_space<vmem>>, vector<1x9x32xf32>
      %26 = vector.shape_cast %25 : vector<1x9x32xf32> to vector<9x32xf32>
      %27 = arith.truncf %26 : vector<9x32xf32> to vector<9x32xbf16>
      %c0_23 = arith.constant 0 : index
      %c0_24 = arith.constant 0 : index
      %c0_25 = arith.constant 0 : index
      %c0_26 = arith.constant 0 : index
      %28 = vector.load %arg4[%c0_23, %c0_24, %c0_25, %c0_26] : memref<4x4x32x64xbf16, #tpu.memory_space<vmem>>, vector<1x1x32x64xbf16>
      %29 = vector.shape_cast %28 : vector<1x1x32x64xbf16> to vector<32x64xbf16>
      %cst_27 = arith.constant dense<0.000000e+00> : vector<9x64xf32>
      %30 = tpu.matmul %27, %29, %cst_27 {dimension_numbers = #tpu.dot_dimension_numbers<[1], [0], [0], [1], [0, 0, 1, 1], [], []>} : vector<9x32xbf16>, vector<32x64xbf16>, vector<9x64xf32> -> vector<9x64xf32>
      %31 = arith.addf %21, %30 : vector<9x64xf32>
      %c2_i32_28 = arith.constant 2 : i32
      %32 = arith.muli %c2_i32_28, %arg17 : i32
      %c0_i32_29 = arith.constant 0 : i32
      %33 = arith.addi %32, %c0_i32_29 : i32
      %34 = arith.index_cast %33 : i32 to index
      %c1 = arith.constant 1 : index
      %c0_30 = arith.constant 0 : index
      %35 = tpu.strided_load %arg13[%34, %c1, %c0_30] {strides = array<i32: 1, 2, 1>} : memref<20x20x32xf32, #tpu.memory_space<vmem>>, vector<1x9x32xf32>
      %36 = vector.shape_cast %35 : vector<1x9x32xf32> to vector<9x32xf32>
      %37 = arith.truncf %36 : vector<9x32xf32> to vector<9x32xbf16>
      %c0_31 = arith.constant 0 : index
      %c1_32 = arith.constant 1 : index
      %c0_33 = arith.constant 0 : index
      %c0_34 = arith.constant 0 : index
      %38 = vector.load %arg4[%c0_31, %c1_32, %c0_33, %c0_34] : memref<4x4x32x64xbf16, #tpu.memory_space<vmem>>, vector<1x1x32x64xbf16>
      %39 = vector.shape_cast %38 : vector<1x1x32x64xbf16> to vector<32x64xbf16>
      %cst_35 = arith.constant dense<0.000000e+00> : vector<9x64xf32>
      %40 = tpu.matmul %37, %39, %cst_35 {dimension_numbers = #tpu.dot_dimension_numbers<[1], [0], [0], [1], [0, 0, 1, 1], [], []>} : vector<9x32xbf16>, vector<32x64xbf16>, vector<9x64xf32> -> vector<9x64xf32>
      %41 = arith.addf %31, %40 : vector<9x64xf32>
      %c2_i32_36 = arith.constant 2 : i32
      %42 = arith.muli %c2_i32_36, %arg17 : i32
      %c0_i32_37 = arith.constant 0 : i32
      %43 = arith.addi %42, %c0_i32_37 : i32
      %44 = arith.index_cast %43 : i32 to index
      %c2 = arith.constant 2 : index
      %c0_38 = arith.constant 0 : index
      %45 = tpu.strided_load %arg13[%44, %c2, %c0_38] {strides = array<i32: 1, 2, 1>} : memref<20x20x32xf32, #tpu.memory_space<vmem>>, vector<1x9x32xf32>
      %46 = vector.shape_cast %45 : vector<1x9x32xf32> to vector<9x32xf32>
      %47 = arith.truncf %46 : vector<9x32xf32> to vector<9x32xbf16>
      %c0_39 = arith.constant 0 : index
      %c2_40 = arith.constant 2 : index
      %c0_41 = arith.constant 0 : index
      %c0_42 = arith.constant 0 : index
      %48 = vector.load %arg4[%c0_39, %c2_40, %c0_41, %c0_42] : memref<4x4x32x64xbf16, #tpu.memory_space<vmem>>, vector<1x1x32x64xbf16>
      %49 = vector.shape_cast %48 : vector<1x1x32x64xbf16> to vector<32x64xbf16>
      %cst_43 = arith.constant dense<0.000000e+00> : vector<9x64xf32>
      %50 = tpu.matmul %47, %49, %cst_43 {dimension_numbers = #tpu.dot_dimension_numbers<[1], [0], [0], [1], [0, 0, 1, 1], [], []>} : vector<9x32xbf16>, vector<32x64xbf16>, vector<9x64xf32> -> vector<9x64xf32>
      %51 = arith.addf %41, %50 : vector<9x64xf32>
      %c2_i32_44 = arith.constant 2 : i32
      %52 = arith.muli %c2_i32_44, %arg17 : i32
      %c0_i32_45 = arith.constant 0 : i32
      %53 = arith.addi %52, %c0_i32_45 : i32
      %54 = arith.index_cast %53 : i32 to index
      %c3 = arith.constant 3 : index
      %c0_46 = arith.constant 0 : index
      %55 = tpu.strided_load %arg13[%54, %c3, %c0_46] {strides = array<i32: 1, 2, 1>} : memref<20x20x32xf32, #tpu.memory_space<vmem>>, vector<1x9x32xf32>
      %56 = vector.shape_cast %55 : vector<1x9x32xf32> to vector<9x32xf32>
      %57 = arith.truncf %56 : vector<9x32xf32> to vector<9x32xbf16>
      %c0_47 = arith.constant 0 : index
      %c3_48 = arith.constant 3 : index
      %c0_49 = arith.constant 0 : index
      %c0_50 = arith.constant 0 : index
      %58 = vector.load %arg4[%c0_47, %c3_48, %c0_49, %c0_50] : memref<4x4x32x64xbf16, #tpu.memory_space<vmem>>, vector<1x1x32x64xbf16>
      %59 = vector.shape_cast %58 : vector<1x1x32x64xbf16> to vector<32x64xbf16>
      %cst_51 = arith.constant dense<0.000000e+00> : vector<9x64xf32>
      %60 = tpu.matmul %57, %59, %cst_51 {dimension_numbers = #tpu.dot_dimension_numbers<[1], [0], [0], [1], [0, 0, 1, 1], [], []>} : vector<9x32xbf16>, vector<32x64xbf16>, vector<9x64xf32> -> vector<9x64xf32>
      %61 = arith.addf %51, %60 : vector<9x64xf32>
      %c2_i32_52 = arith.constant 2 : i32
      %62 = arith.muli %c2_i32_52, %arg17 : i32
      %c1_i32_53 = arith.constant 1 : i32
      %63 = arith.addi %62, %c1_i32_53 : i32
      %64 = arith.index_cast %63 : i32 to index
      %c0_54 = arith.constant 0 : index
      %c0_55 = arith.constant 0 : index
      %65 = tpu.strided_load %arg13[%64, %c0_54, %c0_55] {strides = array<i32: 1, 2, 1>} : memref<20x20x32xf32, #tpu.memory_space<vmem>>, vector<1x9x32xf32>
      %66 = vector.shape_cast %65 : vector<1x9x32xf32> to vector<9x32xf32>
      %67 = arith.truncf %66 : vector<9x32xf32> to vector<9x32xbf16>
      %c1_56 = arith.constant 1 : index
      %c0_57 = arith.constant 0 : index
      %c0_58 = arith.constant 0 : index
      %c0_59 = arith.constant 0 : index
      %68 = vector.load %arg4[%c1_56, %c0_57, %c0_58, %c0_59] : memref<4x4x32x64xbf16, #tpu.memory_space<vmem>>, vector<1x1x32x64xbf16>
      %69 = vector.shape_cast %68 : vector<1x1x32x64xbf16> to vector<32x64xbf16>
      %cst_60 = arith.constant dense<0.000000e+00> : vector<9x64xf32>
      %70 = tpu.matmul %67, %69, %cst_60 {dimension_numbers = #tpu.dot_dimension_numbers<[1], [0], [0], [1], [0, 0, 1, 1], [], []>} : vector<9x32xbf16>, vector<32x64xbf16>, vector<9x64xf32> -> vector<9x64xf32>
      %71 = arith.addf %61, %70 : vector<9x64xf32>
      %c2_i32_61 = arith.constant 2 : i32
      %72 = arith.muli %c2_i32_61, %arg17 : i32
      %c1_i32_62 = arith.constant 1 : i32
      %73 = arith.addi %72, %c1_i32_62 : i32
      %74 = arith.index_cast %73 : i32 to index
      %c1_63 = arith.constant 1 : index
      %c0_64 = arith.constant 0 : index
      %75 = tpu.strided_load %arg13[%74, %c1_63, %c0_64] {strides = array<i32: 1, 2, 1>} : memref<20x20x32xf32, #tpu.memory_space<vmem>>, vector<1x9x32xf32>
      %76 = vector.shape_cast %75 : vector<1x9x32xf32> to vector<9x32xf32>
      %77 = arith.truncf %76 : vector<9x32xf32> to vector<9x32xbf16>
      %c1_65 = arith.constant 1 : index
      %c1_66 = arith.constant 1 : index
      %c0_67 = arith.constant 0 : index
      %c0_68 = arith.constant 0 : index
      %78 = vector.load %arg4[%c1_65, %c1_66, %c0_67, %c0_68] : memref<4x4x32x64xbf16, #tpu.memory_space<vmem>>, vector<1x1x32x64xbf16>
      %79 = vector.shape_cast %78 : vector<1x1x32x64xbf16> to vector<32x64xbf16>
      %cst_69 = arith.constant dense<0.000000e+00> : vector<9x64xf32>
      %80 = tpu.matmul %77, %79, %cst_69 {dimension_numbers = #tpu.dot_dimension_numbers<[1], [0], [0], [1], [0, 0, 1, 1], [], []>} : vector<9x32xbf16>, vector<32x64xbf16>, vector<9x64xf32> -> vector<9x64xf32>
      %81 = arith.addf %71, %80 : vector<9x64xf32>
      %c2_i32_70 = arith.constant 2 : i32
      %82 = arith.muli %c2_i32_70, %arg17 : i32
      %c1_i32_71 = arith.constant 1 : i32
      %83 = arith.addi %82, %c1_i32_71 : i32
      %84 = arith.index_cast %83 : i32 to index
      %c2_72 = arith.constant 2 : index
      %c0_73 = arith.constant 0 : index
      %85 = tpu.strided_load %arg13[%84, %c2_72, %c0_73] {strides = array<i32: 1, 2, 1>} : memref<20x20x32xf32, #tpu.memory_space<vmem>>, vector<1x9x32xf32>
      %86 = vector.shape_cast %85 : vector<1x9x32xf32> to vector<9x32xf32>
      %87 = arith.truncf %86 : vector<9x32xf32> to vector<9x32xbf16>
      %c1_74 = arith.constant 1 : index
      %c2_75 = arith.constant 2 : index
      %c0_76 = arith.constant 0 : index
      %c0_77 = arith.constant 0 : index
      %88 = vector.load %arg4[%c1_74, %c2_75, %c0_76, %c0_77] : memref<4x4x32x64xbf16, #tpu.memory_space<vmem>>, vector<1x1x32x64xbf16>
      %89 = vector.shape_cast %88 : vector<1x1x32x64xbf16> to vector<32x64xbf16>
      %cst_78 = arith.constant dense<0.000000e+00> : vector<9x64xf32>
      %90 = tpu.matmul %87, %89, %cst_78 {dimension_numbers = #tpu.dot_dimension_numbers<[1], [0], [0], [1], [0, 0, 1, 1], [], []>} : vector<9x32xbf16>, vector<32x64xbf16>, vector<9x64xf32> -> vector<9x64xf32>
      %91 = arith.addf %81, %90 : vector<9x64xf32>
      %c2_i32_79 = arith.constant 2 : i32
      %92 = arith.muli %c2_i32_79, %arg17 : i32
      %c1_i32_80 = arith.constant 1 : i32
      %93 = arith.addi %92, %c1_i32_80 : i32
      %94 = arith.index_cast %93 : i32 to index
      %c3_81 = arith.constant 3 : index
      %c0_82 = arith.constant 0 : index
      %95 = tpu.strided_load %arg13[%94, %c3_81, %c0_82] {strides = array<i32: 1, 2, 1>} : memref<20x20x32xf32, #tpu.memory_space<vmem>>, vector<1x9x32xf32>
      %96 = vector.shape_cast %95 : vector<1x9x32xf32> to vector<9x32xf32>
      %97 = arith.truncf %96 : vector<9x32xf32> to vector<9x32xbf16>
      %c1_83 = arith.constant 1 : index
      %c3_84 = arith.constant 3 : index
      %c0_85 = arith.constant 0 : index
      %c0_86 = arith.constant 0 : index
      %98 = vector.load %arg4[%c1_83, %c3_84, %c0_85, %c0_86] : memref<4x4x32x64xbf16, #tpu.memory_space<vmem>>, vector<1x1x32x64xbf16>
      %99 = vector.shape_cast %98 : vector<1x1x32x64xbf16> to vector<32x64xbf16>
      %cst_87 = arith.constant dense<0.000000e+00> : vector<9x64xf32>
      %100 = tpu.matmul %97, %99, %cst_87 {dimension_numbers = #tpu.dot_dimension_numbers<[1], [0], [0], [1], [0, 0, 1, 1], [], []>} : vector<9x32xbf16>, vector<32x64xbf16>, vector<9x64xf32> -> vector<9x64xf32>
      %101 = arith.addf %91, %100 : vector<9x64xf32>
      %c2_i32_88 = arith.constant 2 : i32
      %102 = arith.muli %c2_i32_88, %arg17 : i32
      %c2_i32_89 = arith.constant 2 : i32
      %103 = arith.addi %102, %c2_i32_89 : i32
      %104 = arith.index_cast %103 : i32 to index
      %c0_90 = arith.constant 0 : index
      %c0_91 = arith.constant 0 : index
      %105 = tpu.strided_load %arg13[%104, %c0_90, %c0_91] {strides = array<i32: 1, 2, 1>} : memref<20x20x32xf32, #tpu.memory_space<vmem>>, vector<1x9x32xf32>
      %106 = vector.shape_cast %105 : vector<1x9x32xf32> to vector<9x32xf32>
      %107 = arith.truncf %106 : vector<9x32xf32> to vector<9x32xbf16>
      %c2_92 = arith.constant 2 : index
      %c0_93 = arith.constant 0 : index
      %c0_94 = arith.constant 0 : index
      %c0_95 = arith.constant 0 : index
      %108 = vector.load %arg4[%c2_92, %c0_93, %c0_94, %c0_95] : memref<4x4x32x64xbf16, #tpu.memory_space<vmem>>, vector<1x1x32x64xbf16>
      %109 = vector.shape_cast %108 : vector<1x1x32x64xbf16> to vector<32x64xbf16>
      %cst_96 = arith.constant dense<0.000000e+00> : vector<9x64xf32>
      %110 = tpu.matmul %107, %109, %cst_96 {dimension_numbers = #tpu.dot_dimension_numbers<[1], [0], [0], [1], [0, 0, 1, 1], [], []>} : vector<9x32xbf16>, vector<32x64xbf16>, vector<9x64xf32> -> vector<9x64xf32>
      %111 = arith.addf %101, %110 : vector<9x64xf32>
      %c2_i32_97 = arith.constant 2 : i32
      %112 = arith.muli %c2_i32_97, %arg17 : i32
      %c2_i32_98 = arith.constant 2 : i32
      %113 = arith.addi %112, %c2_i32_98 : i32
      %114 = arith.index_cast %113 : i32 to index
      %c1_99 = arith.constant 1 : index
      %c0_100 = arith.constant 0 : index
      %115 = tpu.strided_load %arg13[%114, %c1_99, %c0_100] {strides = array<i32: 1, 2, 1>} : memref<20x20x32xf32, #tpu.memory_space<vmem>>, vector<1x9x32xf32>
      %116 = vector.shape_cast %115 : vector<1x9x32xf32> to vector<9x32xf32>
      %117 = arith.truncf %116 : vector<9x32xf32> to vector<9x32xbf16>
      %c2_101 = arith.constant 2 : index
      %c1_102 = arith.constant 1 : index
      %c0_103 = arith.constant 0 : index
      %c0_104 = arith.constant 0 : index
      %118 = vector.load %arg4[%c2_101, %c1_102, %c0_103, %c0_104] : memref<4x4x32x64xbf16, #tpu.memory_space<vmem>>, vector<1x1x32x64xbf16>
      %119 = vector.shape_cast %118 : vector<1x1x32x64xbf16> to vector<32x64xbf16>
      %cst_105 = arith.constant dense<0.000000e+00> : vector<9x64xf32>
      %120 = tpu.matmul %117, %119, %cst_105 {dimension_numbers = #tpu.dot_dimension_numbers<[1], [0], [0], [1], [0, 0, 1, 1], [], []>} : vector<9x32xbf16>, vector<32x64xbf16>, vector<9x64xf32> -> vector<9x64xf32>
      %121 = arith.addf %111, %120 : vector<9x64xf32>
      %c2_i32_106 = arith.constant 2 : i32
      %122 = arith.muli %c2_i32_106, %arg17 : i32
      %c2_i32_107 = arith.constant 2 : i32
      %123 = arith.addi %122, %c2_i32_107 : i32
      %124 = arith.index_cast %123 : i32 to index
      %c2_108 = arith.constant 2 : index
      %c0_109 = arith.constant 0 : index
      %125 = tpu.strided_load %arg13[%124, %c2_108, %c0_109] {strides = array<i32: 1, 2, 1>} : memref<20x20x32xf32, #tpu.memory_space<vmem>>, vector<1x9x32xf32>
      %126 = vector.shape_cast %125 : vector<1x9x32xf32> to vector<9x32xf32>
      %127 = arith.truncf %126 : vector<9x32xf32> to vector<9x32xbf16>
      %c2_110 = arith.constant 2 : index
      %c2_111 = arith.constant 2 : index
      %c0_112 = arith.constant 0 : index
      %c0_113 = arith.constant 0 : index
      %128 = vector.load %arg4[%c2_110, %c2_111, %c0_112, %c0_113] : memref<4x4x32x64xbf16, #tpu.memory_space<vmem>>, vector<1x1x32x64xbf16>
      %129 = vector.shape_cast %128 : vector<1x1x32x64xbf16> to vector<32x64xbf16>
      %cst_114 = arith.constant dense<0.000000e+00> : vector<9x64xf32>
      %130 = tpu.matmul %127, %129, %cst_114 {dimension_numbers = #tpu.dot_dimension_numbers<[1], [0], [0], [1], [0, 0, 1, 1], [], []>} : vector<9x32xbf16>, vector<32x64xbf16>, vector<9x64xf32> -> vector<9x64xf32>
      %131 = arith.addf %121, %130 : vector<9x64xf32>
      %c2_i32_115 = arith.constant 2 : i32
      %132 = arith.muli %c2_i32_115, %arg17 : i32
      %c2_i32_116 = arith.constant 2 : i32
      %133 = arith.addi %132, %c2_i32_116 : i32
      %134 = arith.index_cast %133 : i32 to index
      %c3_117 = arith.constant 3 : index
      %c0_118 = arith.constant 0 : index
      %135 = tpu.strided_load %arg13[%134, %c3_117, %c0_118] {strides = array<i32: 1, 2, 1>} : memref<20x20x32xf32, #tpu.memory_space<vmem>>, vector<1x9x32xf32>
      %136 = vector.shape_cast %135 : vector<1x9x32xf32> to vector<9x32xf32>
      %137 = arith.truncf %136 : vector<9x32xf32> to vector<9x32xbf16>
      %c2_119 = arith.constant 2 : index
      %c3_120 = arith.constant 3 : index
      %c0_121 = arith.constant 0 : index
      %c0_122 = arith.constant 0 : index
      %138 = vector.load %arg4[%c2_119, %c3_120, %c0_121, %c0_122] : memref<4x4x32x64xbf16, #tpu.memory_space<vmem>>, vector<1x1x32x64xbf16>
      %139 = vector.shape_cast %138 : vector<1x1x32x64xbf16> to vector<32x64xbf16>
      %cst_123 = arith.constant dense<0.000000e+00> : vector<9x64xf32>
      %140 = tpu.matmul %137, %139, %cst_123 {dimension_numbers = #tpu.dot_dimension_numbers<[1], [0], [0], [1], [0, 0, 1, 1], [], []>} : vector<9x32xbf16>, vector<32x64xbf16>, vector<9x64xf32> -> vector<9x64xf32>
      %141 = arith.addf %131, %140 : vector<9x64xf32>
      %c2_i32_124 = arith.constant 2 : i32
      %142 = arith.muli %c2_i32_124, %arg17 : i32
      %c3_i32 = arith.constant 3 : i32
      %143 = arith.addi %142, %c3_i32 : i32
      %144 = arith.index_cast %143 : i32 to index
      %c0_125 = arith.constant 0 : index
      %c0_126 = arith.constant 0 : index
      %145 = tpu.strided_load %arg13[%144, %c0_125, %c0_126] {strides = array<i32: 1, 2, 1>} : memref<20x20x32xf32, #tpu.memory_space<vmem>>, vector<1x9x32xf32>
      %146 = vector.shape_cast %145 : vector<1x9x32xf32> to vector<9x32xf32>
      %147 = arith.truncf %146 : vector<9x32xf32> to vector<9x32xbf16>
      %c3_127 = arith.constant 3 : index
      %c0_128 = arith.constant 0 : index
      %c0_129 = arith.constant 0 : index
      %c0_130 = arith.constant 0 : index
      %148 = vector.load %arg4[%c3_127, %c0_128, %c0_129, %c0_130] : memref<4x4x32x64xbf16, #tpu.memory_space<vmem>>, vector<1x1x32x64xbf16>
      %149 = vector.shape_cast %148 : vector<1x1x32x64xbf16> to vector<32x64xbf16>
      %cst_131 = arith.constant dense<0.000000e+00> : vector<9x64xf32>
      %150 = tpu.matmul %147, %149, %cst_131 {dimension_numbers = #tpu.dot_dimension_numbers<[1], [0], [0], [1], [0, 0, 1, 1], [], []>} : vector<9x32xbf16>, vector<32x64xbf16>, vector<9x64xf32> -> vector<9x64xf32>
      %151 = arith.addf %141, %150 : vector<9x64xf32>
      %c2_i32_132 = arith.constant 2 : i32
      %152 = arith.muli %c2_i32_132, %arg17 : i32
      %c3_i32_133 = arith.constant 3 : i32
      %153 = arith.addi %152, %c3_i32_133 : i32
      %154 = arith.index_cast %153 : i32 to index
      %c1_134 = arith.constant 1 : index
      %c0_135 = arith.constant 0 : index
      %155 = tpu.strided_load %arg13[%154, %c1_134, %c0_135] {strides = array<i32: 1, 2, 1>} : memref<20x20x32xf32, #tpu.memory_space<vmem>>, vector<1x9x32xf32>
      %156 = vector.shape_cast %155 : vector<1x9x32xf32> to vector<9x32xf32>
      %157 = arith.truncf %156 : vector<9x32xf32> to vector<9x32xbf16>
      %c3_136 = arith.constant 3 : index
      %c1_137 = arith.constant 1 : index
      %c0_138 = arith.constant 0 : index
      %c0_139 = arith.constant 0 : index
      %158 = vector.load %arg4[%c3_136, %c1_137, %c0_138, %c0_139] : memref<4x4x32x64xbf16, #tpu.memory_space<vmem>>, vector<1x1x32x64xbf16>
      %159 = vector.shape_cast %158 : vector<1x1x32x64xbf16> to vector<32x64xbf16>
      %cst_140 = arith.constant dense<0.000000e+00> : vector<9x64xf32>
      %160 = tpu.matmul %157, %159, %cst_140 {dimension_numbers = #tpu.dot_dimension_numbers<[1], [0], [0], [1], [0, 0, 1, 1], [], []>} : vector<9x32xbf16>, vector<32x64xbf16>, vector<9x64xf32> -> vector<9x64xf32>
      %161 = arith.addf %151, %160 : vector<9x64xf32>
      %c2_i32_141 = arith.constant 2 : i32
      %162 = arith.muli %c2_i32_141, %arg17 : i32
      %c3_i32_142 = arith.constant 3 : i32
      %163 = arith.addi %162, %c3_i32_142 : i32
      %164 = arith.index_cast %163 : i32 to index
      %c2_143 = arith.constant 2 : index
      %c0_144 = arith.constant 0 : index
      %165 = tpu.strided_load %arg13[%164, %c2_143, %c0_144] {strides = array<i32: 1, 2, 1>} : memref<20x20x32xf32, #tpu.memory_space<vmem>>, vector<1x9x32xf32>
      %166 = vector.shape_cast %165 : vector<1x9x32xf32> to vector<9x32xf32>
      %167 = arith.truncf %166 : vector<9x32xf32> to vector<9x32xbf16>
      %c3_145 = arith.constant 3 : index
      %c2_146 = arith.constant 2 : index
      %c0_147 = arith.constant 0 : index
      %c0_148 = arith.constant 0 : index
      %168 = vector.load %arg4[%c3_145, %c2_146, %c0_147, %c0_148] : memref<4x4x32x64xbf16, #tpu.memory_space<vmem>>, vector<1x1x32x64xbf16>
      %169 = vector.shape_cast %168 : vector<1x1x32x64xbf16> to vector<32x64xbf16>
      %cst_149 = arith.constant dense<0.000000e+00> : vector<9x64xf32>
      %170 = tpu.matmul %167, %169, %cst_149 {dimension_numbers = #tpu.dot_dimension_numbers<[1], [0], [0], [1], [0, 0, 1, 1], [], []>} : vector<9x32xbf16>, vector<32x64xbf16>, vector<9x64xf32> -> vector<9x64xf32>
      %171 = arith.addf %161, %170 : vector<9x64xf32>
      %c2_i32_150 = arith.constant 2 : i32
      %172 = arith.muli %c2_i32_150, %arg17 : i32
      %c3_i32_151 = arith.constant 3 : i32
      %173 = arith.addi %172, %c3_i32_151 : i32
      %174 = arith.index_cast %173 : i32 to index
      %c3_152 = arith.constant 3 : index
      %c0_153 = arith.constant 0 : index
      %175 = tpu.strided_load %arg13[%174, %c3_152, %c0_153] {strides = array<i32: 1, 2, 1>} : memref<20x20x32xf32, #tpu.memory_space<vmem>>, vector<1x9x32xf32>
      %176 = vector.shape_cast %175 : vector<1x9x32xf32> to vector<9x32xf32>
      %177 = arith.truncf %176 : vector<9x32xf32> to vector<9x32xbf16>
      %c3_154 = arith.constant 3 : index
      %c3_155 = arith.constant 3 : index
      %c0_156 = arith.constant 0 : index
      %c0_157 = arith.constant 0 : index
      %178 = vector.load %arg4[%c3_154, %c3_155, %c0_156, %c0_157] : memref<4x4x32x64xbf16, #tpu.memory_space<vmem>>, vector<1x1x32x64xbf16>
      %179 = vector.shape_cast %178 : vector<1x1x32x64xbf16> to vector<32x64xbf16>
      %cst_158 = arith.constant dense<0.000000e+00> : vector<9x64xf32>
      %180 = tpu.matmul %177, %179, %cst_158 {dimension_numbers = #tpu.dot_dimension_numbers<[1], [0], [0], [1], [0, 0, 1, 1], [], []>} : vector<9x32xbf16>, vector<32x64xbf16>, vector<9x64xf32> -> vector<9x64xf32>
      %181 = arith.addf %171, %180 : vector<9x64xf32>
      %c0_159 = arith.constant 0 : index
      %c0_160 = arith.constant 0 : index
      %182 = vector.load %arg5[%c0_159, %c0_160] : memref<1x64xf32, #tpu.memory_space<vmem>>, vector<1x64xf32>
      %183 = vector.broadcast %182 : vector<1x64xf32> to vector<9x64xf32>
      %184 = arith.addf %181, %183 : vector<9x64xf32>
      %cst_161 = arith.constant 0.000000e+00 : f32
      %185 = vector.broadcast %cst_161 : f32 to vector<9x64xf32>
      %186 = arith.maximumf %184, %185 : vector<9x64xf32>
      %187 = arith.index_cast %arg17 : i32 to index
      %c0_162 = arith.constant 0 : index
      %c0_163 = arith.constant 0 : index
      %188 = vector.load %arg14[%187, %c0_162, %c0_163] : memref<9x9x64xf32, #tpu.memory_space<vmem>>, vector<1x9x64xf32>
      %189 = vector.shape_cast %188 : vector<1x9x64xf32> to vector<9x64xf32>
      %190 = vector.shape_cast %186 : vector<9x64xf32> to vector<1x9x64xf32>
      tpu.vector_store %arg14[%187, %c0_162, %c0_163], %190 {strides = array<i32>} : memref<9x9x64xf32, #tpu.memory_space<vmem>>, vector<1x9x64xf32>,
    }
    %c9_i32_4 = arith.constant 9 : i32
    %c0_i32_5 = arith.constant 0 : i32
    %4 = tpu.memref_slice %arg16[%c0_i32_5] : memref<1x!tpu.dma_semaphore, #tpu.memory_space<semaphore_mem>> -> memref<1x!tpu.dma_semaphore, #tpu.memory_space<semaphore_mem>>
    %5 = tpu.memref_squeeze %4 : memref<1x!tpu.dma_semaphore, #tpu.memory_space<semaphore_mem>> -> memref<!tpu.dma_semaphore, #tpu.memory_space<semaphore_mem>>
    tpu.wait_dma2 semaphore(%5 : memref<!tpu.dma_semaphore, #tpu.memory_space<semaphore_mem>>) src(%arg8 : memref<49x64x512xbf16, #tpu.memory_space<any>>) dst(%arg15 : memref<49x64x512xbf16, #tpu.memory_space<vmem>>)
    %cst = arith.constant 0.000000e+00 : f32
    %6 = vector.broadcast %cst : f32 to vector<1x512xf32>
    %c0_i32_6 = arith.constant 0 : i32
    %c7_i32 = arith.constant 7 : i32
    %7 = arith.addi %c0_i32_6, %c7_i32 : i32
    %c1_i32_7 = arith.constant 1 : i32
    %8 = scf.for %arg17 = %c0_i32_6 to %7 step %c1_i32_7 iter_args(%arg18 = %6) -> (vector<1x512xf32>)  : i32 {
      %cst_19 = arith.constant 0.000000e+00 : f32
      %21 = vector.broadcast %cst_19 : f32 to vector<7x64xf32>
      %c0_i32_20 = arith.constant 0 : i32
      %22 = arith.addi %arg17, %c0_i32_20 : i32
      %23 = arith.index_cast %22 : i32 to index
      %c0_21 = arith.constant 0 : index
      %c0_22 = arith.constant 0 : index
      %24 = vector.load %arg14[%23, %c0_21, %c0_22] : memref<9x9x64xf32, #tpu.memory_space<vmem>>, vector<1x7x64xf32>
      %25 = vector.shape_cast %24 : vector<1x7x64xf32> to vector<7x64xf32>
      %26 = arith.truncf %25 : vector<7x64xf32> to vector<7x64xbf16>
      %c0_23 = arith.constant 0 : index
      %c0_24 = arith.constant 0 : index
      %c0_25 = arith.constant 0 : index
      %c0_26 = arith.constant 0 : index
      %27 = vector.load %arg6[%c0_23, %c0_24, %c0_25, %c0_26] : memref<3x3x64x64xbf16, #tpu.memory_space<vmem>>, vector<1x1x64x64xbf16>
      %28 = vector.shape_cast %27 : vector<1x1x64x64xbf16> to vector<64x64xbf16>
      %cst_27 = arith.constant dense<0.000000e+00> : vector<7x64xf32>
      %29 = tpu.matmul %26, %28, %cst_27 {dimension_numbers = #tpu.dot_dimension_numbers<[1], [0], [0], [1], [0, 0, 1, 1], [], []>} : vector<7x64xbf16>, vector<64x64xbf16>, vector<7x64xf32> -> vector<7x64xf32>
      %30 = arith.addf %21, %29 : vector<7x64xf32>
      %c0_i32_28 = arith.constant 0 : i32
      %31 = arith.addi %arg17, %c0_i32_28 : i32
      %32 = arith.index_cast %31 : i32 to index
      %c1 = arith.constant 1 : index
      %c0_29 = arith.constant 0 : index
      %33 = vector.load %arg14[%32, %c1, %c0_29] : memref<9x9x64xf32, #tpu.memory_space<vmem>>, vector<1x7x64xf32>
      %34 = vector.shape_cast %33 : vector<1x7x64xf32> to vector<7x64xf32>
      %35 = arith.truncf %34 : vector<7x64xf32> to vector<7x64xbf16>
      %c0_30 = arith.constant 0 : index
      %c1_31 = arith.constant 1 : index
      %c0_32 = arith.constant 0 : index
      %c0_33 = arith.constant 0 : index
      %36 = vector.load %arg6[%c0_30, %c1_31, %c0_32, %c0_33] : memref<3x3x64x64xbf16, #tpu.memory_space<vmem>>, vector<1x1x64x64xbf16>
      %37 = vector.shape_cast %36 : vector<1x1x64x64xbf16> to vector<64x64xbf16>
      %cst_34 = arith.constant dense<0.000000e+00> : vector<7x64xf32>
      %38 = tpu.matmul %35, %37, %cst_34 {dimension_numbers = #tpu.dot_dimension_numbers<[1], [0], [0], [1], [0, 0, 1, 1], [], []>} : vector<7x64xbf16>, vector<64x64xbf16>, vector<7x64xf32> -> vector<7x64xf32>
      %39 = arith.addf %30, %38 : vector<7x64xf32>
      %c0_i32_35 = arith.constant 0 : i32
      %40 = arith.addi %arg17, %c0_i32_35 : i32
      %41 = arith.index_cast %40 : i32 to index
      %c2 = arith.constant 2 : index
      %c0_36 = arith.constant 0 : index
      %42 = vector.load %arg14[%41, %c2, %c0_36] : memref<9x9x64xf32, #tpu.memory_space<vmem>>, vector<1x7x64xf32>
      %43 = vector.shape_cast %42 : vector<1x7x64xf32> to vector<7x64xf32>
      %44 = arith.truncf %43 : vector<7x64xf32> to vector<7x64xbf16>
      %c0_37 = arith.constant 0 : index
      %c2_38 = arith.constant 2 : index
      %c0_39 = arith.constant 0 : index
      %c0_40 = arith.constant 0 : index
      %45 = vector.load %arg6[%c0_37, %c2_38, %c0_39, %c0_40] : memref<3x3x64x64xbf16, #tpu.memory_space<vmem>>, vector<1x1x64x64xbf16>
      %46 = vector.shape_cast %45 : vector<1x1x64x64xbf16> to vector<64x64xbf16>
      %cst_41 = arith.constant dense<0.000000e+00> : vector<7x64xf32>
      %47 = tpu.matmul %44, %46, %cst_41 {dimension_numbers = #tpu.dot_dimension_numbers<[1], [0], [0], [1], [0, 0, 1, 1], [], []>} : vector<7x64xbf16>, vector<64x64xbf16>, vector<7x64xf32> -> vector<7x64xf32>
      %48 = arith.addf %39, %47 : vector<7x64xf32>
      %c1_i32_42 = arith.constant 1 : i32
      %49 = arith.addi %arg17, %c1_i32_42 : i32
      %50 = arith.index_cast %49 : i32 to index
      %c0_43 = arith.constant 0 : index
      %c0_44 = arith.constant 0 : index
      %51 = vector.load %arg14[%50, %c0_43, %c0_44] : memref<9x9x64xf32, #tpu.memory_space<vmem>>, vector<1x7x64xf32>
      %52 = vector.shape_cast %51 : vector<1x7x64xf32> to vector<7x64xf32>
      %53 = arith.truncf %52 : vector<7x64xf32> to vector<7x64xbf16>
      %c1_45 = arith.constant 1 : index
      %c0_46 = arith.constant 0 : index
      %c0_47 = arith.constant 0 : index
      %c0_48 = arith.constant 0 : index
      %54 = vector.load %arg6[%c1_45, %c0_46, %c0_47, %c0_48] : memref<3x3x64x64xbf16, #tpu.memory_space<vmem>>, vector<1x1x64x64xbf16>
      %55 = vector.shape_cast %54 : vector<1x1x64x64xbf16> to vector<64x64xbf16>
      %cst_49 = arith.constant dense<0.000000e+00> : vector<7x64xf32>
      %56 = tpu.matmul %53, %55, %cst_49 {dimension_numbers = #tpu.dot_dimension_numbers<[1], [0], [0], [1], [0, 0, 1, 1], [], []>} : vector<7x64xbf16>, vector<64x64xbf16>, vector<7x64xf32> -> vector<7x64xf32>
      %57 = arith.addf %48, %56 : vector<7x64xf32>
      %c1_i32_50 = arith.constant 1 : i32
      %58 = arith.addi %arg17, %c1_i32_50 : i32
      %59 = arith.index_cast %58 : i32 to index
      %c1_51 = arith.constant 1 : index
      %c0_52 = arith.constant 0 : index
      %60 = vector.load %arg14[%59, %c1_51, %c0_52] : memref<9x9x64xf32, #tpu.memory_space<vmem>>, vector<1x7x64xf32>
      %61 = vector.shape_cast %60 : vector<1x7x64xf32> to vector<7x64xf32>
      %62 = arith.truncf %61 : vector<7x64xf32> to vector<7x64xbf16>
      %c1_53 = arith.constant 1 : index
      %c1_54 = arith.constant 1 : index
      %c0_55 = arith.constant 0 : index
      %c0_56 = arith.constant 0 : index
      %63 = vector.load %arg6[%c1_53, %c1_54, %c0_55, %c0_56] : memref<3x3x64x64xbf16, #tpu.memory_space<vmem>>, vector<1x1x64x64xbf16>
      %64 = vector.shape_cast %63 : vector<1x1x64x64xbf16> to vector<64x64xbf16>
      %cst_57 = arith.constant dense<0.000000e+00> : vector<7x64xf32>
      %65 = tpu.matmul %62, %64, %cst_57 {dimension_numbers = #tpu.dot_dimension_numbers<[1], [0], [0], [1], [0, 0, 1, 1], [], []>} : vector<7x64xbf16>, vector<64x64xbf16>, vector<7x64xf32> -> vector<7x64xf32>
      %66 = arith.addf %57, %65 : vector<7x64xf32>
      %c1_i32_58 = arith.constant 1 : i32
      %67 = arith.addi %arg17, %c1_i32_58 : i32
      %68 = arith.index_cast %67 : i32 to index
      %c2_59 = arith.constant 2 : index
      %c0_60 = arith.constant 0 : index
      %69 = vector.load %arg14[%68, %c2_59, %c0_60] : memref<9x9x64xf32, #tpu.memory_space<vmem>>, vector<1x7x64xf32>
      %70 = vector.shape_cast %69 : vector<1x7x64xf32> to vector<7x64xf32>
      %71 = arith.truncf %70 : vector<7x64xf32> to vector<7x64xbf16>
      %c1_61 = arith.constant 1 : index
      %c2_62 = arith.constant 2 : index
      %c0_63 = arith.constant 0 : index
      %c0_64 = arith.constant 0 : index
      %72 = vector.load %arg6[%c1_61, %c2_62, %c0_63, %c0_64] : memref<3x3x64x64xbf16, #tpu.memory_space<vmem>>, vector<1x1x64x64xbf16>
      %73 = vector.shape_cast %72 : vector<1x1x64x64xbf16> to vector<64x64xbf16>
      %cst_65 = arith.constant dense<0.000000e+00> : vector<7x64xf32>
      %74 = tpu.matmul %71, %73, %cst_65 {dimension_numbers = #tpu.dot_dimension_numbers<[1], [0], [0], [1], [0, 0, 1, 1], [], []>} : vector<7x64xbf16>, vector<64x64xbf16>, vector<7x64xf32> -> vector<7x64xf32>
      %75 = arith.addf %66, %74 : vector<7x64xf32>
      %c2_i32 = arith.constant 2 : i32
      %76 = arith.addi %arg17, %c2_i32 : i32
      %77 = arith.index_cast %76 : i32 to index
      %c0_66 = arith.constant 0 : index
      %c0_67 = arith.constant 0 : index
      %78 = vector.load %arg14[%77, %c0_66, %c0_67] : memref<9x9x64xf32, #tpu.memory_space<vmem>>, vector<1x7x64xf32>
      %79 = vector.shape_cast %78 : vector<1x7x64xf32> to vector<7x64xf32>
      %80 = arith.truncf %79 : vector<7x64xf32> to vector<7x64xbf16>
      %c2_68 = arith.constant 2 : index
      %c0_69 = arith.constant 0 : index
      %c0_70 = arith.constant 0 : index
      %c0_71 = arith.constant 0 : index
      %81 = vector.load %arg6[%c2_68, %c0_69, %c0_70, %c0_71] : memref<3x3x64x64xbf16, #tpu.memory_space<vmem>>, vector<1x1x64x64xbf16>
      %82 = vector.shape_cast %81 : vector<1x1x64x64xbf16> to vector<64x64xbf16>
      %cst_72 = arith.constant dense<0.000000e+00> : vector<7x64xf32>
      %83 = tpu.matmul %80, %82, %cst_72 {dimension_numbers = #tpu.dot_dimension_numbers<[1], [0], [0], [1], [0, 0, 1, 1], [], []>} : vector<7x64xbf16>, vector<64x64xbf16>, vector<7x64xf32> -> vector<7x64xf32>
      %84 = arith.addf %75, %83 : vector<7x64xf32>
      %c2_i32_73 = arith.constant 2 : i32
      %85 = arith.addi %arg17, %c2_i32_73 : i32
      %86 = arith.index_cast %85 : i32 to index
      %c1_74 = arith.constant 1 : index
      %c0_75 = arith.constant 0 : index
      %87 = vector.load %arg14[%86, %c1_74, %c0_75] : memref<9x9x64xf32, #tpu.memory_space<vmem>>, vector<1x7x64xf32>
      %88 = vector.shape_cast %87 : vector<1x7x64xf32> to vector<7x64xf32>
      %89 = arith.truncf %88 : vector<7x64xf32> to vector<7x64xbf16>
      %c2_76 = arith.constant 2 : index
      %c1_77 = arith.constant 1 : index
      %c0_78 = arith.constant 0 : index
      %c0_79 = arith.constant 0 : index
      %90 = vector.load %arg6[%c2_76, %c1_77, %c0_78, %c0_79] : memref<3x3x64x64xbf16, #tpu.memory_space<vmem>>, vector<1x1x64x64xbf16>
      %91 = vector.shape_cast %90 : vector<1x1x64x64xbf16> to vector<64x64xbf16>
      %cst_80 = arith.constant dense<0.000000e+00> : vector<7x64xf32>
      %92 = tpu.matmul %89, %91, %cst_80 {dimension_numbers = #tpu.dot_dimension_numbers<[1], [0], [0], [1], [0, 0, 1, 1], [], []>} : vector<7x64xbf16>, vector<64x64xbf16>, vector<7x64xf32> -> vector<7x64xf32>
      %93 = arith.addf %84, %92 : vector<7x64xf32>
      %c2_i32_81 = arith.constant 2 : i32
      %94 = arith.addi %arg17, %c2_i32_81 : i32
      %95 = arith.index_cast %94 : i32 to index
      %c2_82 = arith.constant 2 : index
      %c0_83 = arith.constant 0 : index
      %96 = vector.load %arg14[%95, %c2_82, %c0_83] : memref<9x9x64xf32, #tpu.memory_space<vmem>>, vector<1x7x64xf32>
      %97 = vector.shape_cast %96 : vector<1x7x64xf32> to vector<7x64xf32>
      %98 = arith.truncf %97 : vector<7x64xf32> to vector<7x64xbf16>
      %c2_84 = arith.constant 2 : index
      %c2_85 = arith.constant 2 : index
      %c0_86 = arith.constant 0 : index
      %c0_87 = arith.constant 0 : index
      %99 = vector.load %arg6[%c2_84, %c2_85, %c0_86, %c0_87] : memref<3x3x64x64xbf16, #tpu.memory_space<vmem>>, vector<1x1x64x64xbf16>
      %100 = vector.shape_cast %99 : vector<1x1x64x64xbf16> to vector<64x64xbf16>
      %cst_88 = arith.constant dense<0.000000e+00> : vector<7x64xf32>
      %101 = tpu.matmul %98, %100, %cst_88 {dimension_numbers = #tpu.dot_dimension_numbers<[1], [0], [0], [1], [0, 0, 1, 1], [], []>} : vector<7x64xbf16>, vector<64x64xbf16>, vector<7x64xf32> -> vector<7x64xf32>
      %102 = arith.addf %93, %101 : vector<7x64xf32>
      %c0_89 = arith.constant 0 : index
      %c0_90 = arith.constant 0 : index
      %103 = vector.load %arg7[%c0_89, %c0_90] : memref<1x64xf32, #tpu.memory_space<vmem>>, vector<1x64xf32>
      %104 = vector.broadcast %103 : vector<1x64xf32> to vector<7x64xf32>
      %105 = arith.addf %102, %104 : vector<7x64xf32>
      %cst_91 = arith.constant 0.000000e+00 : f32
      %106 = vector.broadcast %cst_91 : f32 to vector<7x64xf32>
      %107 = arith.maximumf %105, %106 : vector<7x64xf32>
      %108 = arith.truncf %107 : vector<7x64xf32> to vector<7x64xbf16>
      %109 = vector.extract_strided_slice %108 {offsets = [0, 0], sizes = [1, 64], strides = [1, 1]} : vector<7x64xbf16> to vector<1x64xbf16>
      %c7_i32_92 = arith.constant 7 : i32
      %110 = arith.muli %c7_i32_92, %arg17 : i32
      %c0_i32_93 = arith.constant 0 : i32
      %111 = arith.addi %110, %c0_i32_93 : i32
      %112 = arith.index_cast %111 : i32 to index
      %c0_94 = arith.constant 0 : index
      %c0_95 = arith.constant 0 : index
      %113 = vector.load %arg15[%112, %c0_94, %c0_95] : memref<49x64x512xbf16, #tpu.memory_space<vmem>>, vector<1x64x512xbf16>
      %114 = vector.shape_cast %113 : vector<1x64x512xbf16> to vector<64x512xbf16>
      %cst_96 = arith.constant dense<0.000000e+00> : vector<1x512xf32>
      %115 = tpu.matmul %109, %114, %cst_96 {dimension_numbers = #tpu.dot_dimension_numbers<[1], [0], [0], [1], [0, 0, 1, 1], [], []>} : vector<1x64xbf16>, vector<64x512xbf16>, vector<1x512xf32> -> vector<1x512xf32>
      %116 = arith.addf %arg18, %115 : vector<1x512xf32>
      %117 = vector.extract_strided_slice %108 {offsets = [1, 0], sizes = [1, 64], strides = [1, 1]} : vector<7x64xbf16> to vector<1x64xbf16>
      %c7_i32_97 = arith.constant 7 : i32
      %118 = arith.muli %c7_i32_97, %arg17 : i32
      %c1_i32_98 = arith.constant 1 : i32
      %119 = arith.addi %118, %c1_i32_98 : i32
      %120 = arith.index_cast %119 : i32 to index
      %c0_99 = arith.constant 0 : index
      %c0_100 = arith.constant 0 : index
      %121 = vector.load %arg15[%120, %c0_99, %c0_100] : memref<49x64x512xbf16, #tpu.memory_space<vmem>>, vector<1x64x512xbf16>
      %122 = vector.shape_cast %121 : vector<1x64x512xbf16> to vector<64x512xbf16>
      %cst_101 = arith.constant dense<0.000000e+00> : vector<1x512xf32>
      %123 = tpu.matmul %117, %122, %cst_101 {dimension_numbers = #tpu.dot_dimension_numbers<[1], [0], [0], [1], [0, 0, 1, 1], [], []>} : vector<1x64xbf16>, vector<64x512xbf16>, vector<1x512xf32> -> vector<1x512xf32>
      %124 = arith.addf %116, %123 : vector<1x512xf32>
      %125 = vector.extract_strided_slice %108 {offsets = [2, 0], sizes = [1, 64], strides = [1, 1]} : vector<7x64xbf16> to vector<1x64xbf16>
      %c7_i32_102 = arith.constant 7 : i32
      %126 = arith.muli %c7_i32_102, %arg17 : i32
      %c2_i32_103 = arith.constant 2 : i32
      %127 = arith.addi %126, %c2_i32_103 : i32
      %128 = arith.index_cast %127 : i32 to index
      %c0_104 = arith.constant 0 : index
      %c0_105 = arith.constant 0 : index
      %129 = vector.load %arg15[%128, %c0_104, %c0_105] : memref<49x64x512xbf16, #tpu.memory_space<vmem>>, vector<1x64x512xbf16>
      %130 = vector.shape_cast %129 : vector<1x64x512xbf16> to vector<64x512xbf16>
      %cst_106 = arith.constant dense<0.000000e+00> : vector<1x512xf32>
      %131 = tpu.matmul %125, %130, %cst_106 {dimension_numbers = #tpu.dot_dimension_numbers<[1], [0], [0], [1], [0, 0, 1, 1], [], []>} : vector<1x64xbf16>, vector<64x512xbf16>, vector<1x512xf32> -> vector<1x512xf32>
      %132 = arith.addf %124, %131 : vector<1x512xf32>
      %133 = vector.extract_strided_slice %108 {offsets = [3, 0], sizes = [1, 64], strides = [1, 1]} : vector<7x64xbf16> to vector<1x64xbf16>
      %c7_i32_107 = arith.constant 7 : i32
      %134 = arith.muli %c7_i32_107, %arg17 : i32
      %c3_i32 = arith.constant 3 : i32
      %135 = arith.addi %134, %c3_i32 : i32
      %136 = arith.index_cast %135 : i32 to index
      %c0_108 = arith.constant 0 : index
      %c0_109 = arith.constant 0 : index
      %137 = vector.load %arg15[%136, %c0_108, %c0_109] : memref<49x64x512xbf16, #tpu.memory_space<vmem>>, vector<1x64x512xbf16>
      %138 = vector.shape_cast %137 : vector<1x64x512xbf16> to vector<64x512xbf16>
      %cst_110 = arith.constant dense<0.000000e+00> : vector<1x512xf32>
      %139 = tpu.matmul %133, %138, %cst_110 {dimension_numbers = #tpu.dot_dimension_numbers<[1], [0], [0], [1], [0, 0, 1, 1], [], []>} : vector<1x64xbf16>, vector<64x512xbf16>, vector<1x512xf32> -> vector<1x512xf32>
      %140 = arith.addf %132, %139 : vector<1x512xf32>
      %141 = vector.extract_strided_slice %108 {offsets = [4, 0], sizes = [1, 64], strides = [1, 1]} : vector<7x64xbf16> to vector<1x64xbf16>
      %c7_i32_111 = arith.constant 7 : i32
      %142 = arith.muli %c7_i32_111, %arg17 : i32
      %c4_i32 = arith.constant 4 : i32
      %143 = arith.addi %142, %c4_i32 : i32
      %144 = arith.index_cast %143 : i32 to index
      %c0_112 = arith.constant 0 : index
      %c0_113 = arith.constant 0 : index
      %145 = vector.load %arg15[%144, %c0_112, %c0_113] : memref<49x64x512xbf16, #tpu.memory_space<vmem>>, vector<1x64x512xbf16>
      %146 = vector.shape_cast %145 : vector<1x64x512xbf16> to vector<64x512xbf16>
      %cst_114 = arith.constant dense<0.000000e+00> : vector<1x512xf32>
      %147 = tpu.matmul %141, %146, %cst_114 {dimension_numbers = #tpu.dot_dimension_numbers<[1], [0], [0], [1], [0, 0, 1, 1], [], []>} : vector<1x64xbf16>, vector<64x512xbf16>, vector<1x512xf32> -> vector<1x512xf32>
      %148 = arith.addf %140, %147 : vector<1x512xf32>
      %149 = vector.extract_strided_slice %108 {offsets = [5, 0], sizes = [1, 64], strides = [1, 1]} : vector<7x64xbf16> to vector<1x64xbf16>
      %c7_i32_115 = arith.constant 7 : i32
      %150 = arith.muli %c7_i32_115, %arg17 : i32
      %c5_i32 = arith.constant 5 : i32
      %151 = arith.addi %150, %c5_i32 : i32
      %152 = arith.index_cast %151 : i32 to index
      %c0_116 = arith.constant 0 : index
      %c0_117 = arith.constant 0 : index
      %153 = vector.load %arg15[%152, %c0_116, %c0_117] : memref<49x64x512xbf16, #tpu.memory_space<vmem>>, vector<1x64x512xbf16>
      %154 = vector.shape_cast %153 : vector<1x64x512xbf16> to vector<64x512xbf16>
      %cst_118 = arith.constant dense<0.000000e+00> : vector<1x512xf32>
      %155 = tpu.matmul %149, %154, %cst_118 {dimension_numbers = #tpu.dot_dimension_numbers<[1], [0], [0], [1], [0, 0, 1, 1], [], []>} : vector<1x64xbf16>, vector<64x512xbf16>, vector<1x512xf32> -> vector<1x512xf32>
      %156 = arith.addf %148, %155 : vector<1x512xf32>
      %157 = vector.extract_strided_slice %108 {offsets = [6, 0], sizes = [1, 64], strides = [1, 1]} : vector<7x64xbf16> to vector<1x64xbf16>
      %c7_i32_119 = arith.constant 7 : i32
      %158 = arith.muli %c7_i32_119, %arg17 : i32
      %c6_i32 = arith.constant 6 : i32
      %159 = arith.addi %158, %c6_i32 : i32
      %160 = arith.index_cast %159 : i32 to index
      %c0_120 = arith.constant 0 : index
      %c0_121 = arith.constant 0 : index
      %161 = vector.load %arg15[%160, %c0_120, %c0_121] : memref<49x64x512xbf16, #tpu.memory_space<vmem>>, vector<1x64x512xbf16>
      %162 = vector.shape_cast %161 : vector<1x64x512xbf16> to vector<64x512xbf16>
      %cst_122 = arith.constant dense<0.000000e+00> : vector<1x512xf32>
      %163 = tpu.matmul %157, %162, %cst_122 {dimension_numbers = #tpu.dot_dimension_numbers<[1], [0], [0], [1], [0, 0, 1, 1], [], []>} : vector<1x64xbf16>, vector<64x512xbf16>, vector<1x512xf32> -> vector<1x512xf32>
      %164 = arith.addf %156, %163 : vector<1x512xf32>
      scf.yield %164 : vector<1x512xf32>
    }
    %c7_i32_8 = arith.constant 7 : i32
    %c0 = arith.constant 0 : index
    %c0_9 = arith.constant 0 : index
    %9 = vector.load %arg9[%c0, %c0_9] : memref<1x512xf32, #tpu.memory_space<vmem>>, vector<1x512xf32>
    %10 = arith.addf %8, %9 : vector<1x512xf32>
    %cst_10 = arith.constant 0.000000e+00 : f32
    %11 = vector.broadcast %cst_10 : f32 to vector<1x512xf32>
    %12 = arith.maximumf %10, %11 : vector<1x512xf32>
    %13 = arith.truncf %12 : vector<1x512xf32> to vector<1x512xbf16>
    %c0_11 = arith.constant 0 : index
    %c0_12 = arith.constant 0 : index
    %14 = vector.load %arg10[%c0_11, %c0_12] : memref<512x128xbf16, #tpu.memory_space<vmem>>, vector<512x128xbf16>
    %cst_13 = arith.constant dense<0.000000e+00> : vector<1x128xf32>
    %15 = tpu.matmul %13, %14, %cst_13 {dimension_numbers = #tpu.dot_dimension_numbers<[1], [0], [0], [1], [0, 0, 1, 1], [], []>} : vector<1x512xbf16>, vector<512x128xbf16>, vector<1x128xf32> -> vector<1x128xf32>
    %c0_14 = arith.constant 0 : index
    %c0_15 = arith.constant 0 : index
    %16 = vector.load %arg11[%c0_14, %c0_15] : memref<1x128xf32, #tpu.memory_space<vmem>>, vector<1x128xf32>
    %17 = arith.addf %15, %16 : vector<1x128xf32>
    %c0_16 = arith.constant 0 : index
    %c0_17 = arith.constant 0 : index
    %c0_18 = arith.constant 0 : index
    %18 = vector.load %arg12[%c0_16, %c0_17, %c0_18] : memref<1x1x128xf32, #tpu.memory_space<vmem>>, vector<1x1x128xf32>
    %19 = vector.shape_cast %18 : vector<1x1x128xf32> to vector<1x128xf32>
    %20 = vector.shape_cast %17 : vector<1x128xf32> to vector<1x1x128xf32>
    tpu.vector_store %arg12[%c0_16, %c0_17, %c0_18], %20 {strides = array<i32>} : memref<1x1x128xf32, #tpu.memory_space<vmem>>, vector<1x1x128xf32>,
    return
  }
  func.func @transform_0(%arg0: i32) -> (i32, i32, i32, i32) {
    %c0_i32 = arith.constant 0 : i32
    %c0_i32_0 = arith.constant 0 : i32
    %c0_i32_1 = arith.constant 0 : i32
    %c0_i32_2 = arith.constant 0 : i32
    return %arg0, %c0_i32, %c0_i32_0, %c0_i32_1 : i32, i32, i32, i32
  }
  func.func @transform_1(%arg0: i32) -> (i32, i32, i32, i32) {
    %c0_i32 = arith.constant 0 : i32
    %c0_i32_0 = arith.constant 0 : i32
    %c0_i32_1 = arith.constant 0 : i32
    %c0_i32_2 = arith.constant 0 : i32
    %c0_i32_3 = arith.constant 0 : i32
    return %c0_i32, %c0_i32_0, %c0_i32_1, %c0_i32_2 : i32, i32, i32, i32
  }
  func.func @transform_2(%arg0: i32) -> (i32, i32) {
    %c0_i32 = arith.constant 0 : i32
    %c0_i32_0 = arith.constant 0 : i32
    %c0_i32_1 = arith.constant 0 : i32
    return %c0_i32, %c0_i32_0 : i32, i32
  }
  func.func @transform_3(%arg0: i32) -> (i32, i32, i32, i32) {
    %c0_i32 = arith.constant 0 : i32
    %c0_i32_0 = arith.constant 0 : i32
    %c0_i32_1 = arith.constant 0 : i32
    %c0_i32_2 = arith.constant 0 : i32
    %c0_i32_3 = arith.constant 0 : i32
    return %c0_i32, %c0_i32_0, %c0_i32_1, %c0_i32_2 : i32, i32, i32, i32
  }
  func.func @transform_4(%arg0: i32) -> (i32, i32) {
    %c0_i32 = arith.constant 0 : i32
    %c0_i32_0 = arith.constant 0 : i32
    %c0_i32_1 = arith.constant 0 : i32
    return %c0_i32, %c0_i32_0 : i32, i32
  }
  func.func @transform_5(%arg0: i32) -> (i32, i32, i32, i32) {
    %c0_i32 = arith.constant 0 : i32
    %c0_i32_0 = arith.constant 0 : i32
    %c0_i32_1 = arith.constant 0 : i32
    %c0_i32_2 = arith.constant 0 : i32
    %c0_i32_3 = arith.constant 0 : i32
    return %c0_i32, %c0_i32_0, %c0_i32_1, %c0_i32_2 : i32, i32, i32, i32
  }
  func.func @transform_6(%arg0: i32) -> (i32, i32) {
    %c0_i32 = arith.constant 0 : i32
    %c0_i32_0 = arith.constant 0 : i32
    %c0_i32_1 = arith.constant 0 : i32
    return %c0_i32, %c0_i32_0 : i32, i32
  }
  func.func @transform_8(%arg0: i32) -> (i32, i32) {
    %c0_i32 = arith.constant 0 : i32
    %c0_i32_0 = arith.constant 0 : i32
    %c0_i32_1 = arith.constant 0 : i32
    return %c0_i32, %c0_i32_0 : i32, i32
  }
  func.func @transform_9(%arg0: i32) -> (i32, i32) {
    %c0_i32 = arith.constant 0 : i32
    %c0_i32_0 = arith.constant 0 : i32
    %c0_i32_1 = arith.constant 0 : i32
    return %c0_i32, %c0_i32_0 : i32, i32
  }
  func.func @transform_10(%arg0: i32) -> (i32, i32) {
    %c0_i32 = arith.constant 0 : i32
    %c0_i32_0 = arith.constant 0 : i32
    %c0_i32_1 = arith.constant 0 : i32
    return %c0_i32, %c0_i32_0 : i32, i32
  }
  func.func @transform_11(%arg0: i32) -> (i32, i32, i32) {
    %c0_i32 = arith.constant 0 : i32
    %c0_i32_0 = arith.constant 0 : i32
    %c0_i32_1 = arith.constant 0 : i32
    return %arg0, %c0_i32, %c0_i32_0 : i32, i32, i32
  }
}

</mosaic_0001>

<bundles_post_ra>
// kernel: dqn_forward.1
= control target key start
LH: loop header
LB: loop body
LE: loop exit
PB: predicated region body
PF: predicated region fallthrough
CT: control target
= control target key end

     0   :  { %16 = vsyncpa [#allocation7], 0  ;;  %s14416_s0 = inlined_call_operand.vmem [shape: f32[2,21,21,64], index: 0, kind: input, shape index: {}]   ;;  %s14417_s1 = inlined_call_operand.vmem [shape: bf16[2,2,64,32], index: 1, kind: input, shape index: {}]   ;;  %s14418_s2 = inlined_call_operand.vmem [shape: f32[1,32], index: 2, kind: input, shape index: {}]   ;;  %s14419_s3 = inlined_call_operand.vmem [shape: bf16[4,4,32,64], index: 3, kind: input, shape index: {}]   ;;  %s14420_s4 = inlined_call_operand.vmem [shape: f32[1,64], index: 4, kind: input, shape index: {}]   ;;  %s14421_s5 = inlined_call_operand.vmem [shape: bf16[3,3,64,64], index: 5, kind: input, shape index: {}]   ;;  %s14422_s6 = inlined_call_operand.vmem [shape: f32[1,64], index: 6, kind: input, shape index: {}]   ;;  %s14423_s7 = inlined_call_operand.vmem [shape: bf16[49,64,512], index: 7, kind: input, shape index: {}]   ;;  %s14424_s8 = inlined_call_operand.vmem [shape: f32[1,512], index: 8, kind: input, shape index: {}]   ;;  %s14425_s9 = inlined_call_operand.vmem [shape: bf16[512,128], index: 9, kind: input, shape index: {}]   ;;  %s14426_s10 = inlined_call_operand.vmem [shape: f32[1,128], index: 10, kind: input, shape index: {}]   ;;  %s14427_s11 = inlined_call_operand.hbm [shape: f32[2,1,128], index: 11, kind: output, shape index: {}]  }
   0x1   :  { %18 = vsyncpa [#allocation7 + $0x1], 0  ;;  %s11888_s17 = smov 0   ;;  %s11890_s18 = smov 0  }
   0x2   :  { %s11892_s19 = smov 0   ;;  %s11894_s20 = smov 0  }
   0x3 LB: > { %14431 = sst [smem:[#allocation11_spill]] %s11772_s19  ;;  %s11909_s21 = sadd.s32 4294967295, %s11776_s20   ;;  %s11776_s20 = sphi %s11894_s20, %s14446_s20   ;;  %s11772_s19 = sphi %s11892_s19, %s14448_s19   ;;  %s11768_s18 = sphi %s11890_s18, %s14450_s18   ;;  %s11764_s17 = sphi %s11888_s17, %s14449_s17  }
   0x4   : > { %s10427_s22 = sadd.s32 4294967294, %s11776_s20   ;;  %s11913_s23 = sadd.s32 1, %s11776_s20  }
   0x5   : > { %14432 = sst [smem:[#allocation12_spill]] %s11913_s23  ;;  %s246_s24 = sadd.s32 1, %s11772_s19 }
   0x6   : > { %s243_s25 = ssub.s32 %s11776_s20, %s11913_s23  ;;  %p256_p0 = scmp.ne.s32.totalorder %s11772_s19, %s11768_s18 }
   0x7   : > { %p244_p1 = scmp.eq.s32.totalorder %s243_s25, 0  ;;  %p257_p2 = scmp.eq.s32.totalorder %s11909_s21, 1 }
   0x8   : > { %p262_p3 = scmp.ne.s32.totalorder %s11768_s18, %s11764_s17  ;;  %p263_p4 = scmp.eq.s32.totalorder %s10427_s22, 1 }
   0x9   : > { %s11924_s26 = scalar_select %p244_p1, %s11772_s19, %s246_s24  }
   0xa   : > { %p11926_p5 = por %p257_p2, %p256_p0  ;;  %p11930_p6 = por %p263_p4, %p262_p3 }
   0xb   : > { %14433 = sst [smem:[#allocation13_spill]] %s11924_s26  ;;  %p10430_p7 = scmp.ge.s32.totalorder %s11776_s20, 1 }
   0xc   : > { %p316_p8 = scmp.lt.s32.totalorder %s11776_s20, 3 }
   0xe   : > { %p317_p9 = pnand %p10430_p7, %p316_p8 }
   0xf   : > { %s351_s29 = sand.u32 (!%p317_p9), 1, %s11768_s18   ;;  %p353_p10 = scmp.lt.s32.totalorder (!%p317_p9), %s11909_s21, 1 }
  0x10   : > { %320 = sbr.rel (%p317_p9) target bundleno = 1990 (0x7c6), region = 60  ;;  %s11946_s16 = scalar_lea.vmem (!%p317_p9), [#allocation6], %s351_s29 }
  0x11   : > { %s11948_s22 = smov (!%p317_p9), [#allocation4]   ;;  %s14436_s26 = smov (!%p317_p9), %s14423_s7 }
  0x12   : > { %s11955_s19 = smov (!%p317_p9), 0   ;;  %s11957_s23 = smov (!%p317_p9), 0  }
  0x17   : > { %s354_s30 = scalar_select %p353_p10, %s11909_s21, 1 }
  0x19   : > { %s11419_s12 = smul.u32 504, %s354_s30 }
  0x1b   : > { %s11942_s15 = scalar_lea.vmem %s14416_s0, %s11419_s12 }
  0x1c LB: >> { %v379_v0 = vld [vmem:[%s11784_s26] sm:$0xf]  ;;  %v381_v1 = vld [vmem:[%s11784_s26 + $0x4] sm:$0xf]  ;;  %v383_v2 = vld [vmem:[%s11784_s26 + $0x8] sm:$0xf]  ;;  %s11792_s23 = sphi %s11957_s23, %s375_s23   ;;  %s11788_s19 = sphi %s11955_s19, %s14437_s19   ;;  %s11784_s26 = sphi %s14436_s26, %s1952_s26   ;;  %s11780_s22 = sphi %s11948_s22, %s1953_s22  }
  0x1d   : >> { %380 = vst [vmem:[%s11780_s22] sm:$0xf] %v379_v0  ;;  %382 = vst [vmem:[%s11780_s22 + $0x8] sm:$0xf] %v381_v1  ;;  %v385_v3 = vld [vmem:[%s11784_s26 + $0xc] sm:$0xf]  ;;  %s1947_s30 = sadd.s32 1, %s11788_s19 }
  0x1e   : >> { %384 = vst [vmem:[%s11780_s22 + $0x10] sm:$0xf] %v383_v2  ;;  %v387_v4 = vld [vmem:[%s11784_s26 + $0x20] sm:$0xf]  ;;  %v389_v5 = vld [vmem:[%s11784_s26 + $0x24] sm:$0xf] }
  0x1f   : >> { %386 = vst [vmem:[%s11780_s22 + $0x18] sm:$0xf] %v385_v3  ;;  %388 = vst [vmem:[%s11780_s22 + $0x20] sm:$0xf] %v387_v4  ;;  %v391_v6 = vld [vmem:[%s11784_s26 + $0x28] sm:$0xf] }
  0x20   : >> { %390 = vst [vmem:[%s11780_s22 + $0x28] sm:$0xf] %v389_v5  ;;  %v393_v7 = vld [vmem:[%s11784_s26 + $0x2c] sm:$0xf]  ;;  %v395_v8 = vld [vmem:[%s11784_s26 + $0x40] sm:$0xf] }
  0x21   : >> { %392 = vst [vmem:[%s11780_s22 + $0x30] sm:$0xf] %v391_v6  ;;  %394 = vst [vmem:[%s11780_s22 + $0x38] sm:$0xf] %v393_v7  ;;  %v397_v9 = vld [vmem:[%s11784_s26 + $0x44] sm:$0xf] }
  0x22   : >> { %396 = vst [vmem:[%s11780_s22 + $0x40] sm:$0xf] %v395_v8  ;;  %v399_v10 = vld [vmem:[%s11784_s26 + $0x48] sm:$0xf]  ;;  %v401_v11 = vld [vmem:[%s11784_s26 + $0x4c] sm:$0xf] }
  0x23   : >> { %398 = vst [vmem:[%s11780_s22 + $0x48] sm:$0xf] %v397_v9  ;;  %400 = vst [vmem:[%s11780_s22 + $0x50] sm:$0xf] %v399_v10  ;;  %v403_v12 = vld [vmem:[%s11784_s26 + $0x60] sm:$0xf] }
  0x24   : >> { %402 = vst [vmem:[%s11780_s22 + $0x58] sm:$0xf] %v401_v11  ;;  %v405_v13 = vld [vmem:[%s11784_s26 + $0x64] sm:$0xf]  ;;  %v407_v14 = vld [vmem:[%s11784_s26 + $0x68] sm:$0xf] }
  0x25   : >> { %404 = vst [vmem:[%s11780_s22 + $0x60] sm:$0xf] %v403_v12  ;;  %406 = vst [vmem:[%s11780_s22 + $0x68] sm:$0xf] %v405_v13  ;;  %v409_v15 = vld [vmem:[%s11784_s26 + $0x6c] sm:$0xf] }
  0x26   : >> { %408 = vst [vmem:[%s11780_s22 + $0x70] sm:$0xf] %v407_v14  ;;  %v411_v16 = vld [vmem:[%s11784_s26 + $0x80] sm:$0xf]  ;;  %v413_v17 = vld [vmem:[%s11784_s26 + $0x84] sm:$0xf] }
  0x27   : >> { %410 = vst [vmem:[%s11780_s22 + $0x78] sm:$0xf] %v409_v15  ;;  %412 = vst [vmem:[%s11780_s22 + $0x80] sm:$0xf] %v411_v16  ;;  %v415_v18 = vld [vmem:[%s11784_s26 + $0x88] sm:$0xf] }
  0x28   : >> { %414 = vst [vmem:[%s11780_s22 + $0x88] sm:$0xf] %v413_v17  ;;  %v417_v19 = vld [vmem:[%s11784_s26 + $0x8c] sm:$0xf]  ;;  %v419_v20 = vld [vmem:[%s11784_s26 + $0xa0] sm:$0xf] }
  0x29   : >> { %416 = vst [vmem:[%s11780_s22 + $0x90] sm:$0xf] %v415_v18  ;;  %418 = vst [vmem:[%s11780_s22 + $0x98] sm:$0xf] %v417_v19  ;;  %v421_v21 = vld [vmem:[%s11784_s26 + $0xa4] sm:$0xf] }
  0x2a   : >> { %420 = vst [vmem:[%s11780_s22 + $0xa0] sm:$0xf] %v419_v20  ;;  %v423_v22 = vld [vmem:[%s11784_s26 + $0xa8] sm:$0xf]  ;;  %v425_v23 = vld [vmem:[%s11784_s26 + $0xac] sm:$0xf] }
  0x2b   : >> { %422 = vst [vmem:[%s11780_s22 + $0xa8] sm:$0xf] %v421_v21  ;;  %424 = vst [vmem:[%s11780_s22 + $0xb0] sm:$0xf] %v423_v22  ;;  %v427_v24 = vld [vmem:[%s11784_s26 + $0xc0] sm:$0xf] }
  0x2c   : >> { %426 = vst [vmem:[%s11780_s22 + $0xb8] sm:$0xf] %v425_v23  ;;  %v429_v25 = vld [vmem:[%s11784_s26 + $0xc4] sm:$0xf]  ;;  %v431_v26 = vld [vmem:[%s11784_s26 + $0xc8] sm:$0xf] }
  0x2d   : >> { %428 = vst [vmem:[%s11780_s22 + $0xc0] sm:$0xf] %v427_v24  ;;  %430 = vst [vmem:[%s11780_s22 + $0xc8] sm:$0xf] %v429_v25  ;;  %v433_v27 = vld [vmem:[%s11784_s26 + $0xcc] sm:$0xf] }
  0x2e   : >> { %432 = vst [vmem:[%s11780_s22 + $0xd0] sm:$0xf] %v431_v26  ;;  %v435_v28 = vld [vmem:[%s11784_s26 + $0xe0] sm:$0xf]  ;;  %v437_v29 = vld [vmem:[%s11784_s26 + $0xe4] sm:$0xf] }
  0x2f   : >> { %434 = vst [vmem:[%s11780_s22 + $0xd8] sm:$0xf] %v433_v27  ;;  %436 = vst [vmem:[%s11780_s22 + $0xe0] sm:$0xf] %v435_v28  ;;  %v439_v30 = vld [vmem:[%s11784_s26 + $0xe8] sm:$0xf] }
  0x30   : >> { %438 = vst [vmem:[%s11780_s22 + $0xe8] sm:$0xf] %v437_v29  ;;  %v441_v31 = vld [vmem:[%s11784_s26 + $0xec] sm:$0xf]  ;;  %v443_v32 = vld [vmem:[%s11784_s26 + $0x100] sm:$0xf] }
  0x31   : >> { %440 = vst [vmem:[%s11780_s22 + $0xf0] sm:$0xf] %v439_v30  ;;  %442 = vst [vmem:[%s11780_s22 + $0xf8] sm:$0xf] %v441_v31  ;;  %v445_v33 = vld [vmem:[%s11784_s26 + $0x104] sm:$0xf] }
  0x32   : >> { %444 = vst [vmem:[%s11780_s22 + $0x100] sm:$0xf] %v443_v32  ;;  %v447_v34 = vld [vmem:[%s11784_s26 + $0x108] sm:$0xf]  ;;  %v449_v35 = vld [vmem:[%s11784_s26 + $0x10c] sm:$0xf] }
  0x33   : >> { %446 = vst [vmem:[%s11780_s22 + $0x108] sm:$0xf] %v445_v33  ;;  %448 = vst [vmem:[%s11780_s22 + $0x110] sm:$0xf] %v447_v34  ;;  %v451_v36 = vld [vmem:[%s11784_s26 + $0x120] sm:$0xf] }
  0x34   : >> { %450 = vst [vmem:[%s11780_s22 + $0x118] sm:$0xf] %v449_v35  ;;  %v453_v37 = vld [vmem:[%s11784_s26 + $0x124] sm:$0xf]  ;;  %v455_v38 = vld [vmem:[%s11784_s26 + $0x128] sm:$0xf] }
  0x35   : >> { %452 = vst [vmem:[%s11780_s22 + $0x120] sm:$0xf] %v451_v36  ;;  %454 = vst [vmem:[%s11780_s22 + $0x128] sm:$0xf] %v453_v37  ;;  %v457_v39 = vld [vmem:[%s11784_s26 + $0x12c] sm:$0xf] }
  0x36   : >> { %456 = vst [vmem:[%s11780_s22 + $0x130] sm:$0xf] %v455_v38  ;;  %v459_v40 = vld [vmem:[%s11784_s26 + $0x140] sm:$0xf]  ;;  %v461_v41 = vld [vmem:[%s11784_s26 + $0x144] sm:$0xf] }
  0x37   : >> { %458 = vst [vmem:[%s11780_s22 + $0x138] sm:$0xf] %v457_v39  ;;  %460 = vst [vmem:[%s11780_s22 + $0x140] sm:$0xf] %v459_v40  ;;  %v463_v42 = vld [vmem:[%s11784_s26 + $0x148] sm:$0xf] }
  0x38   : >> { %462 = vst [vmem:[%s11780_s22 + $0x148] sm:$0xf] %v461_v41  ;;  %v465_v43 = vld [vmem:[%s11784_s26 + $0x14c] sm:$0xf]  ;;  %v467_v44 = vld [vmem:[%s11784_s26 + $0x160] sm:$0xf] }
  0x39   : >> { %464 = vst [vmem:[%s11780_s22 + $0x150] sm:$0xf] %v463_v42  ;;  %466 = vst [vmem:[%s11780_s22 + $0x158] sm:$0xf] %v465_v43  ;;  %v469_v45 = vld [vmem:[%s11784_s26 + $0x164] sm:$0xf] }
  0x3a   : >> { %468 = vst [vmem:[%s11780_s22 + $0x160] sm:$0xf] %v467_v44  ;;  %v471_v46 = vld [vmem:[%s11784_s26 + $0x168] sm:$0xf]  ;;  %v473_v47 = vld [vmem:[%s11784_s26 + $0x16c] sm:$0xf] }
  0x3b   : >> { %470 = vst [vmem:[%s11780_s22 + $0x168] sm:$0xf] %v469_v45  ;;  %472 = vst [vmem:[%s11780_s22 + $0x170] sm:$0xf] %v471_v46  ;;  %v475_v48 = vld [vmem:[%s11784_s26 + $0x180] sm:$0xf] }
  0x3c   : >> { %474 = vst [vmem:[%s11780_s22 + $0x178] sm:$0xf] %v473_v47  ;;  %v477_v49 = vld [vmem:[%s11784_s26 + $0x184] sm:$0xf]  ;;  %v479_v50 = vld [vmem:[%s11784_s26 + $0x188] sm:$0xf] }
  0x3d   : >> { %476 = vst [vmem:[%s11780_s22 + $0x180] sm:$0xf] %v475_v48  ;;  %478 = vst [vmem:[%s11780_s22 + $0x188] sm:$0xf] %v477_v49  ;;  %v481_v51 = vld [vmem:[%s11784_s26 + $0x18c] sm:$0xf] }
  0x3e   : >> { %480 = vst [vmem:[%s11780_s22 + $0x190] sm:$0xf] %v479_v50  ;;  %v483_v52 = vld [vmem:[%s11784_s26 + $0x1a0] sm:$0xf]  ;;  %v485_v53 = vld [vmem:[%s11784_s26 + $0x1a4] sm:$0xf] }
  0x3f   : >> { %482 = vst [vmem:[%s11780_s22 + $0x198] sm:$0xf] %v481_v51  ;;  %484 = vst [vmem:[%s11780_s22 + $0x1a0] sm:$0xf] %v483_v52  ;;  %v487_v54 = vld [vmem:[%s11784_s26 + $0x1a8] sm:$0xf] }
  0x40   : >> { %486 = vst [vmem:[%s11780_s22 + $0x1a8] sm:$0xf] %v485_v53  ;;  %v489_v55 = vld [vmem:[%s11784_s26 + $0x1ac] sm:$0xf]  ;;  %v491_v56 = vld [vmem:[%s11784_s26 + $0x1c0] sm:$0xf] }
  0x41   : >> { %488 = vst [vmem:[%s11780_s22 + $0x1b0] sm:$0xf] %v487_v54  ;;  %490 = vst [vmem:[%s11780_s22 + $0x1b8] sm:$0xf] %v489_v55  ;;  %v493_v57 = vld [vmem:[%s11784_s26 + $0x1c4] sm:$0xf] }
  0x42   : >> { %492 = vst [vmem:[%s11780_s22 + $0x1c0] sm:$0xf] %v491_v56  ;;  %v495_v58 = vld [vmem:[%s11784_s26 + $0x1c8] sm:$0xf]  ;;  %v497_v59 = vld [vmem:[%s11784_s26 + $0x1cc] sm:$0xf] }
  0x43   : >> { %494 = vst [vmem:[%s11780_s22 + $0x1c8] sm:$0xf] %v493_v57  ;;  %496 = vst [vmem:[%s11780_s22 + $0x1d0] sm:$0xf] %v495_v58  ;;  %v499_v60 = vld [vmem:[%s11784_s26 + $0x1e0] sm:$0xf] }
  0x44   : >> { %498 = vst [vmem:[%s11780_s22 + $0x1d8] sm:$0xf] %v497_v59  ;;  %v501_v61 = vld [vmem:[%s11784_s26 + $0x1e4] sm:$0xf]  ;;  %v503_v62 = vld [vmem:[%s11784_s26 + $0x1e8] sm:$0xf] }
  0x45   : >> { %500 = vst [vmem:[%s11780_s22 + $0x1e0] sm:$0xf] %v499_v60  ;;  %502 = vst [vmem:[%s11780_s22 + $0x1e8] sm:$0xf] %v501_v61  ;;  %v505_v63 = vld [vmem:[%s11784_s26 + $0x1ec] sm:$0xf] }
  0x46   : >> { %504 = vst [vmem:[%s11780_s22 + $0x1f0] sm:$0xf] %v503_v62  ;;  %v507_v0 = vld [vmem:[%s11784_s26 + $0x200] sm:$0xf]  ;;  %v509_v1 = vld [vmem:[%s11784_s26 + $0x204] sm:$0xf] }
  0x47   : >> { %506 = vst [vmem:[%s11780_s22 + $0x1f8] sm:$0xf] %v505_v63  ;;  %508 = vst [vmem:[%s11780_s22 + $0x200] sm:$0xf] %v507_v0  ;;  %v511_v2 = vld [vmem:[%s11784_s26 + $0x208] sm:$0xf] }
  0x48   : >> { %510 = vst [vmem:[%s11780_s22 + $0x208] sm:$0xf] %v509_v1  ;;  %v513_v3 = vld [vmem:[%s11784_s26 + $0x20c] sm:$0xf]  ;;  %v515_v4 = vld [vmem:[%s11784_s26 + $0x220] sm:$0xf] }
  0x49   : >> { %512 = vst [vmem:[%s11780_s22 + $0x210] sm:$0xf] %v511_v2  ;;  %514 = vst [vmem:[%s11780_s22 + $0x218] sm:$0xf] %v513_v3  ;;  %v517_v5 = vld [vmem:[%s11784_s26 + $0x224] sm:$0xf] }
  0x4a   : >> { %516 = vst [vmem:[%s11780_s22 + $0x220] sm:$0xf] %v515_v4  ;;  %v519_v6 = vld [vmem:[%s11784_s26 + $0x228] sm:$0xf]  ;;  %v521_v7 = vld [vmem:[%s11784_s26 + $0x22c] sm:$0xf] }
  0x4b   : >> { %518 = vst [vmem:[%s11780_s22 + $0x228] sm:$0xf] %v517_v5  ;;  %520 = vst [vmem:[%s11780_s22 + $0x230] sm:$0xf] %v519_v6  ;;  %v523_v8 = vld [vmem:[%s11784_s26 + $0x240] sm:$0xf] }
  0x4c   : >> { %522 = vst [vmem:[%s11780_s22 + $0x238] sm:$0xf] %v521_v7  ;;  %v525_v9 = vld [vmem:[%s11784_s26 + $0x244] sm:$0xf]  ;;  %v527_v10 = vld [vmem:[%s11784_s26 + $0x248] sm:$0xf] }
  0x4d   : >> { %524 = vst [vmem:[%s11780_s22 + $0x240] sm:$0xf] %v523_v8  ;;  %526 = vst [vmem:[%s11780_s22 + $0x248] sm:$0xf] %v525_v9  ;;  %v529_v11 = vld [vmem:[%s11784_s26 + $0x24c] sm:$0xf] }
  0x4e   : >> { %528 = vst [vmem:[%s11780_s22 + $0x250] sm:$0xf] %v527_v10  ;;  %v531_v12 = vld [vmem:[%s11784_s26 + $0x260] sm:$0xf]  ;;  %v533_v13 = vld [vmem:[%s11784_s26 + $0x264] sm:$0xf] }
  0x4f   : >> { %530 = vst [vmem:[%s11780_s22 + $0x258] sm:$0xf] %v529_v11  ;;  %532 = vst [vmem:[%s11780_s22 + $0x260] sm:$0xf] %v531_v12  ;;  %v535_v14 = vld [vmem:[%s11784_s26 + $0x268] sm:$0xf] }
  0x50   : >> { %534 = vst [vmem:[%s11780_s22 + $0x268] sm:$0xf] %v533_v13  ;;  %v537_v15 = vld [vmem:[%s11784_s26 + $0x26c] sm:$0xf]  ;;  %v539_v16 = vld [vmem:[%s11784_s26 + $0x280] sm:$0xf] }
  0x51   : >> { %536 = vst [vmem:[%s11780_s22 + $0x270] sm:$0xf] %v535_v14  ;;  %538 = vst [vmem:[%s11780_s22 + $0x278] sm:$0xf] %v537_v15  ;;  %v541_v17 = vld [vmem:[%s11784_s26 + $0x284] sm:$0xf] }
  0x52   : >> { %540 = vst [vmem:[%s11780_s22 + $0x280] sm:$0xf] %v539_v16  ;;  %v543_v18 = vld [vmem:[%s11784_s26 + $0x288] sm:$0xf]  ;;  %v545_v19 = vld [vmem:[%s11784_s26 + $0x28c] sm:$0xf] }
  0x53   : >> { %542 = vst [vmem:[%s11780_s22 + $0x288] sm:$0xf] %v541_v17  ;;  %544 = vst [vmem:[%s11780_s22 + $0x290] sm:$0xf] %v543_v18  ;;  %v547_v20 = vld [vmem:[%s11784_s26 + $0x2a0] sm:$0xf] }
  0x54   : >> { %546 = vst [vmem:[%s11780_s22 + $0x298] sm:$0xf] %v545_v19  ;;  %v549_v21 = vld [vmem:[%s11784_s26 + $0x2a4] sm:$0xf]  ;;  %v551_v22 = vld [vmem:[%s11784_s26 + $0x2a8] sm:$0xf] }
  0x55   : >> { %548 = vst [vmem:[%s11780_s22 + $0x2a0] sm:$0xf] %v547_v20  ;;  %550 = vst [vmem:[%s11780_s22 + $0x2a8] sm:$0xf] %v549_v21  ;;  %v553_v23 = vld [vmem:[%s11784_s26 + $0x2ac] sm:$0xf] }
  0x56   : >> { %552 = vst [vmem:[%s11780_s22 + $0x2b0] sm:$0xf] %v551_v22  ;;  %v555_v24 = vld [vmem:[%s11784_s26 + $0x2c0] sm:$0xf]  ;;  %v557_v25 = vld [vmem:[%s11784_s26 + $0x2c4] sm:$0xf] }
  0x57   : >> { %554 = vst [vmem:[%s11780_s22 + $0x2b8] sm:$0xf] %v553_v23  ;;  %556 = vst [vmem:[%s11780_s22 + $0x2c0] sm:$0xf] %v555_v24  ;;  %v559_v26 = vld [vmem:[%s11784_s26 + $0x2c8] sm:$0xf] }
  0x58   : >> { %558 = vst [vmem:[%s11780_s22 + $0x2c8] sm:$0xf] %v557_v25  ;;  %v561_v27 = vld [vmem:[%s11784_s26 + $0x2cc] sm:$0xf]  ;;  %v563_v28 = vld [vmem:[%s11784_s26 + $0x2e0] sm:$0xf] }
  0x59   : >> { %560 = vst [vmem:[%s11780_s22 + $0x2d0] sm:$0xf] %v559_v26  ;;  %562 = vst [vmem:[%s11780_s22 + $0x2d8] sm:$0xf] %v561_v27  ;;  %v565_v29 = vld [vmem:[%s11784_s26 + $0x2e4] sm:$0xf] }
  0x5a   : >> { %564 = vst [vmem:[%s11780_s22 + $0x2e0] sm:$0xf] %v563_v28  ;;  %v567_v30 = vld [vmem:[%s11784_s26 + $0x2e8] sm:$0xf]  ;;  %v569_v31 = vld [vmem:[%s11784_s26 + $0x2ec] sm:$0xf] }
  0x5b   : >> { %566 = vst [vmem:[%s11780_s22 + $0x2e8] sm:$0xf] %v565_v29  ;;  %568 = vst [vmem:[%s11780_s22 + $0x2f0] sm:$0xf] %v567_v30  ;;  %v571_v32 = vld [vmem:[%s11784_s26 + $0x300] sm:$0xf] }
  0x5c   : >> { %570 = vst [vmem:[%s11780_s22 + $0x2f8] sm:$0xf] %v569_v31  ;;  %v573_v33 = vld [vmem:[%s11784_s26 + $0x304] sm:$0xf]  ;;  %v575_v34 = vld [vmem:[%s11784_s26 + $0x308] sm:$0xf] }
  0x5d   : >> { %572 = vst [vmem:[%s11780_s22 + $0x300] sm:$0xf] %v571_v32  ;;  %574 = vst [vmem:[%s11780_s22 + $0x308] sm:$0xf] %v573_v33  ;;  %v577_v35 = vld [vmem:[%s11784_s26 + $0x30c] sm:$0xf] }
  0x5e   : >> { %576 = vst [vmem:[%s11780_s22 + $0x310] sm:$0xf] %v575_v34  ;;  %v579_v36 = vld [vmem:[%s11784_s26 + $0x320] sm:$0xf]  ;;  %v581_v37 = vld [vmem:[%s11784_s26 + $0x324] sm:$0xf] }
  0x5f   : >> { %578 = vst [vmem:[%s11780_s22 + $0x318] sm:$0xf] %v577_v35  ;;  %580 = vst [vmem:[%s11780_s22 + $0x320] sm:$0xf] %v579_v36  ;;  %v583_v38 = vld [vmem:[%s11784_s26 + $0x328] sm:$0xf] }
  0x60   : >> { %582 = vst [vmem:[%s11780_s22 + $0x328] sm:$0xf] %v581_v37  ;;  %v585_v39 = vld [vmem:[%s11784_s26 + $0x32c] sm:$0xf]  ;;  %v587_v40 = vld [vmem:[%s11784_s26 + $0x340] sm:$0xf] }
  0x61   : >> { %584 = vst [vmem:[%s11780_s22 + $0x330] sm:$0xf] %v583_v38  ;;  %586 = vst [vmem:[%s11780_s22 + $0x338] sm:$0xf] %v585_v39  ;;  %v589_v41 = vld [vmem:[%s11784_s26 + $0x344] sm:$0xf] }
  0x62   : >> { %588 = vst [vmem:[%s11780_s22 + $0x340] sm:$0xf] %v587_v40  ;;  %v591_v42 = vld [vmem:[%s11784_s26 + $0x348] sm:$0xf]  ;;  %v593_v43 = vld [vmem:[%s11784_s26 + $0x34c] sm:$0xf] }
  0x63   : >> { %590 = vst [vmem:[%s11780_s22 + $0x348] sm:$0xf] %v589_v41  ;;  %592 = vst [vmem:[%s11780_s22 + $0x350] sm:$0xf] %v591_v42  ;;  %v595_v44 = vld [vmem:[%s11784_s26 + $0x360] sm:$0xf] }
  0x64   : >> { %594 = vst [vmem:[%s11780_s22 + $0x358] sm:$0xf] %v593_v43  ;;  %v597_v45 = vld [vmem:[%s11784_s26 + $0x364] sm:$0xf]  ;;  %v599_v46 = vld [vmem:[%s11784_s26 + $0x368] sm:$0xf] }
  0x65   : >> { %596 = vst [vmem:[%s11780_s22 + $0x360] sm:$0xf] %v595_v44  ;;  %598 = vst [vmem:[%s11780_s22 + $0x368] sm:$0xf] %v597_v45  ;;  %v601_v47 = vld [vmem:[%s11784_s26 + $0x36c] sm:$0xf] }
  0x66   : >> { %600 = vst [vmem:[%s11780_s22 + $0x370] sm:$0xf] %v599_v46  ;;  %v603_v48 = vld [vmem:[%s11784_s26 + $0x380] sm:$0xf]  ;;  %v605_v49 = vld [vmem:[%s11784_s26 + $0x384] sm:$0xf] }
  0x67   : >> { %602 = vst [vmem:[%s11780_s22 + $0x378] sm:$0xf] %v601_v47  ;;  %604 = vst [vmem:[%s11780_s22 + $0x380] sm:$0xf] %v603_v48  ;;  %v607_v50 = vld [vmem:[%s11784_s26 + $0x388] sm:$0xf] }
  0x68   : >> { %606 = vst [vmem:[%s11780_s22 + $0x388] sm:$0xf] %v605_v49  ;;  %v609_v51 = vld [vmem:[%s11784_s26 + $0x38c] sm:$0xf]  ;;  %v611_v52 = vld [vmem:[%s11784_s26 + $0x3a0] sm:$0xf] }
  0x69   : >> { %608 = vst [vmem:[%s11780_s22 + $0x390] sm:$0xf] %v607_v50  ;;  %610 = vst [vmem:[%s11780_s22 + $0x398] sm:$0xf] %v609_v51  ;;  %v613_v53 = vld [vmem:[%s11784_s26 + $0x3a4] sm:$0xf] }
  0x6a   : >> { %612 = vst [vmem:[%s11780_s22 + $0x3a0] sm:$0xf] %v611_v52  ;;  %v615_v54 = vld [vmem:[%s11784_s26 + $0x3a8] sm:$0xf]  ;;  %v617_v55 = vld [vmem:[%s11784_s26 + $0x3ac] sm:$0xf] }
  0x6b   : >> { %614 = vst [vmem:[%s11780_s22 + $0x3a8] sm:$0xf] %v613_v53  ;;  %616 = vst [vmem:[%s11780_s22 + $0x3b0] sm:$0xf] %v615_v54  ;;  %v619_v56 = vld [vmem:[%s11784_s26 + $0x3c0] sm:$0xf] }
  0x6c   : >> { %618 = vst [vmem:[%s11780_s22 + $0x3b8] sm:$0xf] %v617_v55  ;;  %v621_v57 = vld [vmem:[%s11784_s26 + $0x3c4] sm:$0xf]  ;;  %v623_v58 = vld [vmem:[%s11784_s26 + $0x3c8] sm:$0xf] }
  0x6d   : >> { %620 = vst [vmem:[%s11780_s22 + $0x3c0] sm:$0xf] %v619_v56  ;;  %622 = vst [vmem:[%s11780_s22 + $0x3c8] sm:$0xf] %v621_v57  ;;  %v625_v59 = vld [vmem:[%s11784_s26 + $0x3cc] sm:$0xf] }
  0x6e   : >> { %624 = vst [vmem:[%s11780_s22 + $0x3d0] sm:$0xf] %v623_v58  ;;  %v627_v60 = vld [vmem:[%s11784_s26 + $0x3e0] sm:$0xf]  ;;  %v629_v61 = vld [vmem:[%s11784_s26 + $0x3e4] sm:$0xf] }
  0x6f   : >> { %626 = vst [vmem:[%s11780_s22 + $0x3d8] sm:$0xf] %v625_v59  ;;  %628 = vst [vmem:[%s11780_s22 + $0x3e0] sm:$0xf] %v627_v60  ;;  %v631_v62 = vld [vmem:[%s11784_s26 + $0x3e8] sm:$0xf] }
  0x70   : >> { %630 = vst [vmem:[%s11780_s22 + $0x3e8] sm:$0xf] %v629_v61  ;;  %v633_v63 = vld [vmem:[%s11784_s26 + $0x3ec] sm:$0xf]  ;;  %v635_v0 = vld [vmem:[%s11784_s26 + $0x400] sm:$0xf] }
  0x71   : >> { %632 = vst [vmem:[%s11780_s22 + $0x3f0] sm:$0xf] %v631_v62  ;;  %634 = vst [vmem:[%s11780_s22 + $0x3f8] sm:$0xf] %v633_v63  ;;  %v637_v1 = vld [vmem:[%s11784_s26 + $0x404] sm:$0xf] }
  0x72   : >> { %636 = vst [vmem:[%s11780_s22 + $0x400] sm:$0xf] %v635_v0  ;;  %v639_v2 = vld [vmem:[%s11784_s26 + $0x408] sm:$0xf]  ;;  %v641_v3 = vld [vmem:[%s11784_s26 + $0x40c] sm:$0xf] }
  0x73   : >> { %638 = vst [vmem:[%s11780_s22 + $0x408] sm:$0xf] %v637_v1  ;;  %640 = vst [vmem:[%s11780_s22 + $0x410] sm:$0xf] %v639_v2  ;;  %v643_v4 = vld [vmem:[%s11784_s26 + $0x420] sm:$0xf] }
  0x74   : >> { %642 = vst [vmem:[%s11780_s22 + $0x418] sm:$0xf] %v641_v3  ;;  %v645_v5 = vld [vmem:[%s11784_s26 + $0x424] sm:$0xf]  ;;  %v647_v6 = vld [vmem:[%s11784_s26 + $0x428] sm:$0xf] }
  0x75   : >> { %644 = vst [vmem:[%s11780_s22 + $0x420] sm:$0xf] %v643_v4  ;;  %646 = vst [vmem:[%s11780_s22 + $0x428] sm:$0xf] %v645_v5  ;;  %v649_v7 = vld [vmem:[%s11784_s26 + $0x42c] sm:$0xf] }
  0x76   : >> { %648 = vst [vmem:[%s11780_s22 + $0x430] sm:$0xf] %v647_v6  ;;  %v651_v8 = vld [vmem:[%s11784_s26 + $0x440] sm:$0xf]  ;;  %v653_v9 = vld [vmem:[%s11784_s26 + $0x444] sm:$0xf] }
  0x77   : >> { %650 = vst [vmem:[%s11780_s22 + $0x438] sm:$0xf] %v649_v7  ;;  %652 = vst [vmem:[%s11780_s22 + $0x440] sm:$0xf] %v651_v8  ;;  %v655_v10 = vld [vmem:[%s11784_s26 + $0x448] sm:$0xf] }
  0x78   : >> { %654 = vst [vmem:[%s11780_s22 + $0x448] sm:$0xf] %v653_v9  ;;  %v657_v11 = vld [vmem:[%s11784_s26 + $0x44c] sm:$0xf]  ;;  %v659_v12 = vld [vmem:[%s11784_s26 + $0x460] sm:$0xf] }
  0x79   : >> { %656 = vst [vmem:[%s11780_s22 + $0x450] sm:$0xf] %v655_v10  ;;  %658 = vst [vmem:[%s11780_s22 + $0x458] sm:$0xf] %v657_v11  ;;  %v661_v13 = vld [vmem:[%s11784_s26 + $0x464] sm:$0xf] }
  0x7a   : >> { %660 = vst [vmem:[%s11780_s22 + $0x460] sm:$0xf] %v659_v12  ;;  %v663_v14 = vld [vmem:[%s11784_s26 + $0x468] sm:$0xf]  ;;  %v665_v15 = vld [vmem:[%s11784_s26 + $0x46c] sm:$0xf] }
  0x7b   : >> { %662 = vst [vmem:[%s11780_s22 + $0x468] sm:$0xf] %v661_v13  ;;  %664 = vst [vmem:[%s11780_s22 + $0x470] sm:$0xf] %v663_v14  ;;  %v667_v16 = vld [vmem:[%s11784_s26 + $0x480] sm:$0xf] }
  0x7c   : >> { %666 = vst [vmem:[%s11780_s22 + $0x478] sm:$0xf] %v665_v15  ;;  %v669_v17 = vld [vmem:[%s11784_s26 + $0x484] sm:$0xf]  ;;  %v671_v18 = vld [vmem:[%s11784_s26 + $0x488] sm:$0xf] }
  0x7d   : >> { %668 = vst [vmem:[%s11780_s22 + $0x480] sm:$0xf] %v667_v16  ;;  %670 = vst [vmem:[%s11780_s22 + $0x488] sm:$0xf] %v669_v17  ;;  %v673_v19 = vld [vmem:[%s11784_s26 + $0x48c] sm:$0xf] }
  0x7e   : >> { %672 = vst [vmem:[%s11780_s22 + $0x490] sm:$0xf] %v671_v18  ;;  %v675_v20 = vld [vmem:[%s11784_s26 + $0x4a0] sm:$0xf]  ;;  %v677_v21 = vld [vmem:[%s11784_s26 + $0x4a4] sm:$0xf] }
  0x7f   : >> { %674 = vst [vmem:[%s11780_s22 + $0x498] sm:$0xf] %v673_v19  ;;  %676 = vst [vmem:[%s11780_s22 + $0x4a0] sm:$0xf] %v675_v20  ;;  %v679_v22 = vld [vmem:[%s11784_s26 + $0x4a8] sm:$0xf] }
  0x80   : >> { %678 = vst [vmem:[%s11780_s22 + $0x4a8] sm:$0xf] %v677_v21  ;;  %v681_v23 = vld [vmem:[%s11784_s26 + $0x4ac] sm:$0xf]  ;;  %v683_v24 = vld [vmem:[%s11784_s26 + $0x4c0] sm:$0xf] }
  0x81   : >> { %680 = vst [vmem:[%s11780_s22 + $0x4b0] sm:$0xf] %v679_v22  ;;  %682 = vst [vmem:[%s11780_s22 + $0x4b8] sm:$0xf] %v681_v23  ;;  %v685_v25 = vld [vmem:[%s11784_s26 + $0x4c4] sm:$0xf] }
  0x82   : >> { %684 = vst [vmem:[%s11780_s22 + $0x4c0] sm:$0xf] %v683_v24  ;;  %v687_v26 = vld [vmem:[%s11784_s26 + $0x4c8] sm:$0xf]  ;;  %v689_v27 = vld [vmem:[%s11784_s26 + $0x4cc] sm:$0xf] }
  0x83   : >> { %686 = vst [vmem:[%s11780_s22 + $0x4c8] sm:$0xf] %v685_v25  ;;  %688 = vst [vmem:[%s11780_s22 + $0x4d0] sm:$0xf] %v687_v26  ;;  %v691_v28 = vld [vmem:[%s11784_s26 + $0x4e0] sm:$0xf] }
  0x84   : >> { %690 = vst [vmem:[%s11780_s22 + $0x4d8] sm:$0xf] %v689_v27  ;;  %v693_v29 = vld [vmem:[%s11784_s26 + $0x4e4] sm:$0xf]  ;;  %v695_v30 = vld [vmem:[%s11784_s26 + $0x4e8] sm:$0xf] }
  0x85   : >> { %692 = vst [vmem:[%s11780_s22 + $0x4e0] sm:$0xf] %v691_v28  ;;  %694 = vst [vmem:[%s11780_s22 + $0x4e8] sm:$0xf] %v693_v29  ;;  %v697_v31 = vld [vmem:[%s11784_s26 + $0x4ec] sm:$0xf] }
  0x86   : >> { %696 = vst [vmem:[%s11780_s22 + $0x4f0] sm:$0xf] %v695_v30  ;;  %v699_v32 = vld [vmem:[%s11784_s26 + $0x500] sm:$0xf]  ;;  %v701_v33 = vld [vmem:[%s11784_s26 + $0x504] sm:$0xf] }
  0x87   : >> { %698 = vst [vmem:[%s11780_s22 + $0x4f8] sm:$0xf] %v697_v31  ;;  %700 = vst [vmem:[%s11780_s22 + $0x500] sm:$0xf] %v699_v32  ;;  %v703_v34 = vld [vmem:[%s11784_s26 + $0x508] sm:$0xf] }
  0x88   : >> { %702 = vst [vmem:[%s11780_s22 + $0x508] sm:$0xf] %v701_v33  ;;  %v705_v35 = vld [vmem:[%s11784_s26 + $0x50c] sm:$0xf]  ;;  %v707_v36 = vld [vmem:[%s11784_s26 + $0x520] sm:$0xf] }
  0x89   : >> { %704 = vst [vmem:[%s11780_s22 + $0x510] sm:$0xf] %v703_v34  ;;  %706 = vst [vmem:[%s11780_s22 + $0x518] sm:$0xf] %v705_v35  ;;  %v709_v37 = vld [vmem:[%s11784_s26 + $0x524] sm:$0xf] }
  0x8a   : >> { %708 = vst [vmem:[%s11780_s22 + $0x520] sm:$0xf] %v707_v36  ;;  %v711_v38 = vld [vmem:[%s11784_s26 + $0x528] sm:$0xf]  ;;  %v713_v39 = vld [vmem:[%s11784_s26 + $0x52c] sm:$0xf] }
  0x8b   : >> { %710 = vst [vmem:[%s11780_s22 + $0x528] sm:$0xf] %v709_v37  ;;  %712 = vst [vmem:[%s11780_s22 + $0x530] sm:$0xf] %v711_v38  ;;  %v715_v40 = vld [vmem:[%s11784_s26 + $0x540] sm:$0xf] }
  0x8c   : >> { %714 = vst [vmem:[%s11780_s22 + $0x538] sm:$0xf] %v713_v39  ;;  %v717_v41 = vld [vmem:[%s11784_s26 + $0x544] sm:$0xf]  ;;  %v719_v42 = vld [vmem:[%s11784_s26 + $0x548] sm:$0xf] }
  0x8d   : >> { %716 = vst [vmem:[%s11780_s22 + $0x540] sm:$0xf] %v715_v40  ;;  %718 = vst [vmem:[%s11780_s22 + $0x548] sm:$0xf] %v717_v41  ;;  %v721_v43 = vld [vmem:[%s11784_s26 + $0x54c] sm:$0xf] }
  0x8e   : >> { %720 = vst [vmem:[%s11780_s22 + $0x550] sm:$0xf] %v719_v42  ;;  %v723_v44 = vld [vmem:[%s11784_s26 + $0x560] sm:$0xf]  ;;  %v725_v45 = vld [vmem:[%s11784_s26 + $0x564] sm:$0xf] }
  0x8f   : >> { %722 = vst [vmem:[%s11780_s22 + $0x558] sm:$0xf] %v721_v43  ;;  %724 = vst [vmem:[%s11780_s22 + $0x560] sm:$0xf] %v723_v44  ;;  %v727_v46 = vld [vmem:[%s11784_s26 + $0x568] sm:$0xf] }
  0x90   : >> { %726 = vst [vmem:[%s11780_s22 + $0x568] sm:$0xf] %v725_v45  ;;  %v729_v47 = vld [vmem:[%s11784_s26 + $0x56c] sm:$0xf]  ;;  %v731_v48 = vld [vmem:[%s11784_s26 + $0x580] sm:$0xf] }
  0x91   : >> { %728 = vst [vmem:[%s11780_s22 + $0x570] sm:$0xf] %v727_v46  ;;  %730 = vst [vmem:[%s11780_s22 + $0x578] sm:$0xf] %v729_v47  ;;  %v733_v49 = vld [vmem:[%s11784_s26 + $0x584] sm:$0xf] }
  0x92   : >> { %732 = vst [vmem:[%s11780_s22 + $0x580] sm:$0xf] %v731_v48  ;;  %v735_v50 = vld [vmem:[%s11784_s26 + $0x588] sm:$0xf]  ;;  %v737_v51 = vld [vmem:[%s11784_s26 + $0x58c] sm:$0xf] }
  0x93   : >> { %734 = vst [vmem:[%s11780_s22 + $0x588] sm:$0xf] %v733_v49  ;;  %736 = vst [vmem:[%s11780_s22 + $0x590] sm:$0xf] %v735_v50  ;;  %v739_v52 = vld [vmem:[%s11784_s26 + $0x5a0] sm:$0xf] }
  0x94   : >> { %738 = vst [vmem:[%s11780_s22 + $0x598] sm:$0xf] %v737_v51  ;;  %v741_v53 = vld [vmem:[%s11784_s26 + $0x5a4] sm:$0xf]  ;;  %v743_v54 = vld [vmem:[%s11784_s26 + $0x5a8] sm:$0xf] }
  0x95   : >> { %740 = vst [vmem:[%s11780_s22 + $0x5a0] sm:$0xf] %v739_v52  ;;  %742 = vst [vmem:[%s11780_s22 + $0x5a8] sm:$0xf] %v741_v53  ;;  %v745_v55 = vld [vmem:[%s11784_s26 + $0x5ac] sm:$0xf] }
  0x96   : >> { %744 = vst [vmem:[%s11780_s22 + $0x5b0] sm:$0xf] %v743_v54  ;;  %v747_v56 = vld [vmem:[%s11784_s26 + $0x5c0] sm:$0xf]  ;;  %v749_v57 = vld [vmem:[%s11784_s26 + $0x5c4] sm:$0xf] }
  0x97   : >> { %746 = vst [vmem:[%s11780_s22 + $0x5b8] sm:$0xf] %v745_v55  ;;  %748 = vst [vmem:[%s11780_s22 + $0x5c0] sm:$0xf] %v747_v56  ;;  %v751_v58 = vld [vmem:[%s11784_s26 + $0x5c8] sm:$0xf] }
  0x98   : >> { %750 = vst [vmem:[%s11780_s22 + $0x5c8] sm:$0xf] %v749_v57  ;;  %v753_v59 = vld [vmem:[%s11784_s26 + $0x5cc] sm:$0xf]  ;;  %v755_v60 = vld [vmem:[%s11784_s26 + $0x5e0] sm:$0xf] }
  0x99   : >> { %752 = vst [vmem:[%s11780_s22 + $0x5d0] sm:$0xf] %v751_v58  ;;  %754 = vst [vmem:[%s11780_s22 + $0x5d8] sm:$0xf] %v753_v59  ;;  %v757_v61 = vld [vmem:[%s11784_s26 + $0x5e4] sm:$0xf] }
  0x9a   : >> { %756 = vst [vmem:[%s11780_s22 + $0x5e0] sm:$0xf] %v755_v60  ;;  %v759_v62 = vld [vmem:[%s11784_s26 + $0x5e8] sm:$0xf]  ;;  %v761_v63 = vld [vmem:[%s11784_s26 + $0x5ec] sm:$0xf] }
  0x9b   : >> { %758 = vst [vmem:[%s11780_s22 + $0x5e8] sm:$0xf] %v757_v61  ;;  %760 = vst [vmem:[%s11780_s22 + $0x5f0] sm:$0xf] %v759_v62  ;;  %v763_v0 = vld [vmem:[%s11784_s26 + $0x600] sm:$0xf] }
  0x9c   : >> { %762 = vst [vmem:[%s11780_s22 + $0x5f8] sm:$0xf] %v761_v63  ;;  %v765_v1 = vld [vmem:[%s11784_s26 + $0x604] sm:$0xf]  ;;  %v767_v2 = vld [vmem:[%s11784_s26 + $0x608] sm:$0xf] }
  0x9d   : >> { %764 = vst [vmem:[%s11780_s22 + $0x600] sm:$0xf] %v763_v0  ;;  %766 = vst [vmem:[%s11780_s22 + $0x608] sm:$0xf] %v765_v1  ;;  %v769_v3 = vld [vmem:[%s11784_s26 + $0x60c] sm:$0xf] }
  0x9e   : >> { %768 = vst [vmem:[%s11780_s22 + $0x610] sm:$0xf] %v767_v2  ;;  %v771_v4 = vld [vmem:[%s11784_s26 + $0x620] sm:$0xf]  ;;  %v773_v5 = vld [vmem:[%s11784_s26 + $0x624] sm:$0xf] }
  0x9f   : >> { %770 = vst [vmem:[%s11780_s22 + $0x618] sm:$0xf] %v769_v3  ;;  %772 = vst [vmem:[%s11780_s22 + $0x620] sm:$0xf] %v771_v4  ;;  %v775_v6 = vld [vmem:[%s11784_s26 + $0x628] sm:$0xf] }
  0xa0   : >> { %774 = vst [vmem:[%s11780_s22 + $0x628] sm:$0xf] %v773_v5  ;;  %v777_v7 = vld [vmem:[%s11784_s26 + $0x62c] sm:$0xf]  ;;  %v779_v8 = vld [vmem:[%s11784_s26 + $0x640] sm:$0xf] }
  0xa1   : >> { %776 = vst [vmem:[%s11780_s22 + $0x630] sm:$0xf] %v775_v6  ;;  %778 = vst [vmem:[%s11780_s22 + $0x638] sm:$0xf] %v777_v7  ;;  %v781_v9 = vld [vmem:[%s11784_s26 + $0x644] sm:$0xf] }
  0xa2   : >> { %780 = vst [vmem:[%s11780_s22 + $0x640] sm:$0xf] %v779_v8  ;;  %v783_v10 = vld [vmem:[%s11784_s26 + $0x648] sm:$0xf]  ;;  %v785_v11 = vld [vmem:[%s11784_s26 + $0x64c] sm:$0xf] }
  0xa3   : >> { %782 = vst [vmem:[%s11780_s22 + $0x648] sm:$0xf] %v781_v9  ;;  %784 = vst [vmem:[%s11780_s22 + $0x650] sm:$0xf] %v783_v10  ;;  %v787_v12 = vld [vmem:[%s11784_s26 + $0x660] sm:$0xf] }
  0xa4   : >> { %786 = vst [vmem:[%s11780_s22 + $0x658] sm:$0xf] %v785_v11  ;;  %v789_v13 = vld [vmem:[%s11784_s26 + $0x664] sm:$0xf]  ;;  %v791_v14 = vld [vmem:[%s11784_s26 + $0x668] sm:$0xf] }
  0xa5   : >> { %788 = vst [vmem:[%s11780_s22 + $0x660] sm:$0xf] %v787_v12  ;;  %790 = vst [vmem:[%s11780_s22 + $0x668] sm:$0xf] %v789_v13  ;;  %v793_v15 = vld [vmem:[%s11784_s26 + $0x66c] sm:$0xf] }
  0xa6   : >> { %792 = vst [vmem:[%s11780_s22 + $0x670] sm:$0xf] %v791_v14  ;;  %v795_v16 = vld [vmem:[%s11784_s26 + $0x680] sm:$0xf]  ;;  %v797_v17 = vld [vmem:[%s11784_s26 + $0x684] sm:$0xf] }
  0xa7   : >> { %794 = vst [vmem:[%s11780_s22 + $0x678] sm:$0xf] %v793_v15  ;;  %796 = vst [vmem:[%s11780_s22 + $0x680] sm:$0xf] %v795_v16  ;;  %v799_v18 = vld [vmem:[%s11784_s26 + $0x688] sm:$0xf] }
  0xa8   : >> { %798 = vst [vmem:[%s11780_s22 + $0x688] sm:$0xf] %v797_v17  ;;  %v801_v19 = vld [vmem:[%s11784_s26 + $0x68c] sm:$0xf]  ;;  %v803_v20 = vld [vmem:[%s11784_s26 + $0x6a0] sm:$0xf] }
  0xa9   : >> { %800 = vst [vmem:[%s11780_s22 + $0x690] sm:$0xf] %v799_v18  ;;  %802 = vst [vmem:[%s11780_s22 + $0x698] sm:$0xf] %v801_v19  ;;  %v805_v21 = vld [vmem:[%s11784_s26 + $0x6a4] sm:$0xf] }
  0xaa   : >> { %804 = vst [vmem:[%s11780_s22 + $0x6a0] sm:$0xf] %v803_v20  ;;  %v807_v22 = vld [vmem:[%s11784_s26 + $0x6a8] sm:$0xf]  ;;  %v809_v23 = vld [vmem:[%s11784_s26 + $0x6ac] sm:$0xf] }
  0xab   : >> { %806 = vst [vmem:[%s11780_s22 + $0x6a8] sm:$0xf] %v805_v21  ;;  %808 = vst [vmem:[%s11780_s22 + $0x6b0] sm:$0xf] %v807_v22  ;;  %v811_v24 = vld [vmem:[%s11784_s26 + $0x6c0] sm:$0xf] }
  0xac   : >> { %810 = vst [vmem:[%s11780_s22 + $0x6b8] sm:$0xf] %v809_v23  ;;  %v813_v25 = vld [vmem:[%s11784_s26 + $0x6c4] sm:$0xf]  ;;  %v815_v26 = vld [vmem:[%s11784_s26 + $0x6c8] sm:$0xf] }
  0xad   : >> { %812 = vst [vmem:[%s11780_s22 + $0x6c0] sm:$0xf] %v811_v24  ;;  %814 = vst [vmem:[%s11780_s22 + $0x6c8] sm:$0xf] %v813_v25  ;;  %v817_v27 = vld [vmem:[%s11784_s26 + $0x6cc] sm:$0xf] }
  0xae   : >> { %816 = vst [vmem:[%s11780_s22 + $0x6d0] sm:$0xf] %v815_v26  ;;  %v819_v28 = vld [vmem:[%s11784_s26 + $0x6e0] sm:$0xf]  ;;  %v821_v29 = vld [vmem:[%s11784_s26 + $0x6e4] sm:$0xf] }
  0xaf   : >> { %818 = vst [vmem:[%s11780_s22 + $0x6d8] sm:$0xf] %v817_v27  ;;  %820 = vst [vmem:[%s11780_s22 + $0x6e0] sm:$0xf] %v819_v28  ;;  %v823_v30 = vld [vmem:[%s11784_s26 + $0x6e8] sm:$0xf] }
  0xb0   : >> { %822 = vst [vmem:[%s11780_s22 + $0x6e8] sm:$0xf] %v821_v29  ;;  %v825_v31 = vld [vmem:[%s11784_s26 + $0x6ec] sm:$0xf]  ;;  %v827_v32 = vld [vmem:[%s11784_s26 + $0x700] sm:$0xf] }
  0xb1   : >> { %824 = vst [vmem:[%s11780_s22 + $0x6f0] sm:$0xf] %v823_v30  ;;  %826 = vst [vmem:[%s11780_s22 + $0x6f8] sm:$0xf] %v825_v31  ;;  %v829_v33 = vld [vmem:[%s11784_s26 + $0x704] sm:$0xf] }
  0xb2   : >> { %828 = vst [vmem:[%s11780_s22 + $0x700] sm:$0xf] %v827_v32  ;;  %v831_v34 = vld [vmem:[%s11784_s26 + $0x708] sm:$0xf]  ;;  %v833_v35 = vld [vmem:[%s11784_s26 + $0x70c] sm:$0xf] }
  0xb3   : >> { %830 = vst [vmem:[%s11780_s22 + $0x708] sm:$0xf] %v829_v33  ;;  %832 = vst [vmem:[%s11780_s22 + $0x710] sm:$0xf] %v831_v34  ;;  %v835_v36 = vld [vmem:[%s11784_s26 + $0x720] sm:$0xf] }
  0xb4   : >> { %834 = vst [vmem:[%s11780_s22 + $0x718] sm:$0xf] %v833_v35  ;;  %v837_v37 = vld [vmem:[%s11784_s26 + $0x724] sm:$0xf]  ;;  %v839_v38 = vld [vmem:[%s11784_s26 + $0x728] sm:$0xf] }
  0xb5   : >> { %836 = vst [vmem:[%s11780_s22 + $0x720] sm:$0xf] %v835_v36  ;;  %838 = vst [vmem:[%s11780_s22 + $0x728] sm:$0xf] %v837_v37  ;;  %v841_v39 = vld [vmem:[%s11784_s26 + $0x72c] sm:$0xf] }
  0xb6   : >> { %840 = vst [vmem:[%s11780_s22 + $0x730] sm:$0xf] %v839_v38  ;;  %v843_v40 = vld [vmem:[%s11784_s26 + $0x740] sm:$0xf]  ;;  %v845_v41 = vld [vmem:[%s11784_s26 + $0x744] sm:$0xf] }
  0xb7   : >> { %842 = vst [vmem:[%s11780_s22 + $0x738] sm:$0xf] %v841_v39  ;;  %844 = vst [vmem:[%s11780_s22 + $0x740] sm:$0xf] %v843_v40  ;;  %v847_v42 = vld [vmem:[%s11784_s26 + $0x748] sm:$0xf] }
  0xb8   : >> { %846 = vst [vmem:[%s11780_s22 + $0x748] sm:$0xf] %v845_v41  ;;  %v849_v43 = vld [vmem:[%s11784_s26 + $0x74c] sm:$0xf]  ;;  %v851_v44 = vld [vmem:[%s11784_s26 + $0x760] sm:$0xf] }
  0xb9   : >> { %848 = vst [vmem:[%s11780_s22 + $0x750] sm:$0xf] %v847_v42  ;;  %850 = vst [vmem:[%s11780_s22 + $0x758] sm:$0xf] %v849_v43  ;;  %v853_v45 = vld [vmem:[%s11784_s26 + $0x764] sm:$0xf] }
  0xba   : >> { %852 = vst [vmem:[%s11780_s22 + $0x760] sm:$0xf] %v851_v44  ;;  %v855_v46 = vld [vmem:[%s11784_s26 + $0x768] sm:$0xf]  ;;  %v857_v47 = vld [vmem:[%s11784_s26 + $0x76c] sm:$0xf] }
  0xbb   : >> { %854 = vst [vmem:[%s11780_s22 + $0x768] sm:$0xf] %v853_v45  ;;  %856 = vst [vmem:[%s11780_s22 + $0x770] sm:$0xf] %v855_v46  ;;  %v859_v48 = vld [vmem:[%s11784_s26 + $0x780] sm:$0xf] }
  0xbc   : >> { %858 = vst [vmem:[%s11780_s22 + $0x778] sm:$0xf] %v857_v47  ;;  %v861_v49 = vld [vmem:[%s11784_s26 + $0x784] sm:$0xf]  ;;  %v863_v50 = vld [vmem:[%s11784_s26 + $0x788] sm:$0xf] }
  0xbd   : >> { %860 = vst [vmem:[%s11780_s22 + $0x780] sm:$0xf] %v859_v48  ;;  %862 = vst [vmem:[%s11780_s22 + $0x788] sm:$0xf] %v861_v49  ;;  %v865_v51 = vld [vmem:[%s11784_s26 + $0x78c] sm:$0xf] }
  0xbe   : >> { %864 = vst [vmem:[%s11780_s22 + $0x790] sm:$0xf] %v863_v50  ;;  %v867_v52 = vld [vmem:[%s11784_s26 + $0x7a0] sm:$0xf]  ;;  %v869_v53 = vld [vmem:[%s11784_s26 + $0x7a4] sm:$0xf] }
  0xbf   : >> { %866 = vst [vmem:[%s11780_s22 + $0x798] sm:$0xf] %v865_v51  ;;  %868 = vst [vmem:[%s11780_s22 + $0x7a0] sm:$0xf] %v867_v52  ;;  %v871_v54 = vld [vmem:[%s11784_s26 + $0x7a8] sm:$0xf] }
  0xc0   : >> { %870 = vst [vmem:[%s11780_s22 + $0x7a8] sm:$0xf] %v869_v53  ;;  %v873_v55 = vld [vmem:[%s11784_s26 + $0x7ac] sm:$0xf]  ;;  %v875_v56 = vld [vmem:[%s11784_s26 + $0x7c0] sm:$0xf] }
  0xc1   : >> { %872 = vst [vmem:[%s11780_s22 + $0x7b0] sm:$0xf] %v871_v54  ;;  %874 = vst [vmem:[%s11780_s22 + $0x7b8] sm:$0xf] %v873_v55  ;;  %v877_v57 = vld [vmem:[%s11784_s26 + $0x7c4] sm:$0xf] }
  0xc2   : >> { %876 = vst [vmem:[%s11780_s22 + $0x7c0] sm:$0xf] %v875_v56  ;;  %v879_v58 = vld [vmem:[%s11784_s26 + $0x7c8] sm:$0xf]  ;;  %v881_v59 = vld [vmem:[%s11784_s26 + $0x7cc] sm:$0xf] }
  0xc3   : >> { %878 = vst [vmem:[%s11780_s22 + $0x7c8] sm:$0xf] %v877_v57  ;;  %880 = vst [vmem:[%s11780_s22 + $0x7d0] sm:$0xf] %v879_v58  ;;  %v883_v60 = vld [vmem:[%s11784_s26 + $0x7e0] sm:$0xf] }
  0xc4   : >> { %882 = vst [vmem:[%s11780_s22 + $0x7d8] sm:$0xf] %v881_v59  ;;  %v885_v61 = vld [vmem:[%s11784_s26 + $0x7e4] sm:$0xf]  ;;  %v887_v62 = vld [vmem:[%s11784_s26 + $0x7e8] sm:$0xf] }
  0xc5   : >> { %884 = vst [vmem:[%s11780_s22 + $0x7e0] sm:$0xf] %v883_v60  ;;  %886 = vst [vmem:[%s11780_s22 + $0x7e8] sm:$0xf] %v885_v61  ;;  %v889_v63 = vld [vmem:[%s11784_s26 + $0x7ec] sm:$0xf] }
  0xc6   : >> { %888 = vst [vmem:[%s11780_s22 + $0x7f0] sm:$0xf] %v887_v62  ;;  %v891_v0 = vld [vmem:[%s11784_s26 + $0x800] sm:$0xf]  ;;  %v893_v1 = vld [vmem:[%s11784_s26 + $0x804] sm:$0xf] }
  0xc7   : >> { %890 = vst [vmem:[%s11780_s22 + $0x7f8] sm:$0xf] %v889_v63  ;;  %892 = vst [vmem:[%s11780_s22 + $0x800] sm:$0xf] %v891_v0  ;;  %v895_v2 = vld [vmem:[%s11784_s26 + $0x808] sm:$0xf] }
  0xc8   : >> { %894 = vst [vmem:[%s11780_s22 + $0x808] sm:$0xf] %v893_v1  ;;  %v897_v3 = vld [vmem:[%s11784_s26 + $0x80c] sm:$0xf]  ;;  %v899_v4 = vld [vmem:[%s11784_s26 + $0x820] sm:$0xf] }
  0xc9   : >> { %896 = vst [vmem:[%s11780_s22 + $0x810] sm:$0xf] %v895_v2  ;;  %898 = vst [vmem:[%s11780_s22 + $0x818] sm:$0xf] %v897_v3  ;;  %v901_v5 = vld [vmem:[%s11784_s26 + $0x824] sm:$0xf] }
  0xca   : >> { %900 = vst [vmem:[%s11780_s22 + $0x820] sm:$0xf] %v899_v4  ;;  %v903_v6 = vld [vmem:[%s11784_s26 + $0x828] sm:$0xf]  ;;  %v905_v7 = vld [vmem:[%s11784_s26 + $0x82c] sm:$0xf] }
  0xcb   : >> { %902 = vst [vmem:[%s11780_s22 + $0x828] sm:$0xf] %v901_v5  ;;  %904 = vst [vmem:[%s11780_s22 + $0x830] sm:$0xf] %v903_v6  ;;  %v907_v8 = vld [vmem:[%s11784_s26 + $0x840] sm:$0xf] }
  0xcc   : >> { %906 = vst [vmem:[%s11780_s22 + $0x838] sm:$0xf] %v905_v7  ;;  %v909_v9 = vld [vmem:[%s11784_s26 + $0x844] sm:$0xf]  ;;  %v911_v10 = vld [vmem:[%s11784_s26 + $0x848] sm:$0xf] }
  0xcd   : >> { %908 = vst [vmem:[%s11780_s22 + $0x840] sm:$0xf] %v907_v8  ;;  %910 = vst [vmem:[%s11780_s22 + $0x848] sm:$0xf] %v909_v9  ;;  %v913_v11 = vld [vmem:[%s11784_s26 + $0x84c] sm:$0xf] }
  0xce   : >> { %912 = vst [vmem:[%s11780_s22 + $0x850] sm:$0xf] %v911_v10  ;;  %v915_v12 = vld [vmem:[%s11784_s26 + $0x860] sm:$0xf]  ;;  %v917_v13 = vld [vmem:[%s11784_s26 + $0x864] sm:$0xf] }
  0xcf   : >> { %914 = vst [vmem:[%s11780_s22 + $0x858] sm:$0xf] %v913_v11  ;;  %916 = vst [vmem:[%s11780_s22 + $0x860] sm:$0xf] %v915_v12  ;;  %v919_v14 = vld [vmem:[%s11784_s26 + $0x868] sm:$0xf] }
  0xd0   : >> { %918 = vst [vmem:[%s11780_s22 + $0x868] sm:$0xf] %v917_v13  ;;  %v921_v15 = vld [vmem:[%s11784_s26 + $0x86c] sm:$0xf]  ;;  %v923_v16 = vld [vmem:[%s11784_s26 + $0x880] sm:$0xf] }
  0xd1   : >> { %920 = vst [vmem:[%s11780_s22 + $0x870] sm:$0xf] %v919_v14  ;;  %922 = vst [vmem:[%s11780_s22 + $0x878] sm:$0xf] %v921_v15  ;;  %v925_v17 = vld [vmem:[%s11784_s26 + $0x884] sm:$0xf] }
  0xd2   : >> { %924 = vst [vmem:[%s11780_s22 + $0x880] sm:$0xf] %v923_v16  ;;  %v927_v18 = vld [vmem:[%s11784_s26 + $0x888] sm:$0xf]  ;;  %v929_v19 = vld [vmem:[%s11784_s26 + $0x88c] sm:$0xf] }
  0xd3   : >> { %926 = vst [vmem:[%s11780_s22 + $0x888] sm:$0xf] %v925_v17  ;;  %928 = vst [vmem:[%s11780_s22 + $0x890] sm:$0xf] %v927_v18  ;;  %v931_v20 = vld [vmem:[%s11784_s26 + $0x8a0] sm:$0xf] }
  0xd4   : >> { %930 = vst [vmem:[%s11780_s22 + $0x898] sm:$0xf] %v929_v19  ;;  %v933_v21 = vld [vmem:[%s11784_s26 + $0x8a4] sm:$0xf]  ;;  %v935_v22 = vld [vmem:[%s11784_s26 + $0x8a8] sm:$0xf] }
  0xd5   : >> { %932 = vst [vmem:[%s11780_s22 + $0x8a0] sm:$0xf] %v931_v20  ;;  %934 = vst [vmem:[%s11780_s22 + $0x8a8] sm:$0xf] %v933_v21  ;;  %v937_v23 = vld [vmem:[%s11784_s26 + $0x8ac] sm:$0xf] }
  0xd6   : >> { %936 = vst [vmem:[%s11780_s22 + $0x8b0] sm:$0xf] %v935_v22  ;;  %v939_v24 = vld [vmem:[%s11784_s26 + $0x8c0] sm:$0xf]  ;;  %v941_v25 = vld [vmem:[%s11784_s26 + $0x8c4] sm:$0xf] }
  0xd7   : >> { %938 = vst [vmem:[%s11780_s22 + $0x8b8] sm:$0xf] %v937_v23  ;;  %940 = vst [vmem:[%s11780_s22 + $0x8c0] sm:$0xf] %v939_v24  ;;  %v943_v26 = vld [vmem:[%s11784_s26 + $0x8c8] sm:$0xf] }
  0xd8   : >> { %942 = vst [vmem:[%s11780_s22 + $0x8c8] sm:$0xf] %v941_v25  ;;  %v945_v27 = vld [vmem:[%s11784_s26 + $0x8cc] sm:$0xf]  ;;  %v947_v28 = vld [vmem:[%s11784_s26 + $0x8e0] sm:$0xf] }
  0xd9   : >> { %944 = vst [vmem:[%s11780_s22 + $0x8d0] sm:$0xf] %v943_v26  ;;  %946 = vst [vmem:[%s11780_s22 + $0x8d8] sm:$0xf] %v945_v27  ;;  %v949_v29 = vld [vmem:[%s11784_s26 + $0x8e4] sm:$0xf] }
  0xda   : >> { %948 = vst [vmem:[%s11780_s22 + $0x8e0] sm:$0xf] %v947_v28  ;;  %v951_v30 = vld [vmem:[%s11784_s26 + $0x8e8] sm:$0xf]  ;;  %v953_v31 = vld [vmem:[%s11784_s26 + $0x8ec] sm:$0xf] }
  0xdb   : >> { %950 = vst [vmem:[%s11780_s22 + $0x8e8] sm:$0xf] %v949_v29  ;;  %952 = vst [vmem:[%s11780_s22 + $0x8f0] sm:$0xf] %v951_v30  ;;  %v955_v32 = vld [vmem:[%s11784_s26 + $0x900] sm:$0xf] }
  0xdc   : >> { %954 = vst [vmem:[%s11780_s22 + $0x8f8] sm:$0xf] %v953_v31  ;;  %v957_v33 = vld [vmem:[%s11784_s26 + $0x904] sm:$0xf]  ;;  %v959_v34 = vld [vmem:[%s11784_s26 + $0x908] sm:$0xf] }
  0xdd   : >> { %956 = vst [vmem:[%s11780_s22 + $0x900] sm:$0xf] %v955_v32  ;;  %958 = vst [vmem:[%s11780_s22 + $0x908] sm:$0xf] %v957_v33  ;;  %v961_v35 = vld [vmem:[%s11784_s26 + $0x90c] sm:$0xf] }
  0xde   : >> { %960 = vst [vmem:[%s11780_s22 + $0x910] sm:$0xf] %v959_v34  ;;  %v963_v36 = vld [vmem:[%s11784_s26 + $0x920] sm:$0xf]  ;;  %v965_v37 = vld [vmem:[%s11784_s26 + $0x924] sm:$0xf] }
  0xdf   : >> { %962 = vst [vmem:[%s11780_s22 + $0x918] sm:$0xf] %v961_v35  ;;  %964 = vst [vmem:[%s11780_s22 + $0x920] sm:$0xf] %v963_v36  ;;  %v967_v38 = vld [vmem:[%s11784_s26 + $0x928] sm:$0xf] }
  0xe0   : >> { %966 = vst [vmem:[%s11780_s22 + $0x928] sm:$0xf] %v965_v37  ;;  %v969_v39 = vld [vmem:[%s11784_s26 + $0x92c] sm:$0xf]  ;;  %v971_v40 = vld [vmem:[%s11784_s26 + $0x940] sm:$0xf] }
  0xe1   : >> { %968 = vst [vmem:[%s11780_s22 + $0x930] sm:$0xf] %v967_v38  ;;  %970 = vst [vmem:[%s11780_s22 + $0x938] sm:$0xf] %v969_v39  ;;  %v973_v41 = vld [vmem:[%s11784_s26 + $0x944] sm:$0xf] }
  0xe2   : >> { %972 = vst [vmem:[%s11780_s22 + $0x940] sm:$0xf] %v971_v40  ;;  %v975_v42 = vld [vmem:[%s11784_s26 + $0x948] sm:$0xf]  ;;  %v977_v43 = vld [vmem:[%s11784_s26 + $0x94c] sm:$0xf] }
  0xe3   : >> { %974 = vst [vmem:[%s11780_s22 + $0x948] sm:$0xf] %v973_v41  ;;  %976 = vst [vmem:[%s11780_s22 + $0x950] sm:$0xf] %v975_v42  ;;  %v979_v44 = vld [vmem:[%s11784_s26 + $0x960] sm:$0xf] }
  0xe4   : >> { %978 = vst [vmem:[%s11780_s22 + $0x958] sm:$0xf] %v977_v43  ;;  %v981_v45 = vld [vmem:[%s11784_s26 + $0x964] sm:$0xf]  ;;  %v983_v46 = vld [vmem:[%s11784_s26 + $0x968] sm:$0xf] }
  0xe5   : >> { %980 = vst [vmem:[%s11780_s22 + $0x960] sm:$0xf] %v979_v44  ;;  %982 = vst [vmem:[%s11780_s22 + $0x968] sm:$0xf] %v981_v45  ;;  %v985_v47 = vld [vmem:[%s11784_s26 + $0x96c] sm:$0xf] }
  0xe6   : >> { %984 = vst [vmem:[%s11780_s22 + $0x970] sm:$0xf] %v983_v46  ;;  %v987_v48 = vld [vmem:[%s11784_s26 + $0x980] sm:$0xf]  ;;  %v989_v49 = vld [vmem:[%s11784_s26 + $0x984] sm:$0xf] }
  0xe7   : >> { %986 = vst [vmem:[%s11780_s22 + $0x978] sm:$0xf] %v985_v47  ;;  %988 = vst [vmem:[%s11780_s22 + $0x980] sm:$0xf] %v987_v48  ;;  %v991_v50 = vld [vmem:[%s11784_s26 + $0x988] sm:$0xf] }
  0xe8   : >> { %990 = vst [vmem:[%s11780_s22 + $0x988] sm:$0xf] %v989_v49  ;;  %v993_v51 = vld [vmem:[%s11784_s26 + $0x98c] sm:$0xf]  ;;  %v995_v52 = vld [vmem:[%s11784_s26 + $0x9a0] sm:$0xf] }
  0xe9   : >> { %992 = vst [vmem:[%s11780_s22 + $0x990] sm:$0xf] %v991_v50  ;;  %994 = vst [vmem:[%s11780_s22 + $0x998] sm:$0xf] %v993_v51  ;;  %v997_v53 = vld [vmem:[%s11784_s26 + $0x9a4] sm:$0xf] }
  0xea   : >> { %996 = vst [vmem:[%s11780_s22 + $0x9a0] sm:$0xf] %v995_v52  ;;  %v999_v54 = vld [vmem:[%s11784_s26 + $0x9a8] sm:$0xf]  ;;  %v1001_v55 = vld [vmem:[%s11784_s26 + $0x9ac] sm:$0xf] }
  0xeb   : >> { %998 = vst [vmem:[%s11780_s22 + $0x9a8] sm:$0xf] %v997_v53  ;;  %1000 = vst [vmem:[%s11780_s22 + $0x9b0] sm:$0xf] %v999_v54  ;;  %v1003_v56 = vld [vmem:[%s11784_s26 + $0x9c0] sm:$0xf] }
  0xec   : >> { %1002 = vst [vmem:[%s11780_s22 + $0x9b8] sm:$0xf] %v1001_v55  ;;  %v1005_v57 = vld [vmem:[%s11784_s26 + $0x9c4] sm:$0xf]  ;;  %v1007_v58 = vld [vmem:[%s11784_s26 + $0x9c8] sm:$0xf] }
  0xed   : >> { %1004 = vst [vmem:[%s11780_s22 + $0x9c0] sm:$0xf] %v1003_v56  ;;  %1006 = vst [vmem:[%s11780_s22 + $0x9c8] sm:$0xf] %v1005_v57  ;;  %v1009_v59 = vld [vmem:[%s11784_s26 + $0x9cc] sm:$0xf] }
  0xee   : >> { %1008 = vst [vmem:[%s11780_s22 + $0x9d0] sm:$0xf] %v1007_v58  ;;  %v1011_v60 = vld [vmem:[%s11784_s26 + $0x9e0] sm:$0xf]  ;;  %v1013_v61 = vld [vmem:[%s11784_s26 + $0x9e4] sm:$0xf] }
  0xef   : >> { %1010 = vst [vmem:[%s11780_s22 + $0x9d8] sm:$0xf] %v1009_v59  ;;  %1012 = vst [vmem:[%s11780_s22 + $0x9e0] sm:$0xf] %v1011_v60  ;;  %v1015_v62 = vld [vmem:[%s11784_s26 + $0x9e8] sm:$0xf] }
  0xf0   : >> { %1014 = vst [vmem:[%s11780_s22 + $0x9e8] sm:$0xf] %v1013_v61  ;;  %v1017_v63 = vld [vmem:[%s11784_s26 + $0x9ec] sm:$0xf]  ;;  %v1019_v0 = vld [vmem:[%s11784_s26 + $0xa00] sm:$0xf] }
  0xf1   : >> { %1016 = vst [vmem:[%s11780_s22 + $0x9f0] sm:$0xf] %v1015_v62  ;;  %1018 = vst [vmem:[%s11780_s22 + $0x9f8] sm:$0xf] %v1017_v63  ;;  %v1021_v1 = vld [vmem:[%s11784_s26 + $0xa04] sm:$0xf] }
  0xf2   : >> { %1020 = vst [vmem:[%s11780_s22 + $0xa00] sm:$0xf] %v1019_v0  ;;  %v1023_v2 = vld [vmem:[%s11784_s26 + $0xa08] sm:$0xf]  ;;  %v1025_v3 = vld [vmem:[%s11784_s26 + $0xa0c] sm:$0xf] }
  0xf3   : >> { %1022 = vst [vmem:[%s11780_s22 + $0xa08] sm:$0xf] %v1021_v1  ;;  %1024 = vst [vmem:[%s11780_s22 + $0xa10] sm:$0xf] %v1023_v2  ;;  %v1027_v4 = vld [vmem:[%s11784_s26 + $0xa20] sm:$0xf] }
  0xf4   : >> { %1026 = vst [vmem:[%s11780_s22 + $0xa18] sm:$0xf] %v1025_v3  ;;  %v1029_v5 = vld [vmem:[%s11784_s26 + $0xa24] sm:$0xf]  ;;  %v1031_v6 = vld [vmem:[%s11784_s26 + $0xa28] sm:$0xf] }
  0xf5   : >> { %1028 = vst [vmem:[%s11780_s22 + $0xa20] sm:$0xf] %v1027_v4  ;;  %1030 = vst [vmem:[%s11780_s22 + $0xa28] sm:$0xf] %v1029_v5  ;;  %v1033_v7 = vld [vmem:[%s11784_s26 + $0xa2c] sm:$0xf] }
  0xf6   : >> { %1032 = vst [vmem:[%s11780_s22 + $0xa30] sm:$0xf] %v1031_v6  ;;  %v1035_v8 = vld [vmem:[%s11784_s26 + $0xa40] sm:$0xf]  ;;  %v1037_v9 = vld [vmem:[%s11784_s26 + $0xa44] sm:$0xf] }
  0xf7   : >> { %1034 = vst [vmem:[%s11780_s22 + $0xa38] sm:$0xf] %v1033_v7  ;;  %1036 = vst [vmem:[%s11780_s22 + $0xa40] sm:$0xf] %v1035_v8  ;;  %v1039_v10 = vld [vmem:[%s11784_s26 + $0xa48] sm:$0xf] }
  0xf8   : >> { %1038 = vst [vmem:[%s11780_s22 + $0xa48] sm:$0xf] %v1037_v9  ;;  %v1041_v11 = vld [vmem:[%s11784_s26 + $0xa4c] sm:$0xf]  ;;  %v1043_v12 = vld [vmem:[%s11784_s26 + $0xa60] sm:$0xf] }
  0xf9   : >> { %1040 = vst [vmem:[%s11780_s22 + $0xa50] sm:$0xf] %v1039_v10  ;;  %1042 = vst [vmem:[%s11780_s22 + $0xa58] sm:$0xf] %v1041_v11  ;;  %v1045_v13 = vld [vmem:[%s11784_s26 + $0xa64] sm:$0xf] }
  0xfa   : >> { %1044 = vst [vmem:[%s11780_s22 + $0xa60] sm:$0xf] %v1043_v12  ;;  %v1047_v14 = vld [vmem:[%s11784_s26 + $0xa68] sm:$0xf]  ;;  %v1049_v15 = vld [vmem:[%s11784_s26 + $0xa6c] sm:$0xf] }
  0xfb   : >> { %1046 = vst [vmem:[%s11780_s22 + $0xa68] sm:$0xf] %v1045_v13  ;;  %1048 = vst [vmem:[%s11780_s22 + $0xa70] sm:$0xf] %v1047_v14  ;;  %v1051_v16 = vld [vmem:[%s11784_s26 + $0xa80] sm:$0xf] }
  0xfc   : >> { %1050 = vst [vmem:[%s11780_s22 + $0xa78] sm:$0xf] %v1049_v15  ;;  %v1053_v17 = vld [vmem:[%s11784_s26 + $0xa84] sm:$0xf]  ;;  %v1055_v18 = vld [vmem:[%s11784_s26 + $0xa88] sm:$0xf] }
  0xfd   : >> { %1052 = vst [vmem:[%s11780_s22 + $0xa80] sm:$0xf] %v1051_v16  ;;  %1054 = vst [vmem:[%s11780_s22 + $0xa88] sm:$0xf] %v1053_v17  ;;  %v1057_v19 = vld [vmem:[%s11784_s26 + $0xa8c] sm:$0xf] }
  0xfe   : >> { %1056 = vst [vmem:[%s11780_s22 + $0xa90] sm:$0xf] %v1055_v18  ;;  %v1059_v20 = vld [vmem:[%s11784_s26 + $0xaa0] sm:$0xf]  ;;  %v1061_v21 = vld [vmem:[%s11784_s26 + $0xaa4] sm:$0xf] }
  0xff   : >> { %1058 = vst [vmem:[%s11780_s22 + $0xa98] sm:$0xf] %v1057_v19  ;;  %1060 = vst [vmem:[%s11780_s22 + $0xaa0] sm:$0xf] %v1059_v20  ;;  %v1063_v22 = vld [vmem:[%s11784_s26 + $0xaa8] sm:$0xf] }
 0x100   : >> { %1062 = vst [vmem:[%s11780_s22 + $0xaa8] sm:$0xf] %v1061_v21  ;;  %v1065_v23 = vld [vmem:[%s11784_s26 + $0xaac] sm:$0xf]  ;;  %v1067_v24 = vld [vmem:[%s11784_s26 + $0xac0] sm:$0xf] }
 0x101   : >> { %1064 = vst [vmem:[%s11780_s22 + $0xab0] sm:$0xf] %v1063_v22  ;;  %1066 = vst [vmem:[%s11780_s22 + $0xab8] sm:$0xf] %v1065_v23  ;;  %v1069_v25 = vld [vmem:[%s11784_s26 + $0xac4] sm:$0xf] }
 0x102   : >> { %1068 = vst [vmem:[%s11780_s22 + $0xac0] sm:$0xf] %v1067_v24  ;;  %v1071_v26 = vld [vmem:[%s11784_s26 + $0xac8] sm:$0xf]  ;;  %v1073_v27 = vld [vmem:[%s11784_s26 + $0xacc] sm:$0xf] }
 0x103   : >> { %1070 = vst [vmem:[%s11780_s22 + $0xac8] sm:$0xf] %v1069_v25  ;;  %1072 = vst [vmem:[%s11780_s22 + $0xad0] sm:$0xf] %v1071_v26  ;;  %v1075_v28 = vld [vmem:[%s11784_s26 + $0xae0] sm:$0xf] }
 0x104   : >> { %1074 = vst [vmem:[%s11780_s22 + $0xad8] sm:$0xf] %v1073_v27  ;;  %v1077_v29 = vld [vmem:[%s11784_s26 + $0xae4] sm:$0xf]  ;;  %v1079_v30 = vld [vmem:[%s11784_s26 + $0xae8] sm:$0xf] }
 0x105   : >> { %1076 = vst [vmem:[%s11780_s22 + $0xae0] sm:$0xf] %v1075_v28  ;;  %1078 = vst [vmem:[%s11780_s22 + $0xae8] sm:$0xf] %v1077_v29  ;;  %v1081_v31 = vld [vmem:[%s11784_s26 + $0xaec] sm:$0xf] }
 0x106   : >> { %1080 = vst [vmem:[%s11780_s22 + $0xaf0] sm:$0xf] %v1079_v30  ;;  %v1083_v32 = vld [vmem:[%s11784_s26 + $0xb00] sm:$0xf]  ;;  %v1085_v33 = vld [vmem:[%s11784_s26 + $0xb04] sm:$0xf] }
 0x107   : >> { %1082 = vst [vmem:[%s11780_s22 + $0xaf8] sm:$0xf] %v1081_v31  ;;  %1084 = vst [vmem:[%s11780_s22 + $0xb00] sm:$0xf] %v1083_v32  ;;  %v1087_v34 = vld [vmem:[%s11784_s26 + $0xb08] sm:$0xf] }
 0x108   : >> { %1086 = vst [vmem:[%s11780_s22 + $0xb08] sm:$0xf] %v1085_v33  ;;  %v1089_v35 = vld [vmem:[%s11784_s26 + $0xb0c] sm:$0xf]  ;;  %v1091_v36 = vld [vmem:[%s11784_s26 + $0xb20] sm:$0xf] }
 0x109   : >> { %1088 = vst [vmem:[%s11780_s22 + $0xb10] sm:$0xf] %v1087_v34  ;;  %1090 = vst [vmem:[%s11780_s22 + $0xb18] sm:$0xf] %v1089_v35  ;;  %v1093_v37 = vld [vmem:[%s11784_s26 + $0xb24] sm:$0xf] }
 0x10a   : >> { %1092 = vst [vmem:[%s11780_s22 + $0xb20] sm:$0xf] %v1091_v36  ;;  %v1095_v38 = vld [vmem:[%s11784_s26 + $0xb28] sm:$0xf]  ;;  %v1097_v39 = vld [vmem:[%s11784_s26 + $0xb2c] sm:$0xf] }
 0x10b   : >> { %1094 = vst [vmem:[%s11780_s22 + $0xb28] sm:$0xf] %v1093_v37  ;;  %1096 = vst [vmem:[%s11780_s22 + $0xb30] sm:$0xf] %v1095_v38  ;;  %v1099_v40 = vld [vmem:[%s11784_s26 + $0xb40] sm:$0xf] }
 0x10c   : >> { %1098 = vst [vmem:[%s11780_s22 + $0xb38] sm:$0xf] %v1097_v39  ;;  %v1101_v41 = vld [vmem:[%s11784_s26 + $0xb44] sm:$0xf]  ;;  %v1103_v42 = vld [vmem:[%s11784_s26 + $0xb48] sm:$0xf] }
 0x10d   : >> { %1100 = vst [vmem:[%s11780_s22 + $0xb40] sm:$0xf] %v1099_v40  ;;  %1102 = vst [vmem:[%s11780_s22 + $0xb48] sm:$0xf] %v1101_v41  ;;  %v1105_v43 = vld [vmem:[%s11784_s26 + $0xb4c] sm:$0xf] }
 0x10e   : >> { %1104 = vst [vmem:[%s11780_s22 + $0xb50] sm:$0xf] %v1103_v42  ;;  %v1107_v44 = vld [vmem:[%s11784_s26 + $0xb60] sm:$0xf]  ;;  %v1109_v45 = vld [vmem:[%s11784_s26 + $0xb64] sm:$0xf] }
 0x10f   : >> { %1106 = vst [vmem:[%s11780_s22 + $0xb58] sm:$0xf] %v1105_v43  ;;  %1108 = vst [vmem:[%s11780_s22 + $0xb60] sm:$0xf] %v1107_v44  ;;  %v1111_v46 = vld [vmem:[%s11784_s26 + $0xb68] sm:$0xf] }
 0x110   : >> { %1110 = vst [vmem:[%s11780_s22 + $0xb68] sm:$0xf] %v1109_v45  ;;  %v1113_v47 = vld [vmem:[%s11784_s26 + $0xb6c] sm:$0xf]  ;;  %v1115_v48 = vld [vmem:[%s11784_s26 + $0xb80] sm:$0xf] }
 0x111   : >> { %1112 = vst [vmem:[%s11780_s22 + $0xb70] sm:$0xf] %v1111_v46  ;;  %1114 = vst [vmem:[%s11780_s22 + $0xb78] sm:$0xf] %v1113_v47  ;;  %v1117_v49 = vld [vmem:[%s11784_s26 + $0xb84] sm:$0xf] }
 0x112   : >> { %1116 = vst [vmem:[%s11780_s22 + $0xb80] sm:$0xf] %v1115_v48  ;;  %v1119_v50 = vld [vmem:[%s11784_s26 + $0xb88] sm:$0xf]  ;;  %v1121_v51 = vld [vmem:[%s11784_s26 + $0xb8c] sm:$0xf] }
 0x113   : >> { %1118 = vst [vmem:[%s11780_s22 + $0xb88] sm:$0xf] %v1117_v49  ;;  %1120 = vst [vmem:[%s11780_s22 + $0xb90] sm:$0xf] %v1119_v50  ;;  %v1123_v52 = vld [vmem:[%s11784_s26 + $0xba0] sm:$0xf] }
 0x114   : >> { %1122 = vst [vmem:[%s11780_s22 + $0xb98] sm:$0xf] %v1121_v51  ;;  %v1125_v53 = vld [vmem:[%s11784_s26 + $0xba4] sm:$0xf]  ;;  %v1127_v54 = vld [vmem:[%s11784_s26 + $0xba8] sm:$0xf] }
 0x115   : >> { %1124 = vst [vmem:[%s11780_s22 + $0xba0] sm:$0xf] %v1123_v52  ;;  %1126 = vst [vmem:[%s11780_s22 + $0xba8] sm:$0xf] %v1125_v53  ;;  %v1129_v55 = vld [vmem:[%s11784_s26 + $0xbac] sm:$0xf] }
 0x116   : >> { %1128 = vst [vmem:[%s11780_s22 + $0xbb0] sm:$0xf] %v1127_v54  ;;  %v1131_v56 = vld [vmem:[%s11784_s26 + $0xbc0] sm:$0xf]  ;;  %v1133_v57 = vld [vmem:[%s11784_s26 + $0xbc4] sm:$0xf] }
 0x117   : >> { %1130 = vst [vmem:[%s11780_s22 + $0xbb8] sm:$0xf] %v1129_v55  ;;  %1132 = vst [vmem:[%s11780_s22 + $0xbc0] sm:$0xf] %v1131_v56  ;;  %v1135_v58 = vld [vmem:[%s11784_s26 + $0xbc8] sm:$0xf] }
 0x118   : >> { %1134 = vst [vmem:[%s11780_s22 + $0xbc8] sm:$0xf] %v1133_v57  ;;  %v1137_v59 = vld [vmem:[%s11784_s26 + $0xbcc] sm:$0xf]  ;;  %v1139_v60 = vld [vmem:[%s11784_s26 + $0xbe0] sm:$0xf] }
 0x119   : >> { %1136 = vst [vmem:[%s11780_s22 + $0xbd0] sm:$0xf] %v1135_v58  ;;  %1138 = vst [vmem:[%s11780_s22 + $0xbd8] sm:$0xf] %v1137_v59  ;;  %v1141_v61 = vld [vmem:[%s11784_s26 + $0xbe4] sm:$0xf] }
 0x11a   : >> { %1140 = vst [vmem:[%s11780_s22 + $0xbe0] sm:$0xf] %v1139_v60  ;;  %v1143_v62 = vld [vmem:[%s11784_s26 + $0xbe8] sm:$0xf]  ;;  %v1145_v63 = vld [vmem:[%s11784_s26 + $0xbec] sm:$0xf] }
 0x11b   : >> { %1142 = vst [vmem:[%s11780_s22 + $0xbe8] sm:$0xf] %v1141_v61  ;;  %1144 = vst [vmem:[%s11780_s22 + $0xbf0] sm:$0xf] %v1143_v62  ;;  %v1147_v0 = vld [vmem:[%s11784_s26 + $0xc00] sm:$0xf] }
 0x11c   : >> { %1146 = vst [vmem:[%s11780_s22 + $0xbf8] sm:$0xf] %v1145_v63  ;;  %v1149_v1 = vld [vmem:[%s11784_s26 + $0xc04] sm:$0xf]  ;;  %v1151_v2 = vld [vmem:[%s11784_s26 + $0xc08] sm:$0xf] }
 0x11d   : >> { %1148 = vst [vmem:[%s11780_s22 + $0xc00] sm:$0xf] %v1147_v0  ;;  %1150 = vst [vmem:[%s11780_s22 + $0xc08] sm:$0xf] %v1149_v1  ;;  %v1153_v3 = vld [vmem:[%s11784_s26 + $0xc0c] sm:$0xf] }
 0x11e   : >> { %1152 = vst [vmem:[%s11780_s22 + $0xc10] sm:$0xf] %v1151_v2  ;;  %v1155_v4 = vld [vmem:[%s11784_s26 + $0xc20] sm:$0xf]  ;;  %v1157_v5 = vld [vmem:[%s11784_s26 + $0xc24] sm:$0xf] }
 0x11f   : >> { %1154 = vst [vmem:[%s11780_s22 + $0xc18] sm:$0xf] %v1153_v3  ;;  %1156 = vst [vmem:[%s11780_s22 + $0xc20] sm:$0xf] %v1155_v4  ;;  %v1159_v6 = vld [vmem:[%s11784_s26 + $0xc28] sm:$0xf] }
 0x120   : >> { %1158 = vst [vmem:[%s11780_s22 + $0xc28] sm:$0xf] %v1157_v5  ;;  %v1161_v7 = vld [vmem:[%s11784_s26 + $0xc2c] sm:$0xf]  ;;  %v1163_v8 = vld [vmem:[%s11784_s26 + $0xc40] sm:$0xf] }
 0x121   : >> { %1160 = vst [vmem:[%s11780_s22 + $0xc30] sm:$0xf] %v1159_v6  ;;  %1162 = vst [vmem:[%s11780_s22 + $0xc38] sm:$0xf] %v1161_v7  ;;  %v1165_v9 = vld [vmem:[%s11784_s26 + $0xc44] sm:$0xf] }
 0x122   : >> { %1164 = vst [vmem:[%s11780_s22 + $0xc40] sm:$0xf] %v1163_v8  ;;  %v1167_v10 = vld [vmem:[%s11784_s26 + $0xc48] sm:$0xf]  ;;  %v1169_v11 = vld [vmem:[%s11784_s26 + $0xc4c] sm:$0xf] }
 0x123   : >> { %1166 = vst [vmem:[%s11780_s22 + $0xc48] sm:$0xf] %v1165_v9  ;;  %1168 = vst [vmem:[%s11780_s22 + $0xc50] sm:$0xf] %v1167_v10  ;;  %v1171_v12 = vld [vmem:[%s11784_s26 + $0xc60] sm:$0xf] }
 0x124   : >> { %1170 = vst [vmem:[%s11780_s22 + $0xc58] sm:$0xf] %v1169_v11  ;;  %v1173_v13 = vld [vmem:[%s11784_s26 + $0xc64] sm:$0xf]  ;;  %v1175_v14 = vld [vmem:[%s11784_s26 + $0xc68] sm:$0xf] }
 0x125   : >> { %1172 = vst [vmem:[%s11780_s22 + $0xc60] sm:$0xf] %v1171_v12  ;;  %1174 = vst [vmem:[%s11780_s22 + $0xc68] sm:$0xf] %v1173_v13  ;;  %v1177_v15 = vld [vmem:[%s11784_s26 + $0xc6c] sm:$0xf] }
 0x126   : >> { %1176 = vst [vmem:[%s11780_s22 + $0xc70] sm:$0xf] %v1175_v14  ;;  %v1179_v16 = vld [vmem:[%s11784_s26 + $0xc80] sm:$0xf]  ;;  %v1181_v17 = vld [vmem:[%s11784_s26 + $0xc84] sm:$0xf] }
 0x127   : >> { %1178 = vst [vmem:[%s11780_s22 + $0xc78] sm:$0xf] %v1177_v15  ;;  %1180 = vst [vmem:[%s11780_s22 + $0xc80] sm:$0xf] %v1179_v16  ;;  %v1183_v18 = vld [vmem:[%s11784_s26 + $0xc88] sm:$0xf] }
 0x128   : >> { %1182 = vst [vmem:[%s11780_s22 + $0xc88] sm:$0xf] %v1181_v17  ;;  %v1185_v19 = vld [vmem:[%s11784_s26 + $0xc8c] sm:$0xf]  ;;  %v1187_v20 = vld [vmem:[%s11784_s26 + $0xca0] sm:$0xf] }
 0x129   : >> { %1184 = vst [vmem:[%s11780_s22 + $0xc90] sm:$0xf] %v1183_v18  ;;  %1186 = vst [vmem:[%s11780_s22 + $0xc98] sm:$0xf] %v1185_v19  ;;  %v1189_v21 = vld [vmem:[%s11784_s26 + $0xca4] sm:$0xf] }
 0x12a   : >> { %1188 = vst [vmem:[%s11780_s22 + $0xca0] sm:$0xf] %v1187_v20  ;;  %v1191_v22 = vld [vmem:[%s11784_s26 + $0xca8] sm:$0xf]  ;;  %v1193_v23 = vld [vmem:[%s11784_s26 + $0xcac] sm:$0xf] }
 0x12b   : >> { %1190 = vst [vmem:[%s11780_s22 + $0xca8] sm:$0xf] %v1189_v21  ;;  %1192 = vst [vmem:[%s11780_s22 + $0xcb0] sm:$0xf] %v1191_v22  ;;  %v1195_v24 = vld [vmem:[%s11784_s26 + $0xcc0] sm:$0xf] }
 0x12c   : >> { %1194 = vst [vmem:[%s11780_s22 + $0xcb8] sm:$0xf] %v1193_v23  ;;  %v1197_v25 = vld [vmem:[%s11784_s26 + $0xcc4] sm:$0xf]  ;;  %v1199_v26 = vld [vmem:[%s11784_s26 + $0xcc8] sm:$0xf] }
 0x12d   : >> { %1196 = vst [vmem:[%s11780_s22 + $0xcc0] sm:$0xf] %v1195_v24  ;;  %1198 = vst [vmem:[%s11780_s22 + $0xcc8] sm:$0xf] %v1197_v25  ;;  %v1201_v27 = vld [vmem:[%s11784_s26 + $0xccc] sm:$0xf] }
 0x12e   : >> { %1200 = vst [vmem:[%s11780_s22 + $0xcd0] sm:$0xf] %v1199_v26  ;;  %v1203_v28 = vld [vmem:[%s11784_s26 + $0xce0] sm:$0xf]  ;;  %v1205_v29 = vld [vmem:[%s11784_s26 + $0xce4] sm:$0xf] }
 0x12f   : >> { %1202 = vst [vmem:[%s11780_s22 + $0xcd8] sm:$0xf] %v1201_v27  ;;  %1204 = vst [vmem:[%s11780_s22 + $0xce0] sm:$0xf] %v1203_v28  ;;  %v1207_v30 = vld [vmem:[%s11784_s26 + $0xce8] sm:$0xf] }
 0x130   : >> { %1206 = vst [vmem:[%s11780_s22 + $0xce8] sm:$0xf] %v1205_v29  ;;  %v1209_v31 = vld [vmem:[%s11784_s26 + $0xcec] sm:$0xf]  ;;  %v1211_v32 = vld [vmem:[%s11784_s26 + $0xd00] sm:$0xf] }
 0x131   : >> { %1208 = vst [vmem:[%s11780_s22 + $0xcf0] sm:$0xf] %v1207_v30  ;;  %1210 = vst [vmem:[%s11780_s22 + $0xcf8] sm:$0xf] %v1209_v31  ;;  %v1213_v33 = vld [vmem:[%s11784_s26 + $0xd04] sm:$0xf] }
 0x132   : >> { %1212 = vst [vmem:[%s11780_s22 + $0xd00] sm:$0xf] %v1211_v32  ;;  %v1215_v34 = vld [vmem:[%s11784_s26 + $0xd08] sm:$0xf]  ;;  %v1217_v35 = vld [vmem:[%s11784_s26 + $0xd0c] sm:$0xf] }
 0x133   : >> { %1214 = vst [vmem:[%s11780_s22 + $0xd08] sm:$0xf] %v1213_v33  ;;  %1216 = vst [vmem:[%s11780_s22 + $0xd10] sm:$0xf] %v1215_v34  ;;  %v1219_v36 = vld [vmem:[%s11784_s26 + $0xd20] sm:$0xf] }
 0x134   : >> { %1218 = vst [vmem:[%s11780_s22 + $0xd18] sm:$0xf] %v1217_v35  ;;  %v1221_v37 = vld [vmem:[%s11784_s26 + $0xd24] sm:$0xf]  ;;  %v1223_v38 = vld [vmem:[%s11784_s26 + $0xd28] sm:$0xf] }
 0x135   : >> { %1220 = vst [vmem:[%s11780_s22 + $0xd20] sm:$0xf] %v1219_v36  ;;  %1222 = vst [vmem:[%s11780_s22 + $0xd28] sm:$0xf] %v1221_v37  ;;  %v1225_v39 = vld [vmem:[%s11784_s26 + $0xd2c] sm:$0xf] }
 0x136   : >> { %1224 = vst [vmem:[%s11780_s22 + $0xd30] sm:$0xf] %v1223_v38  ;;  %v1227_v40 = vld [vmem:[%s11784_s26 + $0xd40] sm:$0xf]  ;;  %v1229_v41 = vld [vmem:[%s11784_s26 + $0xd44] sm:$0xf] }
 0x137   : >> { %1226 = vst [vmem:[%s11780_s22 + $0xd38] sm:$0xf] %v1225_v39  ;;  %1228 = vst [vmem:[%s11780_s22 + $0xd40] sm:$0xf] %v1227_v40  ;;  %v1231_v42 = vld [vmem:[%s11784_s26 + $0xd48] sm:$0xf] }
 0x138   : >> { %1230 = vst [vmem:[%s11780_s22 + $0xd48] sm:$0xf] %v1229_v41  ;;  %v1233_v43 = vld [vmem:[%s11784_s26 + $0xd4c] sm:$0xf]  ;;  %v1235_v44 = vld [vmem:[%s11784_s26 + $0xd60] sm:$0xf] }
 0x139   : >> { %1232 = vst [vmem:[%s11780_s22 + $0xd50] sm:$0xf] %v1231_v42  ;;  %1234 = vst [vmem:[%s11780_s22 + $0xd58] sm:$0xf] %v1233_v43  ;;  %v1237_v45 = vld [vmem:[%s11784_s26 + $0xd64] sm:$0xf] }
 0x13a   : >> { %1236 = vst [vmem:[%s11780_s22 + $0xd60] sm:$0xf] %v1235_v44  ;;  %v1239_v46 = vld [vmem:[%s11784_s26 + $0xd68] sm:$0xf]  ;;  %v1241_v47 = vld [vmem:[%s11784_s26 + $0xd6c] sm:$0xf] }
 0x13b   : >> { %1238 = vst [vmem:[%s11780_s22 + $0xd68] sm:$0xf] %v1237_v45  ;;  %1240 = vst [vmem:[%s11780_s22 + $0xd70] sm:$0xf] %v1239_v46  ;;  %v1243_v48 = vld [vmem:[%s11784_s26 + $0xd80] sm:$0xf] }
 0x13c   : >> { %1242 = vst [vmem:[%s11780_s22 + $0xd78] sm:$0xf] %v1241_v47  ;;  %v1245_v49 = vld [vmem:[%s11784_s26 + $0xd84] sm:$0xf]  ;;  %v1247_v50 = vld [vmem:[%s11784_s26 + $0xd88] sm:$0xf] }
 0x13d   : >> { %1244 = vst [vmem:[%s11780_s22 + $0xd80] sm:$0xf] %v1243_v48  ;;  %1246 = vst [vmem:[%s11780_s22 + $0xd88] sm:$0xf] %v1245_v49  ;;  %v1249_v51 = vld [vmem:[%s11784_s26 + $0xd8c] sm:$0xf] }
 0x13e   : >> { %1248 = vst [vmem:[%s11780_s22 + $0xd90] sm:$0xf] %v1247_v50  ;;  %v1251_v52 = vld [vmem:[%s11784_s26 + $0xda0] sm:$0xf]  ;;  %v1253_v53 = vld [vmem:[%s11784_s26 + $0xda4] sm:$0xf] }
 0x13f   : >> { %1250 = vst [vmem:[%s11780_s22 + $0xd98] sm:$0xf] %v1249_v51  ;;  %1252 = vst [vmem:[%s11780_s22 + $0xda0] sm:$0xf] %v1251_v52  ;;  %v1255_v54 = vld [vmem:[%s11784_s26 + $0xda8] sm:$0xf] }
 0x140   : >> { %1254 = vst [vmem:[%s11780_s22 + $0xda8] sm:$0xf] %v1253_v53  ;;  %v1257_v55 = vld [vmem:[%s11784_s26 + $0xdac] sm:$0xf]  ;;  %v1259_v56 = vld [vmem:[%s11784_s26 + $0xdc0] sm:$0xf] }
 0x141   : >> { %1256 = vst [vmem:[%s11780_s22 + $0xdb0] sm:$0xf] %v1255_v54  ;;  %1258 = vst [vmem:[%s11780_s22 + $0xdb8] sm:$0xf] %v1257_v55  ;;  %v1261_v57 = vld [vmem:[%s11784_s26 + $0xdc4] sm:$0xf] }
 0x142   : >> { %1260 = vst [vmem:[%s11780_s22 + $0xdc0] sm:$0xf] %v1259_v56  ;;  %v1263_v58 = vld [vmem:[%s11784_s26 + $0xdc8] sm:$0xf]  ;;  %v1265_v59 = vld [vmem:[%s11784_s26 + $0xdcc] sm:$0xf] }
 0x143   : >> { %1262 = vst [vmem:[%s11780_s22 + $0xdc8] sm:$0xf] %v1261_v57  ;;  %1264 = vst [vmem:[%s11780_s22 + $0xdd0] sm:$0xf] %v1263_v58  ;;  %v1267_v60 = vld [vmem:[%s11784_s26 + $0xde0] sm:$0xf] }
 0x144   : >> { %1266 = vst [vmem:[%s11780_s22 + $0xdd8] sm:$0xf] %v1265_v59  ;;  %v1269_v61 = vld [vmem:[%s11784_s26 + $0xde4] sm:$0xf]  ;;  %v1271_v62 = vld [vmem:[%s11784_s26 + $0xde8] sm:$0xf] }
 0x145   : >> { %1268 = vst [vmem:[%s11780_s22 + $0xde0] sm:$0xf] %v1267_v60  ;;  %1270 = vst [vmem:[%s11780_s22 + $0xde8] sm:$0xf] %v1269_v61  ;;  %v1273_v63 = vld [vmem:[%s11784_s26 + $0xdec] sm:$0xf] }
 0x146   : >> { %1272 = vst [vmem:[%s11780_s22 + $0xdf0] sm:$0xf] %v1271_v62  ;;  %v1275_v0 = vld [vmem:[%s11784_s26 + $0xe00] sm:$0xf]  ;;  %v1277_v1 = vld [vmem:[%s11784_s26 + $0xe04] sm:$0xf] }
 0x147   : >> { %1274 = vst [vmem:[%s11780_s22 + $0xdf8] sm:$0xf] %v1273_v63  ;;  %1276 = vst [vmem:[%s11780_s22 + $0xe00] sm:$0xf] %v1275_v0  ;;  %v1279_v2 = vld [vmem:[%s11784_s26 + $0xe08] sm:$0xf] }
 0x148   : >> { %1278 = vst [vmem:[%s11780_s22 + $0xe08] sm:$0xf] %v1277_v1  ;;  %v1281_v3 = vld [vmem:[%s11784_s26 + $0xe0c] sm:$0xf]  ;;  %v1283_v4 = vld [vmem:[%s11784_s26 + $0xe20] sm:$0xf] }
 0x149   : >> { %1280 = vst [vmem:[%s11780_s22 + $0xe10] sm:$0xf] %v1279_v2  ;;  %1282 = vst [vmem:[%s11780_s22 + $0xe18] sm:$0xf] %v1281_v3  ;;  %v1285_v5 = vld [vmem:[%s11784_s26 + $0xe24] sm:$0xf] }
 0x14a   : >> { %1284 = vst [vmem:[%s11780_s22 + $0xe20] sm:$0xf] %v1283_v4  ;;  %v1287_v6 = vld [vmem:[%s11784_s26 + $0xe28] sm:$0xf]  ;;  %v1289_v7 = vld [vmem:[%s11784_s26 + $0xe2c] sm:$0xf] }
 0x14b   : >> { %1286 = vst [vmem:[%s11780_s22 + $0xe28] sm:$0xf] %v1285_v5  ;;  %1288 = vst [vmem:[%s11780_s22 + $0xe30] sm:$0xf] %v1287_v6  ;;  %v1291_v8 = vld [vmem:[%s11784_s26 + $0xe40] sm:$0xf] }
 0x14c   : >> { %1290 = vst [vmem:[%s11780_s22 + $0xe38] sm:$0xf] %v1289_v7  ;;  %v1293_v9 = vld [vmem:[%s11784_s26 + $0xe44] sm:$0xf]  ;;  %v1295_v10 = vld [vmem:[%s11784_s26 + $0xe48] sm:$0xf] }
 0x14d   : >> { %1292 = vst [vmem:[%s11780_s22 + $0xe40] sm:$0xf] %v1291_v8  ;;  %1294 = vst [vmem:[%s11780_s22 + $0xe48] sm:$0xf] %v1293_v9  ;;  %v1297_v11 = vld [vmem:[%s11784_s26 + $0xe4c] sm:$0xf] }
 0x14e   : >> { %1296 = vst [vmem:[%s11780_s22 + $0xe50] sm:$0xf] %v1295_v10  ;;  %v1299_v12 = vld [vmem:[%s11784_s26 + $0xe60] sm:$0xf]  ;;  %v1301_v13 = vld [vmem:[%s11784_s26 + $0xe64] sm:$0xf] }
 0x14f   : >> { %1298 = vst [vmem:[%s11780_s22 + $0xe58] sm:$0xf] %v1297_v11  ;;  %1300 = vst [vmem:[%s11780_s22 + $0xe60] sm:$0xf] %v1299_v12  ;;  %v1303_v14 = vld [vmem:[%s11784_s26 + $0xe68] sm:$0xf] }
 0x150   : >> { %1302 = vst [vmem:[%s11780_s22 + $0xe68] sm:$0xf] %v1301_v13  ;;  %v1305_v15 = vld [vmem:[%s11784_s26 + $0xe6c] sm:$0xf]  ;;  %v1307_v16 = vld [vmem:[%s11784_s26 + $0xe80] sm:$0xf] }
 0x151   : >> { %1304 = vst [vmem:[%s11780_s22 + $0xe70] sm:$0xf] %v1303_v14  ;;  %1306 = vst [vmem:[%s11780_s22 + $0xe78] sm:$0xf] %v1305_v15  ;;  %v1309_v17 = vld [vmem:[%s11784_s26 + $0xe84] sm:$0xf] }
 0x152   : >> { %1308 = vst [vmem:[%s11780_s22 + $0xe80] sm:$0xf] %v1307_v16  ;;  %v1311_v18 = vld [vmem:[%s11784_s26 + $0xe88] sm:$0xf]  ;;  %v1313_v19 = vld [vmem:[%s11784_s26 + $0xe8c] sm:$0xf] }
 0x153   : >> { %1310 = vst [vmem:[%s11780_s22 + $0xe88] sm:$0xf] %v1309_v17  ;;  %1312 = vst [vmem:[%s11780_s22 + $0xe90] sm:$0xf] %v1311_v18  ;;  %v1315_v20 = vld [vmem:[%s11784_s26 + $0xea0] sm:$0xf] }
 0x154   : >> { %1314 = vst [vmem:[%s11780_s22 + $0xe98] sm:$0xf] %v1313_v19  ;;  %v1317_v21 = vld [vmem:[%s11784_s26 + $0xea4] sm:$0xf]  ;;  %v1319_v22 = vld [vmem:[%s11784_s26 + $0xea8] sm:$0xf] }
 0x155   : >> { %1316 = vst [vmem:[%s11780_s22 + $0xea0] sm:$0xf] %v1315_v20  ;;  %1318 = vst [vmem:[%s11780_s22 + $0xea8] sm:$0xf] %v1317_v21  ;;  %v1321_v23 = vld [vmem:[%s11784_s26 + $0xeac] sm:$0xf] }
 0x156   : >> { %1320 = vst [vmem:[%s11780_s22 + $0xeb0] sm:$0xf] %v1319_v22  ;;  %v1323_v24 = vld [vmem:[%s11784_s26 + $0xec0] sm:$0xf]  ;;  %v1325_v25 = vld [vmem:[%s11784_s26 + $0xec4] sm:$0xf] }
 0x157   : >> { %1322 = vst [vmem:[%s11780_s22 + $0xeb8] sm:$0xf] %v1321_v23  ;;  %1324 = vst [vmem:[%s11780_s22 + $0xec0] sm:$0xf] %v1323_v24  ;;  %v1327_v26 = vld [vmem:[%s11784_s26 + $0xec8] sm:$0xf] }
 0x158   : >> { %1326 = vst [vmem:[%s11780_s22 + $0xec8] sm:$0xf] %v1325_v25  ;;  %v1329_v27 = vld [vmem:[%s11784_s26 + $0xecc] sm:$0xf]  ;;  %v1331_v28 = vld [vmem:[%s11784_s26 + $0xee0] sm:$0xf] }
 0x159   : >> { %1328 = vst [vmem:[%s11780_s22 + $0xed0] sm:$0xf] %v1327_v26  ;;  %1330 = vst [vmem:[%s11780_s22 + $0xed8] sm:$0xf] %v1329_v27  ;;  %v1333_v29 = vld [vmem:[%s11784_s26 + $0xee4] sm:$0xf] }
 0x15a   : >> { %1332 = vst [vmem:[%s11780_s22 + $0xee0] sm:$0xf] %v1331_v28  ;;  %v1335_v30 = vld [vmem:[%s11784_s26 + $0xee8] sm:$0xf]  ;;  %v1337_v31 = vld [vmem:[%s11784_s26 + $0xeec] sm:$0xf] }
 0x15b   : >> { %1334 = vst [vmem:[%s11780_s22 + $0xee8] sm:$0xf] %v1333_v29  ;;  %1336 = vst [vmem:[%s11780_s22 + $0xef0] sm:$0xf] %v1335_v30  ;;  %v1339_v32 = vld [vmem:[%s11784_s26 + $0xf00] sm:$0xf] }
 0x15c   : >> { %1338 = vst [vmem:[%s11780_s22 + $0xef8] sm:$0xf] %v1337_v31  ;;  %v1341_v33 = vld [vmem:[%s11784_s26 + $0xf04] sm:$0xf]  ;;  %v1343_v34 = vld [vmem:[%s11784_s26 + $0xf08] sm:$0xf] }
 0x15d   : >> { %1340 = vst [vmem:[%s11780_s22 + $0xf00] sm:$0xf] %v1339_v32  ;;  %1342 = vst [vmem:[%s11780_s22 + $0xf08] sm:$0xf] %v1341_v33  ;;  %v1345_v35 = vld [vmem:[%s11784_s26 + $0xf0c] sm:$0xf] }
 0x15e   : >> { %1344 = vst [vmem:[%s11780_s22 + $0xf10] sm:$0xf] %v1343_v34  ;;  %v1347_v36 = vld [vmem:[%s11784_s26 + $0xf20] sm:$0xf]  ;;  %v1349_v37 = vld [vmem:[%s11784_s26 + $0xf24] sm:$0xf] }
 0x15f   : >> { %1346 = vst [vmem:[%s11780_s22 + $0xf18] sm:$0xf] %v1345_v35  ;;  %1348 = vst [vmem:[%s11780_s22 + $0xf20] sm:$0xf] %v1347_v36  ;;  %v1351_v38 = vld [vmem:[%s11784_s26 + $0xf28] sm:$0xf] }
 0x160   : >> { %1350 = vst [vmem:[%s11780_s22 + $0xf28] sm:$0xf] %v1349_v37  ;;  %v1353_v39 = vld [vmem:[%s11784_s26 + $0xf2c] sm:$0xf]  ;;  %v1355_v40 = vld [vmem:[%s11784_s26 + $0xf40] sm:$0xf] }
 0x161   : >> { %1352 = vst [vmem:[%s11780_s22 + $0xf30] sm:$0xf] %v1351_v38  ;;  %1354 = vst [vmem:[%s11780_s22 + $0xf38] sm:$0xf] %v1353_v39  ;;  %v1357_v41 = vld [vmem:[%s11784_s26 + $0xf44] sm:$0xf] }
 0x162   : >> { %1356 = vst [vmem:[%s11780_s22 + $0xf40] sm:$0xf] %v1355_v40  ;;  %v1359_v42 = vld [vmem:[%s11784_s26 + $0xf48] sm:$0xf]  ;;  %v1361_v43 = vld [vmem:[%s11784_s26 + $0xf4c] sm:$0xf] }
 0x163   : >> { %1358 = vst [vmem:[%s11780_s22 + $0xf48] sm:$0xf] %v1357_v41  ;;  %1360 = vst [vmem:[%s11780_s22 + $0xf50] sm:$0xf] %v1359_v42  ;;  %v1363_v44 = vld [vmem:[%s11784_s26 + $0xf60] sm:$0xf] }
 0x164   : >> { %1362 = vst [vmem:[%s11780_s22 + $0xf58] sm:$0xf] %v1361_v43  ;;  %v1365_v45 = vld [vmem:[%s11784_s26 + $0xf64] sm:$0xf]  ;;  %v1367_v46 = vld [vmem:[%s11784_s26 + $0xf68] sm:$0xf] }
 0x165   : >> { %1364 = vst [vmem:[%s11780_s22 + $0xf60] sm:$0xf] %v1363_v44  ;;  %1366 = vst [vmem:[%s11780_s22 + $0xf68] sm:$0xf] %v1365_v45  ;;  %v1369_v47 = vld [vmem:[%s11784_s26 + $0xf6c] sm:$0xf] }
 0x166   : >> { %1368 = vst [vmem:[%s11780_s22 + $0xf70] sm:$0xf] %v1367_v46  ;;  %v1371_v48 = vld [vmem:[%s11784_s26 + $0xf80] sm:$0xf]  ;;  %v1373_v49 = vld [vmem:[%s11784_s26 + $0xf84] sm:$0xf] }
 0x167   : >> { %1370 = vst [vmem:[%s11780_s22 + $0xf78] sm:$0xf] %v1369_v47  ;;  %1372 = vst [vmem:[%s11780_s22 + $0xf80] sm:$0xf] %v1371_v48  ;;  %v1375_v50 = vld [vmem:[%s11784_s26 + $0xf88] sm:$0xf] }
 0x168   : >> { %1374 = vst [vmem:[%s11780_s22 + $0xf88] sm:$0xf] %v1373_v49  ;;  %v1377_v51 = vld [vmem:[%s11784_s26 + $0xf8c] sm:$0xf]  ;;  %v1379_v52 = vld [vmem:[%s11784_s26 + $0xfa0] sm:$0xf] }
 0x169   : >> { %1376 = vst [vmem:[%s11780_s22 + $0xf90] sm:$0xf] %v1375_v50  ;;  %1378 = vst [vmem:[%s11780_s22 + $0xf98] sm:$0xf] %v1377_v51  ;;  %v1381_v53 = vld [vmem:[%s11784_s26 + $0xfa4] sm:$0xf] }
 0x16a   : >> { %1380 = vst [vmem:[%s11780_s22 + $0xfa0] sm:$0xf] %v1379_v52  ;;  %v1383_v54 = vld [vmem:[%s11784_s26 + $0xfa8] sm:$0xf]  ;;  %v1385_v55 = vld [vmem:[%s11784_s26 + $0xfac] sm:$0xf] }
 0x16b   : >> { %1382 = vst [vmem:[%s11780_s22 + $0xfa8] sm:$0xf] %v1381_v53  ;;  %1384 = vst [vmem:[%s11780_s22 + $0xfb0] sm:$0xf] %v1383_v54  ;;  %v1387_v56 = vld [vmem:[%s11784_s26 + $0xfc0] sm:$0xf] }
 0x16c   : >> { %1386 = vst [vmem:[%s11780_s22 + $0xfb8] sm:$0xf] %v1385_v55  ;;  %v1389_v57 = vld [vmem:[%s11784_s26 + $0xfc4] sm:$0xf]  ;;  %v1391_v58 = vld [vmem:[%s11784_s26 + $0xfc8] sm:$0xf] }
 0x16d   : >> { %1388 = vst [vmem:[%s11780_s22 + $0xfc0] sm:$0xf] %v1387_v56  ;;  %1390 = vst [vmem:[%s11780_s22 + $0xfc8] sm:$0xf] %v1389_v57  ;;  %v1393_v59 = vld [vmem:[%s11784_s26 + $0xfcc] sm:$0xf] }
 0x16e   : >> { %1392 = vst [vmem:[%s11780_s22 + $0xfd0] sm:$0xf] %v1391_v58  ;;  %v1395_v60 = vld [vmem:[%s11784_s26 + $0xfe0] sm:$0xf]  ;;  %v1397_v61 = vld [vmem:[%s11784_s26 + $0xfe4] sm:$0xf] }
 0x16f   : >> { %1394 = vst [vmem:[%s11780_s22 + $0xfd8] sm:$0xf] %v1393_v59  ;;  %1396 = vst [vmem:[%s11780_s22 + $0xfe0] sm:$0xf] %v1395_v60  ;;  %v1399_v62 = vld [vmem:[%s11784_s26 + $0xfe8] sm:$0xf] }
 0x170   : >> { %1398 = vst [vmem:[%s11780_s22 + $0xfe8] sm:$0xf] %v1397_v61  ;;  %v1401_v63 = vld [vmem:[%s11784_s26 + $0xfec] sm:$0xf]  ;;  %v1403_v0 = vld [vmem:[%s11784_s26 + $0x1000] sm:$0xf] }
 0x171   : >> { %1400 = vst [vmem:[%s11780_s22 + $0xff0] sm:$0xf] %v1399_v62  ;;  %1402 = vst [vmem:[%s11780_s22 + $0xff8] sm:$0xf] %v1401_v63  ;;  %v1405_v1 = vld [vmem:[%s11784_s26 + $0x1004] sm:$0xf] }
 0x172   : >> { %1404 = vst [vmem:[%s11780_s22 + $0x1000] sm:$0xf] %v1403_v0  ;;  %v1407_v2 = vld [vmem:[%s11784_s26 + $0x1008] sm:$0xf]  ;;  %v1409_v3 = vld [vmem:[%s11784_s26 + $0x100c] sm:$0xf] }
 0x173   : >> { %1406 = vst [vmem:[%s11780_s22 + $0x1008] sm:$0xf] %v1405_v1  ;;  %1408 = vst [vmem:[%s11780_s22 + $0x1010] sm:$0xf] %v1407_v2  ;;  %v1411_v4 = vld [vmem:[%s11784_s26 + $0x1020] sm:$0xf] }
 0x174   : >> { %1410 = vst [vmem:[%s11780_s22 + $0x1018] sm:$0xf] %v1409_v3  ;;  %v1413_v5 = vld [vmem:[%s11784_s26 + $0x1024] sm:$0xf]  ;;  %v1415_v6 = vld [vmem:[%s11784_s26 + $0x1028] sm:$0xf] }
 0x175   : >> { %1412 = vst [vmem:[%s11780_s22 + $0x1020] sm:$0xf] %v1411_v4  ;;  %1414 = vst [vmem:[%s11780_s22 + $0x1028] sm:$0xf] %v1413_v5  ;;  %v1417_v7 = vld [vmem:[%s11784_s26 + $0x102c] sm:$0xf] }
 0x176   : >> { %1416 = vst [vmem:[%s11780_s22 + $0x1030] sm:$0xf] %v1415_v6  ;;  %v1419_v8 = vld [vmem:[%s11784_s26 + $0x1040] sm:$0xf]  ;;  %v1421_v9 = vld [vmem:[%s11784_s26 + $0x1044] sm:$0xf] }
 0x177   : >> { %1418 = vst [vmem:[%s11780_s22 + $0x1038] sm:$0xf] %v1417_v7  ;;  %1420 = vst [vmem:[%s11780_s22 + $0x1040] sm:$0xf] %v1419_v8  ;;  %v1423_v10 = vld [vmem:[%s11784_s26 + $0x1048] sm:$0xf] }
 0x178   : >> { %1422 = vst [vmem:[%s11780_s22 + $0x1048] sm:$0xf] %v1421_v9  ;;  %v1425_v11 = vld [vmem:[%s11784_s26 + $0x104c] sm:$0xf]  ;;  %v1427_v12 = vld [vmem:[%s11784_s26 + $0x1060] sm:$0xf] }
 0x179   : >> { %1424 = vst [vmem:[%s11780_s22 + $0x1050] sm:$0xf] %v1423_v10  ;;  %1426 = vst [vmem:[%s11780_s22 + $0x1058] sm:$0xf] %v1425_v11  ;;  %v1429_v13 = vld [vmem:[%s11784_s26 + $0x1064] sm:$0xf] }
 0x17a   : >> { %1428 = vst [vmem:[%s11780_s22 + $0x1060] sm:$0xf] %v1427_v12  ;;  %v1431_v14 = vld [vmem:[%s11784_s26 + $0x1068] sm:$0xf]  ;;  %v1433_v15 = vld [vmem:[%s11784_s26 + $0x106c] sm:$0xf] }
 0x17b   : >> { %1430 = vst [vmem:[%s11780_s22 + $0x1068] sm:$0xf] %v1429_v13  ;;  %1432 = vst [vmem:[%s11780_s22 + $0x1070] sm:$0xf] %v1431_v14  ;;  %v1435_v16 = vld [vmem:[%s11784_s26 + $0x1080] sm:$0xf] }
 0x17c   : >> { %1434 = vst [vmem:[%s11780_s22 + $0x1078] sm:$0xf] %v1433_v15  ;;  %v1437_v17 = vld [vmem:[%s11784_s26 + $0x1084] sm:$0xf]  ;;  %v1439_v18 = vld [vmem:[%s11784_s26 + $0x1088] sm:$0xf] }
 0x17d   : >> { %1436 = vst [vmem:[%s11780_s22 + $0x1080] sm:$0xf] %v1435_v16  ;;  %1438 = vst [vmem:[%s11780_s22 + $0x1088] sm:$0xf] %v1437_v17  ;;  %v1441_v19 = vld [vmem:[%s11784_s26 + $0x108c] sm:$0xf] }
 0x17e   : >> { %1440 = vst [vmem:[%s11780_s22 + $0x1090] sm:$0xf] %v1439_v18  ;;  %v1443_v20 = vld [vmem:[%s11784_s26 + $0x10a0] sm:$0xf]  ;;  %v1445_v21 = vld [vmem:[%s11784_s26 + $0x10a4] sm:$0xf] }
 0x17f   : >> { %1442 = vst [vmem:[%s11780_s22 + $0x1098] sm:$0xf] %v1441_v19  ;;  %1444 = vst [vmem:[%s11780_s22 + $0x10a0] sm:$0xf] %v1443_v20  ;;  %v1447_v22 = vld [vmem:[%s11784_s26 + $0x10a8] sm:$0xf] }
 0x180   : >> { %1446 = vst [vmem:[%s11780_s22 + $0x10a8] sm:$0xf] %v1445_v21  ;;  %v1449_v23 = vld [vmem:[%s11784_s26 + $0x10ac] sm:$0xf]  ;;  %v1451_v24 = vld [vmem:[%s11784_s26 + $0x10c0] sm:$0xf] }
 0x181   : >> { %1448 = vst [vmem:[%s11780_s22 + $0x10b0] sm:$0xf] %v1447_v22  ;;  %1450 = vst [vmem:[%s11780_s22 + $0x10b8] sm:$0xf] %v1449_v23  ;;  %v1453_v25 = vld [vmem:[%s11784_s26 + $0x10c4] sm:$0xf] }
 0x182   : >> { %1452 = vst [vmem:[%s11780_s22 + $0x10c0] sm:$0xf] %v1451_v24  ;;  %v1455_v26 = vld [vmem:[%s11784_s26 + $0x10c8] sm:$0xf]  ;;  %v1457_v27 = vld [vmem:[%s11784_s26 + $0x10cc] sm:$0xf] }
 0x183   : >> { %1454 = vst [vmem:[%s11780_s22 + $0x10c8] sm:$0xf] %v1453_v25  ;;  %1456 = vst [vmem:[%s11780_s22 + $0x10d0] sm:$0xf] %v1455_v26  ;;  %v1459_v28 = vld [vmem:[%s11784_s26 + $0x10e0] sm:$0xf] }
 0x184   : >> { %1458 = vst [vmem:[%s11780_s22 + $0x10d8] sm:$0xf] %v1457_v27  ;;  %v1461_v29 = vld [vmem:[%s11784_s26 + $0x10e4] sm:$0xf]  ;;  %v1463_v30 = vld [vmem:[%s11784_s26 + $0x10e8] sm:$0xf] }
 0x185   : >> { %1460 = vst [vmem:[%s11780_s22 + $0x10e0] sm:$0xf] %v1459_v28  ;;  %1462 = vst [vmem:[%s11780_s22 + $0x10e8] sm:$0xf] %v1461_v29  ;;  %v1465_v31 = vld [vmem:[%s11784_s26 + $0x10ec] sm:$0xf] }
 0x186   : >> { %1464 = vst [vmem:[%s11780_s22 + $0x10f0] sm:$0xf] %v1463_v30  ;;  %v1467_v32 = vld [vmem:[%s11784_s26 + $0x1100] sm:$0xf]  ;;  %v1469_v33 = vld [vmem:[%s11784_s26 + $0x1104] sm:$0xf] }
 0x187   : >> { %1466 = vst [vmem:[%s11780_s22 + $0x10f8] sm:$0xf] %v1465_v31  ;;  %1468 = vst [vmem:[%s11780_s22 + $0x1100] sm:$0xf] %v1467_v32  ;;  %v1471_v34 = vld [vmem:[%s11784_s26 + $0x1108] sm:$0xf] }
 0x188   : >> { %1470 = vst [vmem:[%s11780_s22 + $0x1108] sm:$0xf] %v1469_v33  ;;  %v1473_v35 = vld [vmem:[%s11784_s26 + $0x110c] sm:$0xf]  ;;  %v1475_v36 = vld [vmem:[%s11784_s26 + $0x1120] sm:$0xf] }
 0x189   : >> { %1472 = vst [vmem:[%s11780_s22 + $0x1110] sm:$0xf] %v1471_v34  ;;  %1474 = vst [vmem:[%s11780_s22 + $0x1118] sm:$0xf] %v1473_v35  ;;  %v1477_v37 = vld [vmem:[%s11784_s26 + $0x1124] sm:$0xf] }
 0x18a   : >> { %1476 = vst [vmem:[%s11780_s22 + $0x1120] sm:$0xf] %v1475_v36  ;;  %v1479_v38 = vld [vmem:[%s11784_s26 + $0x1128] sm:$0xf]  ;;  %v1481_v39 = vld [vmem:[%s11784_s26 + $0x112c] sm:$0xf] }
 0x18b   : >> { %1478 = vst [vmem:[%s11780_s22 + $0x1128] sm:$0xf] %v1477_v37  ;;  %1480 = vst [vmem:[%s11780_s22 + $0x1130] sm:$0xf] %v1479_v38  ;;  %v1483_v40 = vld [vmem:[%s11784_s26 + $0x1140] sm:$0xf] }
 0x18c   : >> { %1482 = vst [vmem:[%s11780_s22 + $0x1138] sm:$0xf] %v1481_v39  ;;  %v1485_v41 = vld [vmem:[%s11784_s26 + $0x1144] sm:$0xf]  ;;  %v1487_v42 = vld [vmem:[%s11784_s26 + $0x1148] sm:$0xf] }
 0x18d   : >> { %1484 = vst [vmem:[%s11780_s22 + $0x1140] sm:$0xf] %v1483_v40  ;;  %1486 = vst [vmem:[%s11780_s22 + $0x1148] sm:$0xf] %v1485_v41  ;;  %v1489_v43 = vld [vmem:[%s11784_s26 + $0x114c] sm:$0xf] }
 0x18e   : >> { %1488 = vst [vmem:[%s11780_s22 + $0x1150] sm:$0xf] %v1487_v42  ;;  %v1491_v44 = vld [vmem:[%s11784_s26 + $0x1160] sm:$0xf]  ;;  %v1493_v45 = vld [vmem:[%s11784_s26 + $0x1164] sm:$0xf] }
 0x18f   : >> { %1490 = vst [vmem:[%s11780_s22 + $0x1158] sm:$0xf] %v1489_v43  ;;  %1492 = vst [vmem:[%s11780_s22 + $0x1160] sm:$0xf] %v1491_v44  ;;  %v1495_v46 = vld [vmem:[%s11784_s26 + $0x1168] sm:$0xf] }
 0x190   : >> { %1494 = vst [vmem:[%s11780_s22 + $0x1168] sm:$0xf] %v1493_v45  ;;  %v1497_v47 = vld [vmem:[%s11784_s26 + $0x116c] sm:$0xf]  ;;  %v1499_v48 = vld [vmem:[%s11784_s26 + $0x1180] sm:$0xf] }
 0x191   : >> { %1496 = vst [vmem:[%s11780_s22 + $0x1170] sm:$0xf] %v1495_v46  ;;  %1498 = vst [vmem:[%s11780_s22 + $0x1178] sm:$0xf] %v1497_v47  ;;  %v1501_v49 = vld [vmem:[%s11784_s26 + $0x1184] sm:$0xf] }
 0x192   : >> { %1500 = vst [vmem:[%s11780_s22 + $0x1180] sm:$0xf] %v1499_v48  ;;  %v1503_v50 = vld [vmem:[%s11784_s26 + $0x1188] sm:$0xf]  ;;  %v1505_v51 = vld [vmem:[%s11784_s26 + $0x118c] sm:$0xf] }
 0x193   : >> { %1502 = vst [vmem:[%s11780_s22 + $0x1188] sm:$0xf] %v1501_v49  ;;  %1504 = vst [vmem:[%s11780_s22 + $0x1190] sm:$0xf] %v1503_v50  ;;  %v1507_v52 = vld [vmem:[%s11784_s26 + $0x11a0] sm:$0xf] }
 0x194   : >> { %1506 = vst [vmem:[%s11780_s22 + $0x1198] sm:$0xf] %v1505_v51  ;;  %v1509_v53 = vld [vmem:[%s11784_s26 + $0x11a4] sm:$0xf]  ;;  %v1511_v54 = vld [vmem:[%s11784_s26 + $0x11a8] sm:$0xf] }
 0x195   : >> { %1508 = vst [vmem:[%s11780_s22 + $0x11a0] sm:$0xf] %v1507_v52  ;;  %1510 = vst [vmem:[%s11780_s22 + $0x11a8] sm:$0xf] %v1509_v53  ;;  %v1513_v55 = vld [vmem:[%s11784_s26 + $0x11ac] sm:$0xf] }
 0x196   : >> { %1512 = vst [vmem:[%s11780_s22 + $0x11b0] sm:$0xf] %v1511_v54  ;;  %v1515_v56 = vld [vmem:[%s11784_s26 + $0x11c0] sm:$0xf]  ;;  %v1517_v57 = vld [vmem:[%s11784_s26 + $0x11c4] sm:$0xf] }
 0x197   : >> { %1514 = vst [vmem:[%s11780_s22 + $0x11b8] sm:$0xf] %v1513_v55  ;;  %1516 = vst [vmem:[%s11780_s22 + $0x11c0] sm:$0xf] %v1515_v56  ;;  %v1519_v58 = vld [vmem:[%s11784_s26 + $0x11c8] sm:$0xf] }
 0x198   : >> { %1518 = vst [vmem:[%s11780_s22 + $0x11c8] sm:$0xf] %v1517_v57  ;;  %v1521_v59 = vld [vmem:[%s11784_s26 + $0x11cc] sm:$0xf]  ;;  %v1523_v60 = vld [vmem:[%s11784_s26 + $0x11e0] sm:$0xf] }
 0x199   : >> { %1520 = vst [vmem:[%s11780_s22 + $0x11d0] sm:$0xf] %v1519_v58  ;;  %1522 = vst [vmem:[%s11780_s22 + $0x11d8] sm:$0xf] %v1521_v59  ;;  %v1525_v61 = vld [vmem:[%s11784_s26 + $0x11e4] sm:$0xf] }
 0x19a   : >> { %1524 = vst [vmem:[%s11780_s22 + $0x11e0] sm:$0xf] %v1523_v60  ;;  %v1527_v62 = vld [vmem:[%s11784_s26 + $0x11e8] sm:$0xf]  ;;  %v1529_v63 = vld [vmem:[%s11784_s26 + $0x11ec] sm:$0xf] }
 0x19b   : >> { %1526 = vst [vmem:[%s11780_s22 + $0x11e8] sm:$0xf] %v1525_v61  ;;  %1528 = vst [vmem:[%s11780_s22 + $0x11f0] sm:$0xf] %v1527_v62  ;;  %v1531_v0 = vld [vmem:[%s11784_s26 + $0x1200] sm:$0xf] }
 0x19c   : >> { %1530 = vst [vmem:[%s11780_s22 + $0x11f8] sm:$0xf] %v1529_v63  ;;  %v1533_v1 = vld [vmem:[%s11784_s26 + $0x1204] sm:$0xf]  ;;  %v1535_v2 = vld [vmem:[%s11784_s26 + $0x1208] sm:$0xf] }
 0x19d   : >> { %1532 = vst [vmem:[%s11780_s22 + $0x1200] sm:$0xf] %v1531_v0  ;;  %1534 = vst [vmem:[%s11780_s22 + $0x1208] sm:$0xf] %v1533_v1  ;;  %v1537_v3 = vld [vmem:[%s11784_s26 + $0x120c] sm:$0xf] }
 0x19e   : >> { %1536 = vst [vmem:[%s11780_s22 + $0x1210] sm:$0xf] %v1535_v2  ;;  %v1539_v4 = vld [vmem:[%s11784_s26 + $0x1220] sm:$0xf]  ;;  %v1541_v5 = vld [vmem:[%s11784_s26 + $0x1224] sm:$0xf] }
 0x19f   : >> { %1538 = vst [vmem:[%s11780_s22 + $0x1218] sm:$0xf] %v1537_v3  ;;  %1540 = vst [vmem:[%s11780_s22 + $0x1220] sm:$0xf] %v1539_v4  ;;  %v1543_v6 = vld [vmem:[%s11784_s26 + $0x1228] sm:$0xf] }
 0x1a0   : >> { %1542 = vst [vmem:[%s11780_s22 + $0x1228] sm:$0xf] %v1541_v5  ;;  %v1545_v7 = vld [vmem:[%s11784_s26 + $0x122c] sm:$0xf]  ;;  %v1547_v8 = vld [vmem:[%s11784_s26 + $0x1240] sm:$0xf] }
 0x1a1   : >> { %1544 = vst [vmem:[%s11780_s22 + $0x1230] sm:$0xf] %v1543_v6  ;;  %1546 = vst [vmem:[%s11780_s22 + $0x1238] sm:$0xf] %v1545_v7  ;;  %v1549_v9 = vld [vmem:[%s11784_s26 + $0x1244] sm:$0xf] }
 0x1a2   : >> { %1548 = vst [vmem:[%s11780_s22 + $0x1240] sm:$0xf] %v1547_v8  ;;  %v1551_v10 = vld [vmem:[%s11784_s26 + $0x1248] sm:$0xf]  ;;  %v1553_v11 = vld [vmem:[%s11784_s26 + $0x124c] sm:$0xf] }
 0x1a3   : >> { %1550 = vst [vmem:[%s11780_s22 + $0x1248] sm:$0xf] %v1549_v9  ;;  %1552 = vst [vmem:[%s11780_s22 + $0x1250] sm:$0xf] %v1551_v10  ;;  %v1555_v12 = vld [vmem:[%s11784_s26 + $0x1260] sm:$0xf] }
 0x1a4   : >> { %1554 = vst [vmem:[%s11780_s22 + $0x1258] sm:$0xf] %v1553_v11  ;;  %v1557_v13 = vld [vmem:[%s11784_s26 + $0x1264] sm:$0xf]  ;;  %v1559_v14 = vld [vmem:[%s11784_s26 + $0x1268] sm:$0xf] }
 0x1a5   : >> { %1556 = vst [vmem:[%s11780_s22 + $0x1260] sm:$0xf] %v1555_v12  ;;  %1558 = vst [vmem:[%s11780_s22 + $0x1268] sm:$0xf] %v1557_v13  ;;  %v1561_v15 = vld [vmem:[%s11784_s26 + $0x126c] sm:$0xf] }
 0x1a6   : >> { %1560 = vst [vmem:[%s11780_s22 + $0x1270] sm:$0xf] %v1559_v14  ;;  %v1563_v16 = vld [vmem:[%s11784_s26 + $0x1280] sm:$0xf]  ;;  %v1565_v17 = vld [vmem:[%s11784_s26 + $0x1284] sm:$0xf] }
 0x1a7   : >> { %1562 = vst [vmem:[%s11780_s22 + $0x1278] sm:$0xf] %v1561_v15  ;;  %1564 = vst [vmem:[%s11780_s22 + $0x1280] sm:$0xf] %v1563_v16  ;;  %v1567_v18 = vld [vmem:[%s11784_s26 + $0x1288] sm:$0xf] }
 0x1a8   : >> { %1566 = vst [vmem:[%s11780_s22 + $0x1288] sm:$0xf] %v1565_v17  ;;  %v1569_v19 = vld [vmem:[%s11784_s26 + $0x128c] sm:$0xf]  ;;  %v1571_v20 = vld [vmem:[%s11784_s26 + $0x12a0] sm:$0xf] }
 0x1a9   : >> { %1568 = vst [vmem:[%s11780_s22 + $0x1290] sm:$0xf] %v1567_v18  ;;  %1570 = vst [vmem:[%s11780_s22 + $0x1298] sm:$0xf] %v1569_v19  ;;  %v1573_v21 = vld [vmem:[%s11784_s26 + $0x12a4] sm:$0xf] }
 0x1aa   : >> { %1572 = vst [vmem:[%s11780_s22 + $0x12a0] sm:$0xf] %v1571_v20  ;;  %v1575_v22 = vld [vmem:[%s11784_s26 + $0x12a8] sm:$0xf]  ;;  %v1577_v23 = vld [vmem:[%s11784_s26 + $0x12ac] sm:$0xf] }
 0x1ab   : >> { %1574 = vst [vmem:[%s11780_s22 + $0x12a8] sm:$0xf] %v1573_v21  ;;  %1576 = vst [vmem:[%s11780_s22 + $0x12b0] sm:$0xf] %v1575_v22  ;;  %v1579_v24 = vld [vmem:[%s11784_s26 + $0x12c0] sm:$0xf] }
 0x1ac   : >> { %1578 = vst [vmem:[%s11780_s22 + $0x12b8] sm:$0xf] %v1577_v23  ;;  %v1581_v25 = vld [vmem:[%s11784_s26 + $0x12c4] sm:$0xf]  ;;  %v1583_v26 = vld [vmem:[%s11784_s26 + $0x12c8] sm:$0xf] }
 0x1ad   : >> { %1580 = vst [vmem:[%s11780_s22 + $0x12c0] sm:$0xf] %v1579_v24  ;;  %1582 = vst [vmem:[%s11780_s22 + $0x12c8] sm:$0xf] %v1581_v25  ;;  %v1585_v27 = vld [vmem:[%s11784_s26 + $0x12cc] sm:$0xf] }
 0x1ae   : >> { %1584 = vst [vmem:[%s11780_s22 + $0x12d0] sm:$0xf] %v1583_v26  ;;  %v1587_v28 = vld [vmem:[%s11784_s26 + $0x12e0] sm:$0xf]  ;;  %v1589_v29 = vld [vmem:[%s11784_s26 + $0x12e4] sm:$0xf] }
 0x1af   : >> { %1586 = vst [vmem:[%s11780_s22 + $0x12d8] sm:$0xf] %v1585_v27  ;;  %1588 = vst [vmem:[%s11780_s22 + $0x12e0] sm:$0xf] %v1587_v28  ;;  %v1591_v30 = vld [vmem:[%s11784_s26 + $0x12e8] sm:$0xf] }
 0x1b0   : >> { %1590 = vst [vmem:[%s11780_s22 + $0x12e8] sm:$0xf] %v1589_v29  ;;  %v1593_v31 = vld [vmem:[%s11784_s26 + $0x12ec] sm:$0xf]  ;;  %v1595_v32 = vld [vmem:[%s11784_s26 + $0x1300] sm:$0xf] }
 0x1b1   : >> { %1592 = vst [vmem:[%s11780_s22 + $0x12f0] sm:$0xf] %v1591_v30  ;;  %1594 = vst [vmem:[%s11780_s22 + $0x12f8] sm:$0xf] %v1593_v31  ;;  %v1597_v33 = vld [vmem:[%s11784_s26 + $0x1304] sm:$0xf] }
 0x1b2   : >> { %1596 = vst [vmem:[%s11780_s22 + $0x1300] sm:$0xf] %v1595_v32  ;;  %v1599_v34 = vld [vmem:[%s11784_s26 + $0x1308] sm:$0xf]  ;;  %v1601_v35 = vld [vmem:[%s11784_s26 + $0x130c] sm:$0xf] }
 0x1b3   : >> { %1598 = vst [vmem:[%s11780_s22 + $0x1308] sm:$0xf] %v1597_v33  ;;  %1600 = vst [vmem:[%s11780_s22 + $0x1310] sm:$0xf] %v1599_v34  ;;  %v1603_v36 = vld [vmem:[%s11784_s26 + $0x1320] sm:$0xf] }
 0x1b4   : >> { %1602 = vst [vmem:[%s11780_s22 + $0x1318] sm:$0xf] %v1601_v35  ;;  %v1605_v37 = vld [vmem:[%s11784_s26 + $0x1324] sm:$0xf]  ;;  %v1607_v38 = vld [vmem:[%s11784_s26 + $0x1328] sm:$0xf] }
 0x1b5   : >> { %1604 = vst [vmem:[%s11780_s22 + $0x1320] sm:$0xf] %v1603_v36  ;;  %1606 = vst [vmem:[%s11780_s22 + $0x1328] sm:$0xf] %v1605_v37  ;;  %v1609_v39 = vld [vmem:[%s11784_s26 + $0x132c] sm:$0xf] }
 0x1b6   : >> { %1608 = vst [vmem:[%s11780_s22 + $0x1330] sm:$0xf] %v1607_v38  ;;  %v1611_v40 = vld [vmem:[%s11784_s26 + $0x1340] sm:$0xf]  ;;  %v1613_v41 = vld [vmem:[%s11784_s26 + $0x1344] sm:$0xf] }
 0x1b7   : >> { %1610 = vst [vmem:[%s11780_s22 + $0x1338] sm:$0xf] %v1609_v39  ;;  %1612 = vst [vmem:[%s11780_s22 + $0x1340] sm:$0xf] %v1611_v40  ;;  %v1615_v42 = vld [vmem:[%s11784_s26 + $0x1348] sm:$0xf] }
 0x1b8   : >> { %1614 = vst [vmem:[%s11780_s22 + $0x1348] sm:$0xf] %v1613_v41  ;;  %v1617_v43 = vld [vmem:[%s11784_s26 + $0x134c] sm:$0xf]  ;;  %v1619_v44 = vld [vmem:[%s11784_s26 + $0x1360] sm:$0xf] }
 0x1b9   : >> { %1616 = vst [vmem:[%s11780_s22 + $0x1350] sm:$0xf] %v1615_v42  ;;  %1618 = vst [vmem:[%s11780_s22 + $0x1358] sm:$0xf] %v1617_v43  ;;  %v1621_v45 = vld [vmem:[%s11784_s26 + $0x1364] sm:$0xf] }
 0x1ba   : >> { %1620 = vst [vmem:[%s11780_s22 + $0x1360] sm:$0xf] %v1619_v44  ;;  %v1623_v46 = vld [vmem:[%s11784_s26 + $0x1368] sm:$0xf]  ;;  %v1625_v47 = vld [vmem:[%s11784_s26 + $0x136c] sm:$0xf] }
 0x1bb   : >> { %1622 = vst [vmem:[%s11780_s22 + $0x1368] sm:$0xf] %v1621_v45  ;;  %1624 = vst [vmem:[%s11780_s22 + $0x1370] sm:$0xf] %v1623_v46  ;;  %v1627_v48 = vld [vmem:[%s11784_s26 + $0x1380] sm:$0xf] }
 0x1bc   : >> { %1626 = vst [vmem:[%s11780_s22 + $0x1378] sm:$0xf] %v1625_v47  ;;  %v1629_v49 = vld [vmem:[%s11784_s26 + $0x1384] sm:$0xf]  ;;  %v1631_v50 = vld [vmem:[%s11784_s26 + $0x1388] sm:$0xf] }
 0x1bd   : >> { %1628 = vst [vmem:[%s11780_s22 + $0x1380] sm:$0xf] %v1627_v48  ;;  %1630 = vst [vmem:[%s11780_s22 + $0x1388] sm:$0xf] %v1629_v49  ;;  %v1633_v51 = vld [vmem:[%s11784_s26 + $0x138c] sm:$0xf] }
 0x1be   : >> { %1632 = vst [vmem:[%s11780_s22 + $0x1390] sm:$0xf] %v1631_v50  ;;  %v1635_v52 = vld [vmem:[%s11784_s26 + $0x13a0] sm:$0xf]  ;;  %v1637_v53 = vld [vmem:[%s11784_s26 + $0x13a4] sm:$0xf] }
 0x1bf   : >> { %1634 = vst [vmem:[%s11780_s22 + $0x1398] sm:$0xf] %v1633_v51  ;;  %1636 = vst [vmem:[%s11780_s22 + $0x13a0] sm:$0xf] %v1635_v52  ;;  %v1639_v54 = vld [vmem:[%s11784_s26 + $0x13a8] sm:$0xf] }
 0x1c0   : >> { %1638 = vst [vmem:[%s11780_s22 + $0x13a8] sm:$0xf] %v1637_v53  ;;  %v1641_v55 = vld [vmem:[%s11784_s26 + $0x13ac] sm:$0xf]  ;;  %v1643_v56 = vld [vmem:[%s11784_s26 + $0x13c0] sm:$0xf] }
 0x1c1   : >> { %1640 = vst [vmem:[%s11780_s22 + $0x13b0] sm:$0xf] %v1639_v54  ;;  %1642 = vst [vmem:[%s11780_s22 + $0x13b8] sm:$0xf] %v1641_v55  ;;  %v1645_v57 = vld [vmem:[%s11784_s26 + $0x13c4] sm:$0xf] }
 0x1c2   : >> { %1644 = vst [vmem:[%s11780_s22 + $0x13c0] sm:$0xf] %v1643_v56  ;;  %v1647_v58 = vld [vmem:[%s11784_s26 + $0x13c8] sm:$0xf]  ;;  %v1649_v59 = vld [vmem:[%s11784_s26 + $0x13cc] sm:$0xf] }
 0x1c3   : >> { %1646 = vst [vmem:[%s11780_s22 + $0x13c8] sm:$0xf] %v1645_v57  ;;  %1648 = vst [vmem:[%s11780_s22 + $0x13d0] sm:$0xf] %v1647_v58  ;;  %v1651_v60 = vld [vmem:[%s11784_s26 + $0x13e0] sm:$0xf] }
 0x1c4   : >> { %1650 = vst [vmem:[%s11780_s22 + $0x13d8] sm:$0xf] %v1649_v59  ;;  %v1653_v61 = vld [vmem:[%s11784_s26 + $0x13e4] sm:$0xf]  ;;  %v1655_v62 = vld [vmem:[%s11784_s26 + $0x13e8] sm:$0xf] }
 0x1c5   : >> { %1652 = vst [vmem:[%s11780_s22 + $0x13e0] sm:$0xf] %v1651_v60  ;;  %1654 = vst [vmem:[%s11780_s22 + $0x13e8] sm:$0xf] %v1653_v61  ;;  %v1657_v63 = vld [vmem:[%s11784_s26 + $0x13ec] sm:$0xf] }
 0x1c6   : >> { %1656 = vst [vmem:[%s11780_s22 + $0x13f0] sm:$0xf] %v1655_v62  ;;  %v1659_v0 = vld [vmem:[%s11784_s26 + $0x1400] sm:$0xf]  ;;  %v1661_v1 = vld [vmem:[%s11784_s26 + $0x1404] sm:$0xf] }
 0x1c7   : >> { %1658 = vst [vmem:[%s11780_s22 + $0x13f8] sm:$0xf] %v1657_v63  ;;  %1660 = vst [vmem:[%s11780_s22 + $0x1400] sm:$0xf] %v1659_v0  ;;  %v1663_v2 = vld [vmem:[%s11784_s26 + $0x1408] sm:$0xf] }
 0x1c8   : >> { %1662 = vst [vmem:[%s11780_s22 + $0x1408] sm:$0xf] %v1661_v1  ;;  %v1665_v3 = vld [vmem:[%s11784_s26 + $0x140c] sm:$0xf]  ;;  %v1667_v4 = vld [vmem:[%s11784_s26 + $0x1420] sm:$0xf] }
 0x1c9   : >> { %1664 = vst [vmem:[%s11780_s22 + $0x1410] sm:$0xf] %v1663_v2  ;;  %1666 = vst [vmem:[%s11780_s22 + $0x1418] sm:$0xf] %v1665_v3  ;;  %v1669_v5 = vld [vmem:[%s11784_s26 + $0x1424] sm:$0xf] }
 0x1ca   : >> { %1668 = vst [vmem:[%s11780_s22 + $0x1420] sm:$0xf] %v1667_v4  ;;  %v1671_v6 = vld [vmem:[%s11784_s26 + $0x1428] sm:$0xf]  ;;  %v1673_v7 = vld [vmem:[%s11784_s26 + $0x142c] sm:$0xf] }
 0x1cb   : >> { %1670 = vst [vmem:[%s11780_s22 + $0x1428] sm:$0xf] %v1669_v5  ;;  %1672 = vst [vmem:[%s11780_s22 + $0x1430] sm:$0xf] %v1671_v6  ;;  %v1675_v8 = vld [vmem:[%s11784_s26 + $0x1440] sm:$0xf] }
 0x1cc   : >> { %1674 = vst [vmem:[%s11780_s22 + $0x1438] sm:$0xf] %v1673_v7  ;;  %v1677_v9 = vld [vmem:[%s11784_s26 + $0x1444] sm:$0xf]  ;;  %v1679_v10 = vld [vmem:[%s11784_s26 + $0x1448] sm:$0xf] }
 0x1cd   : >> { %1676 = vst [vmem:[%s11780_s22 + $0x1440] sm:$0xf] %v1675_v8  ;;  %1678 = vst [vmem:[%s11780_s22 + $0x1448] sm:$0xf] %v1677_v9  ;;  %v1681_v11 = vld [vmem:[%s11784_s26 + $0x144c] sm:$0xf] }
 0x1ce   : >> { %1680 = vst [vmem:[%s11780_s22 + $0x1450] sm:$0xf] %v1679_v10  ;;  %v1683_v12 = vld [vmem:[%s11784_s26 + $0x1460] sm:$0xf]  ;;  %v1685_v13 = vld [vmem:[%s11784_s26 + $0x1464] sm:$0xf] }
 0x1cf   : >> { %1682 = vst [vmem:[%s11780_s22 + $0x1458] sm:$0xf] %v1681_v11  ;;  %1684 = vst [vmem:[%s11780_s22 + $0x1460] sm:$0xf] %v1683_v12  ;;  %v1687_v14 = vld [vmem:[%s11784_s26 + $0x1468] sm:$0xf] }
 0x1d0   : >> { %1686 = vst [vmem:[%s11780_s22 + $0x1468] sm:$0xf] %v1685_v13  ;;  %v1689_v15 = vld [vmem:[%s11784_s26 + $0x146c] sm:$0xf]  ;;  %v1691_v16 = vld [vmem:[%s11784_s26 + $0x1480] sm:$0xf] }
 0x1d1   : >> { %1688 = vst [vmem:[%s11780_s22 + $0x1470] sm:$0xf] %v1687_v14  ;;  %1690 = vst [vmem:[%s11780_s22 + $0x1478] sm:$0xf] %v1689_v15  ;;  %v1693_v17 = vld [vmem:[%s11784_s26 + $0x1484] sm:$0xf] }
 0x1d2   : >> { %1692 = vst [vmem:[%s11780_s22 + $0x1480] sm:$0xf] %v1691_v16  ;;  %v1695_v18 = vld [vmem:[%s11784_s26 + $0x1488] sm:$0xf]  ;;  %v1697_v19 = vld [vmem:[%s11784_s26 + $0x148c] sm:$0xf] }
 0x1d3   : >> { %1694 = vst [vmem:[%s11780_s22 + $0x1488] sm:$0xf] %v1693_v17  ;;  %1696 = vst [vmem:[%s11780_s22 + $0x1490] sm:$0xf] %v1695_v18  ;;  %v1699_v20 = vld [vmem:[%s11784_s26 + $0x14a0] sm:$0xf] }
 0x1d4   : >> { %1698 = vst [vmem:[%s11780_s22 + $0x1498] sm:$0xf] %v1697_v19  ;;  %v1701_v21 = vld [vmem:[%s11784_s26 + $0x14a4] sm:$0xf]  ;;  %v1703_v22 = vld [vmem:[%s11784_s26 + $0x14a8] sm:$0xf] }
 0x1d5   : >> { %1700 = vst [vmem:[%s11780_s22 + $0x14a0] sm:$0xf] %v1699_v20  ;;  %1702 = vst [vmem:[%s11780_s22 + $0x14a8] sm:$0xf] %v1701_v21  ;;  %v1705_v23 = vld [vmem:[%s11784_s26 + $0x14ac] sm:$0xf] }
 0x1d6   : >> { %1704 = vst [vmem:[%s11780_s22 + $0x14b0] sm:$0xf] %v1703_v22  ;;  %v1707_v24 = vld [vmem:[%s11784_s26 + $0x14c0] sm:$0xf]  ;;  %v1709_v25 = vld [vmem:[%s11784_s26 + $0x14c4] sm:$0xf] }
 0x1d7   : >> { %1706 = vst [vmem:[%s11780_s22 + $0x14b8] sm:$0xf] %v1705_v23  ;;  %1708 = vst [vmem:[%s11780_s22 + $0x14c0] sm:$0xf] %v1707_v24  ;;  %v1711_v26 = vld [vmem:[%s11784_s26 + $0x14c8] sm:$0xf] }
 0x1d8   : >> { %1710 = vst [vmem:[%s11780_s22 + $0x14c8] sm:$0xf] %v1709_v25  ;;  %v1713_v27 = vld [vmem:[%s11784_s26 + $0x14cc] sm:$0xf]  ;;  %v1715_v28 = vld [vmem:[%s11784_s26 + $0x14e0] sm:$0xf] }
 0x1d9   : >> { %1712 = vst [vmem:[%s11780_s22 + $0x14d0] sm:$0xf] %v1711_v26  ;;  %1714 = vst [vmem:[%s11780_s22 + $0x14d8] sm:$0xf] %v1713_v27  ;;  %v1717_v29 = vld [vmem:[%s11784_s26 + $0x14e4] sm:$0xf] }
 0x1da   : >> { %1716 = vst [vmem:[%s11780_s22 + $0x14e0] sm:$0xf] %v1715_v28  ;;  %v1719_v30 = vld [vmem:[%s11784_s26 + $0x14e8] sm:$0xf]  ;;  %v1721_v31 = vld [vmem:[%s11784_s26 + $0x14ec] sm:$0xf] }
 0x1db   : >> { %1718 = vst [vmem:[%s11780_s22 + $0x14e8] sm:$0xf] %v1717_v29  ;;  %1720 = vst [vmem:[%s11780_s22 + $0x14f0] sm:$0xf] %v1719_v30  ;;  %v1723_v32 = vld [vmem:[%s11784_s26 + $0x1500] sm:$0xf] }
 0x1dc   : >> { %1722 = vst [vmem:[%s11780_s22 + $0x14f8] sm:$0xf] %v1721_v31  ;;  %v1725_v33 = vld [vmem:[%s11784_s26 + $0x1504] sm:$0xf]  ;;  %v1727_v34 = vld [vmem:[%s11784_s26 + $0x1508] sm:$0xf] }
 0x1dd   : >> { %1724 = vst [vmem:[%s11780_s22 + $0x1500] sm:$0xf] %v1723_v32  ;;  %1726 = vst [vmem:[%s11780_s22 + $0x1508] sm:$0xf] %v1725_v33  ;;  %v1729_v35 = vld [vmem:[%s11784_s26 + $0x150c] sm:$0xf] }
 0x1de   : >> { %1728 = vst [vmem:[%s11780_s22 + $0x1510] sm:$0xf] %v1727_v34  ;;  %v1731_v36 = vld [vmem:[%s11784_s26 + $0x1520] sm:$0xf]  ;;  %v1733_v37 = vld [vmem:[%s11784_s26 + $0x1524] sm:$0xf] }
 0x1df   : >> { %1730 = vst [vmem:[%s11780_s22 + $0x1518] sm:$0xf] %v1729_v35  ;;  %1732 = vst [vmem:[%s11780_s22 + $0x1520] sm:$0xf] %v1731_v36  ;;  %v1735_v38 = vld [vmem:[%s11784_s26 + $0x1528] sm:$0xf] }
 0x1e0   : >> { %1734 = vst [vmem:[%s11780_s22 + $0x1528] sm:$0xf] %v1733_v37  ;;  %v1737_v39 = vld [vmem:[%s11784_s26 + $0x152c] sm:$0xf]  ;;  %v1739_v40 = vld [vmem:[%s11784_s26 + $0x1540] sm:$0xf] }
 0x1e1   : >> { %1736 = vst [vmem:[%s11780_s22 + $0x1530] sm:$0xf] %v1735_v38  ;;  %1738 = vst [vmem:[%s11780_s22 + $0x1538] sm:$0xf] %v1737_v39  ;;  %v1741_v41 = vld [vmem:[%s11784_s26 + $0x1544] sm:$0xf] }
 0x1e2   : >> { %1740 = vst [vmem:[%s11780_s22 + $0x1540] sm:$0xf] %v1739_v40  ;;  %v1743_v42 = vld [vmem:[%s11784_s26 + $0x1548] sm:$0xf]  ;;  %v1745_v43 = vld [vmem:[%s11784_s26 + $0x154c] sm:$0xf] }
 0x1e3   : >> { %1742 = vst [vmem:[%s11780_s22 + $0x1548] sm:$0xf] %v1741_v41  ;;  %1744 = vst [vmem:[%s11780_s22 + $0x1550] sm:$0xf] %v1743_v42  ;;  %v1747_v44 = vld [vmem:[%s11784_s26 + $0x1560] sm:$0xf] }
 0x1e4   : >> { %1746 = vst [vmem:[%s11780_s22 + $0x1558] sm:$0xf] %v1745_v43  ;;  %v1749_v45 = vld [vmem:[%s11784_s26 + $0x1564] sm:$0xf]  ;;  %v1751_v46 = vld [vmem:[%s11784_s26 + $0x1568] sm:$0xf] }
 0x1e5   : >> { %1748 = vst [vmem:[%s11780_s22 + $0x1560] sm:$0xf] %v1747_v44  ;;  %1750 = vst [vmem:[%s11780_s22 + $0x1568] sm:$0xf] %v1749_v45  ;;  %v1753_v47 = vld [vmem:[%s11784_s26 + $0x156c] sm:$0xf] }
 0x1e6   : >> { %1752 = vst [vmem:[%s11780_s22 + $0x1570] sm:$0xf] %v1751_v46  ;;  %v1755_v48 = vld [vmem:[%s11784_s26 + $0x1580] sm:$0xf]  ;;  %v1757_v49 = vld [vmem:[%s11784_s26 + $0x1584] sm:$0xf] }
 0x1e7   : >> { %1754 = vst [vmem:[%s11780_s22 + $0x1578] sm:$0xf] %v1753_v47  ;;  %1756 = vst [vmem:[%s11780_s22 + $0x1580] sm:$0xf] %v1755_v48  ;;  %v1759_v50 = vld [vmem:[%s11784_s26 + $0x1588] sm:$0xf] }
 0x1e8   : >> { %1758 = vst [vmem:[%s11780_s22 + $0x1588] sm:$0xf] %v1757_v49  ;;  %v1761_v51 = vld [vmem:[%s11784_s26 + $0x158c] sm:$0xf]  ;;  %v1763_v52 = vld [vmem:[%s11784_s26 + $0x15a0] sm:$0xf] }
 0x1e9   : >> { %1760 = vst [vmem:[%s11780_s22 + $0x1590] sm:$0xf] %v1759_v50  ;;  %1762 = vst [vmem:[%s11780_s22 + $0x1598] sm:$0xf] %v1761_v51  ;;  %v1765_v53 = vld [vmem:[%s11784_s26 + $0x15a4] sm:$0xf] }
 0x1ea   : >> { %1764 = vst [vmem:[%s11780_s22 + $0x15a0] sm:$0xf] %v1763_v52  ;;  %v1767_v54 = vld [vmem:[%s11784_s26 + $0x15a8] sm:$0xf]  ;;  %v1769_v55 = vld [vmem:[%s11784_s26 + $0x15ac] sm:$0xf] }
 0x1eb   : >> { %1766 = vst [vmem:[%s11780_s22 + $0x15a8] sm:$0xf] %v1765_v53  ;;  %1768 = vst [vmem:[%s11780_s22 + $0x15b0] sm:$0xf] %v1767_v54  ;;  %v1771_v56 = vld [vmem:[%s11784_s26 + $0x15c0] sm:$0xf] }
 0x1ec   : >> { %1770 = vst [vmem:[%s11780_s22 + $0x15b8] sm:$0xf] %v1769_v55  ;;  %v1773_v57 = vld [vmem:[%s11784_s26 + $0x15c4] sm:$0xf]  ;;  %v1775_v58 = vld [vmem:[%s11784_s26 + $0x15c8] sm:$0xf] }
 0x1ed   : >> { %1772 = vst [vmem:[%s11780_s22 + $0x15c0] sm:$0xf] %v1771_v56  ;;  %1774 = vst [vmem:[%s11780_s22 + $0x15c8] sm:$0xf] %v1773_v57  ;;  %v1777_v59 = vld [vmem:[%s11784_s26 + $0x15cc] sm:$0xf] }
 0x1ee   : >> { %1776 = vst [vmem:[%s11780_s22 + $0x15d0] sm:$0xf] %v1775_v58  ;;  %v1779_v60 = vld [vmem:[%s11784_s26 + $0x15e0] sm:$0xf]  ;;  %v1781_v61 = vld [vmem:[%s11784_s26 + $0x15e4] sm:$0xf] }
 0x1ef   : >> { %1778 = vst [vmem:[%s11780_s22 + $0x15d8] sm:$0xf] %v1777_v59  ;;  %1780 = vst [vmem:[%s11780_s22 + $0x15e0] sm:$0xf] %v1779_v60  ;;  %v1783_v62 = vld [vmem:[%s11784_s26 + $0x15e8] sm:$0xf] }
 0x1f0   : >> { %1782 = vst [vmem:[%s11780_s22 + $0x15e8] sm:$0xf] %v1781_v61  ;;  %v1785_v63 = vld [vmem:[%s11784_s26 + $0x15ec] sm:$0xf]  ;;  %v1787_v0 = vld [vmem:[%s11784_s26 + $0x1600] sm:$0xf] }
 0x1f1   : >> { %1784 = vst [vmem:[%s11780_s22 + $0x15f0] sm:$0xf] %v1783_v62  ;;  %1786 = vst [vmem:[%s11780_s22 + $0x15f8] sm:$0xf] %v1785_v63  ;;  %v1789_v1 = vld [vmem:[%s11784_s26 + $0x1604] sm:$0xf] }
 0x1f2   : >> { %1788 = vst [vmem:[%s11780_s22 + $0x1600] sm:$0xf] %v1787_v0  ;;  %v1791_v2 = vld [vmem:[%s11784_s26 + $0x1608] sm:$0xf]  ;;  %v1793_v3 = vld [vmem:[%s11784_s26 + $0x160c] sm:$0xf] }
 0x1f3   : >> { %1790 = vst [vmem:[%s11780_s22 + $0x1608] sm:$0xf] %v1789_v1  ;;  %1792 = vst [vmem:[%s11780_s22 + $0x1610] sm:$0xf] %v1791_v2  ;;  %v1795_v4 = vld [vmem:[%s11784_s26 + $0x1620] sm:$0xf] }
 0x1f4   : >> { %1794 = vst [vmem:[%s11780_s22 + $0x1618] sm:$0xf] %v1793_v3  ;;  %v1797_v5 = vld [vmem:[%s11784_s26 + $0x1624] sm:$0xf]  ;;  %v1799_v6 = vld [vmem:[%s11784_s26 + $0x1628] sm:$0xf] }
 0x1f5   : >> { %1796 = vst [vmem:[%s11780_s22 + $0x1620] sm:$0xf] %v1795_v4  ;;  %1798 = vst [vmem:[%s11780_s22 + $0x1628] sm:$0xf] %v1797_v5  ;;  %v1801_v7 = vld [vmem:[%s11784_s26 + $0x162c] sm:$0xf] }
 0x1f6   : >> { %1800 = vst [vmem:[%s11780_s22 + $0x1630] sm:$0xf] %v1799_v6  ;;  %v1803_v8 = vld [vmem:[%s11784_s26 + $0x1640] sm:$0xf]  ;;  %v1805_v9 = vld [vmem:[%s11784_s26 + $0x1644] sm:$0xf] }
 0x1f7   : >> { %1802 = vst [vmem:[%s11780_s22 + $0x1638] sm:$0xf] %v1801_v7  ;;  %1804 = vst [vmem:[%s11780_s22 + $0x1640] sm:$0xf] %v1803_v8  ;;  %v1807_v10 = vld [vmem:[%s11784_s26 + $0x1648] sm:$0xf] }
 0x1f8   : >> { %1806 = vst [vmem:[%s11780_s22 + $0x1648] sm:$0xf] %v1805_v9  ;;  %v1809_v11 = vld [vmem:[%s11784_s26 + $0x164c] sm:$0xf]  ;;  %v1811_v12 = vld [vmem:[%s11784_s26 + $0x1660] sm:$0xf] }
 0x1f9   : >> { %1808 = vst [vmem:[%s11780_s22 + $0x1650] sm:$0xf] %v1807_v10  ;;  %1810 = vst [vmem:[%s11780_s22 + $0x1658] sm:$0xf] %v1809_v11  ;;  %v1813_v13 = vld [vmem:[%s11784_s26 + $0x1664] sm:$0xf] }
 0x1fa   : >> { %1812 = vst [vmem:[%s11780_s22 + $0x1660] sm:$0xf] %v1811_v12  ;;  %v1815_v14 = vld [vmem:[%s11784_s26 + $0x1668] sm:$0xf]  ;;  %v1817_v15 = vld [vmem:[%s11784_s26 + $0x166c] sm:$0xf] }
 0x1fb   : >> { %1814 = vst [vmem:[%s11780_s22 + $0x1668] sm:$0xf] %v1813_v13  ;;  %1816 = vst [vmem:[%s11780_s22 + $0x1670] sm:$0xf] %v1815_v14  ;;  %v1819_v16 = vld [vmem:[%s11784_s26 + $0x1680] sm:$0xf] }
 0x1fc   : >> { %1818 = vst [vmem:[%s11780_s22 + $0x1678] sm:$0xf] %v1817_v15  ;;  %v1821_v17 = vld [vmem:[%s11784_s26 + $0x1684] sm:$0xf]  ;;  %v1823_v18 = vld [vmem:[%s11784_s26 + $0x1688] sm:$0xf] }
 0x1fd   : >> { %1820 = vst [vmem:[%s11780_s22 + $0x1680] sm:$0xf] %v1819_v16  ;;  %1822 = vst [vmem:[%s11780_s22 + $0x1688] sm:$0xf] %v1821_v17  ;;  %v1825_v19 = vld [vmem:[%s11784_s26 + $0x168c] sm:$0xf] }
 0x1fe   : >> { %1824 = vst [vmem:[%s11780_s22 + $0x1690] sm:$0xf] %v1823_v18  ;;  %v1827_v20 = vld [vmem:[%s11784_s26 + $0x16a0] sm:$0xf]  ;;  %v1829_v21 = vld [vmem:[%s11784_s26 + $0x16a4] sm:$0xf] }
 0x1ff   : >> { %1826 = vst [vmem:[%s11780_s22 + $0x1698] sm:$0xf] %v1825_v19  ;;  %1828 = vst [vmem:[%s11780_s22 + $0x16a0] sm:$0xf] %v1827_v20  ;;  %v1831_v22 = vld [vmem:[%s11784_s26 + $0x16a8] sm:$0xf] }
 0x200   : >> { %1830 = vst [vmem:[%s11780_s22 + $0x16a8] sm:$0xf] %v1829_v21  ;;  %v1833_v23 = vld [vmem:[%s11784_s26 + $0x16ac] sm:$0xf]  ;;  %v1835_v24 = vld [vmem:[%s11784_s26 + $0x16c0] sm:$0xf] }
 0x201   : >> { %1832 = vst [vmem:[%s11780_s22 + $0x16b0] sm:$0xf] %v1831_v22  ;;  %1834 = vst [vmem:[%s11780_s22 + $0x16b8] sm:$0xf] %v1833_v23  ;;  %v1837_v25 = vld [vmem:[%s11784_s26 + $0x16c4] sm:$0xf] }
 0x202   : >> { %1836 = vst [vmem:[%s11780_s22 + $0x16c0] sm:$0xf] %v1835_v24  ;;  %v1839_v26 = vld [vmem:[%s11784_s26 + $0x16c8] sm:$0xf]  ;;  %v1841_v27 = vld [vmem:[%s11784_s26 + $0x16cc] sm:$0xf] }
 0x203   : >> { %1838 = vst [vmem:[%s11780_s22 + $0x16c8] sm:$0xf] %v1837_v25  ;;  %1840 = vst [vmem:[%s11780_s22 + $0x16d0] sm:$0xf] %v1839_v26  ;;  %v1843_v28 = vld [vmem:[%s11784_s26 + $0x16e0] sm:$0xf] }
 0x204   : >> { %1842 = vst [vmem:[%s11780_s22 + $0x16d8] sm:$0xf] %v1841_v27  ;;  %v1845_v29 = vld [vmem:[%s11784_s26 + $0x16e4] sm:$0xf]  ;;  %v1847_v30 = vld [vmem:[%s11784_s26 + $0x16e8] sm:$0xf] }
 0x205   : >> { %1844 = vst [vmem:[%s11780_s22 + $0x16e0] sm:$0xf] %v1843_v28  ;;  %1846 = vst [vmem:[%s11780_s22 + $0x16e8] sm:$0xf] %v1845_v29  ;;  %v1849_v31 = vld [vmem:[%s11784_s26 + $0x16ec] sm:$0xf] }
 0x206   : >> { %1848 = vst [vmem:[%s11780_s22 + $0x16f0] sm:$0xf] %v1847_v30  ;;  %v1851_v32 = vld [vmem:[%s11784_s26 + $0x1700] sm:$0xf]  ;;  %v1853_v33 = vld [vmem:[%s11784_s26 + $0x1704] sm:$0xf] }
 0x207   : >> { %1850 = vst [vmem:[%s11780_s22 + $0x16f8] sm:$0xf] %v1849_v31  ;;  %1852 = vst [vmem:[%s11780_s22 + $0x1700] sm:$0xf] %v1851_v32  ;;  %v1855_v34 = vld [vmem:[%s11784_s26 + $0x1708] sm:$0xf] }
 0x208   : >> { %1854 = vst [vmem:[%s11780_s22 + $0x1708] sm:$0xf] %v1853_v33  ;;  %v1857_v35 = vld [vmem:[%s11784_s26 + $0x170c] sm:$0xf]  ;;  %v1859_v36 = vld [vmem:[%s11784_s26 + $0x1720] sm:$0xf] }
 0x209   : >> { %1856 = vst [vmem:[%s11780_s22 + $0x1710] sm:$0xf] %v1855_v34  ;;  %1858 = vst [vmem:[%s11780_s22 + $0x1718] sm:$0xf] %v1857_v35  ;;  %v1861_v37 = vld [vmem:[%s11784_s26 + $0x1724] sm:$0xf] }
 0x20a   : >> { %1860 = vst [vmem:[%s11780_s22 + $0x1720] sm:$0xf] %v1859_v36  ;;  %v1863_v38 = vld [vmem:[%s11784_s26 + $0x1728] sm:$0xf]  ;;  %v1865_v39 = vld [vmem:[%s11784_s26 + $0x172c] sm:$0xf] }
 0x20b   : >> { %1862 = vst [vmem:[%s11780_s22 + $0x1728] sm:$0xf] %v1861_v37  ;;  %1864 = vst [vmem:[%s11780_s22 + $0x1730] sm:$0xf] %v1863_v38  ;;  %v1867_v40 = vld [vmem:[%s11784_s26 + $0x1740] sm:$0xf] }
 0x20c   : >> { %1866 = vst [vmem:[%s11780_s22 + $0x1738] sm:$0xf] %v1865_v39  ;;  %v1869_v41 = vld [vmem:[%s11784_s26 + $0x1744] sm:$0xf]  ;;  %v1871_v42 = vld [vmem:[%s11784_s26 + $0x1748] sm:$0xf] }
 0x20d   : >> { %1868 = vst [vmem:[%s11780_s22 + $0x1740] sm:$0xf] %v1867_v40  ;;  %1870 = vst [vmem:[%s11780_s22 + $0x1748] sm:$0xf] %v1869_v41  ;;  %v1873_v43 = vld [vmem:[%s11784_s26 + $0x174c] sm:$0xf] }
 0x20e   : >> { %1872 = vst [vmem:[%s11780_s22 + $0x1750] sm:$0xf] %v1871_v42  ;;  %v1875_v44 = vld [vmem:[%s11784_s26 + $0x1760] sm:$0xf]  ;;  %v1877_v45 = vld [vmem:[%s11784_s26 + $0x1764] sm:$0xf] }
 0x20f   : >> { %1874 = vst [vmem:[%s11780_s22 + $0x1758] sm:$0xf] %v1873_v43  ;;  %1876 = vst [vmem:[%s11780_s22 + $0x1760] sm:$0xf] %v1875_v44  ;;  %v1879_v46 = vld [vmem:[%s11784_s26 + $0x1768] sm:$0xf] }
 0x210   : >> { %1878 = vst [vmem:[%s11780_s22 + $0x1768] sm:$0xf] %v1877_v45  ;;  %v1881_v47 = vld [vmem:[%s11784_s26 + $0x176c] sm:$0xf]  ;;  %v1883_v48 = vld [vmem:[%s11784_s26 + $0x1780] sm:$0xf] }
 0x211   : >> { %1880 = vst [vmem:[%s11780_s22 + $0x1770] sm:$0xf] %v1879_v46  ;;  %1882 = vst [vmem:[%s11780_s22 + $0x1778] sm:$0xf] %v1881_v47  ;;  %v1885_v49 = vld [vmem:[%s11784_s26 + $0x1784] sm:$0xf] }
 0x212   : >> { %1884 = vst [vmem:[%s11780_s22 + $0x1780] sm:$0xf] %v1883_v48  ;;  %v1887_v50 = vld [vmem:[%s11784_s26 + $0x1788] sm:$0xf]  ;;  %v1889_v51 = vld [vmem:[%s11784_s26 + $0x178c] sm:$0xf] }
 0x213   : >> { %1886 = vst [vmem:[%s11780_s22 + $0x1788] sm:$0xf] %v1885_v49  ;;  %1888 = vst [vmem:[%s11780_s22 + $0x1790] sm:$0xf] %v1887_v50  ;;  %v1891_v52 = vld [vmem:[%s11784_s26 + $0x17a0] sm:$0xf] }
 0x214   : >> { %1890 = vst [vmem:[%s11780_s22 + $0x1798] sm:$0xf] %v1889_v51  ;;  %v1893_v53 = vld [vmem:[%s11784_s26 + $0x17a4] sm:$0xf]  ;;  %v1895_v54 = vld [vmem:[%s11784_s26 + $0x17a8] sm:$0xf] }
 0x215   : >> { %1892 = vst [vmem:[%s11780_s22 + $0x17a0] sm:$0xf] %v1891_v52  ;;  %1894 = vst [vmem:[%s11780_s22 + $0x17a8] sm:$0xf] %v1893_v53  ;;  %v1897_v55 = vld [vmem:[%s11784_s26 + $0x17ac] sm:$0xf] }
 0x216   : >> { %1896 = vst [vmem:[%s11780_s22 + $0x17b0] sm:$0xf] %v1895_v54  ;;  %v1899_v56 = vld [vmem:[%s11784_s26 + $0x17c0] sm:$0xf]  ;;  %v1901_v57 = vld [vmem:[%s11784_s26 + $0x17c4] sm:$0xf] }
 0x217   : >> { %1898 = vst [vmem:[%s11780_s22 + $0x17b8] sm:$0xf] %v1897_v55  ;;  %1900 = vst [vmem:[%s11780_s22 + $0x17c0] sm:$0xf] %v1899_v56  ;;  %v1903_v58 = vld [vmem:[%s11784_s26 + $0x17c8] sm:$0xf] }
 0x218   : >> { %1902 = vst [vmem:[%s11780_s22 + $0x17c8] sm:$0xf] %v1901_v57  ;;  %v1905_v59 = vld [vmem:[%s11784_s26 + $0x17cc] sm:$0xf]  ;;  %v1907_v60 = vld [vmem:[%s11784_s26 + $0x17e0] sm:$0xf] }
 0x219   : >> { %1904 = vst [vmem:[%s11780_s22 + $0x17d0] sm:$0xf] %v1903_v58  ;;  %1906 = vst [vmem:[%s11780_s22 + $0x17d8] sm:$0xf] %v1905_v59  ;;  %v1909_v61 = vld [vmem:[%s11784_s26 + $0x17e4] sm:$0xf] }
 0x21a   : >> { %1908 = vst [vmem:[%s11780_s22 + $0x17e0] sm:$0xf] %v1907_v60  ;;  %v1911_v62 = vld [vmem:[%s11784_s26 + $0x17e8] sm:$0xf]  ;;  %v1913_v63 = vld [vmem:[%s11784_s26 + $0x17ec] sm:$0xf] }
 0x21b   : >> { %1910 = vst [vmem:[%s11780_s22 + $0x17e8] sm:$0xf] %v1909_v61  ;;  %1912 = vst [vmem:[%s11780_s22 + $0x17f0] sm:$0xf] %v1911_v62  ;;  %v1915_v0 = vld [vmem:[%s11784_s26 + $0x1800] sm:$0xf] }
 0x21c   : >> { %1914 = vst [vmem:[%s11780_s22 + $0x17f8] sm:$0xf] %v1913_v63  ;;  %v1917_v1 = vld [vmem:[%s11784_s26 + $0x1804] sm:$0xf]  ;;  %v1919_v2 = vld [vmem:[%s11784_s26 + $0x1808] sm:$0xf] }
 0x21d   : >> { %1916 = vst [vmem:[%s11780_s22 + $0x1800] sm:$0xf] %v1915_v0  ;;  %1918 = vst [vmem:[%s11780_s22 + $0x1808] sm:$0xf] %v1917_v1  ;;  %v1921_v3 = vld [vmem:[%s11784_s26 + $0x180c] sm:$0xf] }
 0x21e   : >> { %1920 = vst [vmem:[%s11780_s22 + $0x1810] sm:$0xf] %v1919_v2  ;;  %v1923_v4 = vld [vmem:[%s11784_s26 + $0x1820] sm:$0xf]  ;;  %v1925_v5 = vld [vmem:[%s11784_s26 + $0x1824] sm:$0xf] }
 0x21f   : >> { %1922 = vst [vmem:[%s11780_s22 + $0x1818] sm:$0xf] %v1921_v3  ;;  %1924 = vst [vmem:[%s11780_s22 + $0x1820] sm:$0xf] %v1923_v4  ;;  %v1927_v6 = vld [vmem:[%s11784_s26 + $0x1828] sm:$0xf] }
 0x220   : >> { %1926 = vst [vmem:[%s11780_s22 + $0x1828] sm:$0xf] %v1925_v5  ;;  %v1929_v7 = vld [vmem:[%s11784_s26 + $0x182c] sm:$0xf]  ;;  %v1931_v8 = vld [vmem:[%s11784_s26 + $0x1840] sm:$0xf] }
 0x221   : >> { %1928 = vst [vmem:[%s11780_s22 + $0x1830] sm:$0xf] %v1927_v6  ;;  %1930 = vst [vmem:[%s11780_s22 + $0x1838] sm:$0xf] %v1929_v7  ;;  %v1933_v9 = vld [vmem:[%s11784_s26 + $0x1844] sm:$0xf] }
 0x222   : >> { %1932 = vst [vmem:[%s11780_s22 + $0x1840] sm:$0xf] %v1931_v8  ;;  %v1935_v10 = vld [vmem:[%s11784_s26 + $0x1848] sm:$0xf]  ;;  %v1937_v11 = vld [vmem:[%s11784_s26 + $0x184c] sm:$0xf] }
 0x223   : >> { %1934 = vst [vmem:[%s11780_s22 + $0x1848] sm:$0xf] %v1933_v9  ;;  %1936 = vst [vmem:[%s11780_s22 + $0x1850] sm:$0xf] %v1935_v10  ;;  %v1939_v12 = vld [vmem:[%s11784_s26 + $0x1860] sm:$0xf] }
 0x224   : >> { %1938 = vst [vmem:[%s11780_s22 + $0x1858] sm:$0xf] %v1937_v11  ;;  %v1941_v13 = vld [vmem:[%s11784_s26 + $0x1864] sm:$0xf]  ;;  %v1943_v14 = vld [vmem:[%s11784_s26 + $0x1868] sm:$0xf] }
 0x225   : >> { %1940 = vst [vmem:[%s11780_s22 + $0x1860] sm:$0xf] %v1939_v12  ;;  %1942 = vst [vmem:[%s11780_s22 + $0x1868] sm:$0xf] %v1941_v13  ;;  %v1945_v15 = vld [vmem:[%s11784_s26 + $0x186c] sm:$0xf] }
 0x226   : >> { %1944 = vst [vmem:[%s11780_s22 + $0x1870] sm:$0xf] %v1943_v14  ;;  %1946 = vst [vmem:[%s11780_s22 + $0x1878] sm:$0xf] %v1945_v15  ;;  %p1948_p11 = scmp.ge.s32.totalorder %s1947_s30, 2  ;;  %s375_s23 = sadd.s32 1, %s11792_s23  }
 0x227   : >> { %p372_p12 = scmp.ge.s32.totalorder %s375_s23, 2  }
 0x228   : >> { %s14452_s30 = smov (%p1948_p11, %s1947_s30), 0 }
 0x229   : >> { %s10442_s12 = sshll.u32 %s14452_s30, 4  ;;  %s10443_s13 = sshll.u32 %s14452_s30, 2 }
 0x22a   : >> { %s1952_s26 = scalar_lea.vmem %s14423_s7, %s10442_s12   ;;  %s1953_s22 = scalar_lea.vmem [#allocation4], %s10443_s13  }
 0x22b   : >> { %s14437_s19 = smov %s14452_s30  ;;  %374 = sbr.rel (!%p372_p12) target bundleno = 28 (0x1c), region = 279 }
 0x232   : > { %6755 = vsyncadd [#allocation5], 100352  ;;  %s13552_s25 = smov 0  }
 0x233 LB: >> { %v11552_v16 = vld [vmem:[%s14417_s1 + $0x20] sm:$0xff]   ;;  %v11554_v18 = vld [vmem:[%s14417_s1 + $0x28] sm:$0xff]   ;;  %s6762_s26 = smul.u32 24, %s11796_s25  ;;  %v11556_v20 = vld [vmem:[%s14417_s1 + $0x30] sm:$0xff]   ;;  %vm6815_vm0 = vcmask 523264   ;;  %vm7158_vm1 = vcmask 257024   ;;  %s11796_s25 = sphi %s13552_s25, %s6761_s25  }
 0x234   : >> { %v11553_v17 = vld [vmem:[%s14417_s1] sm:$0xff]   ;;  %11083 = vmatprep.subr.bf16.mxu0 %v11552_v16  ;;  %v11555_v19 = vld [vmem:[%s14417_s1 + $0x8] sm:$0xff]   ;;  %v11557_v21 = vld [vmem:[%s14417_s1 + $0x10] sm:$0xff]   ;;  %vm7155_vm2 = vcmask 261120   ;;  %s6761_s25 = sadd.s32 1, %s11796_s25  }
 0x235   : >> { %11095 = vmatprep.subr.bf16.mxu1 %v11553_v17  ;;  %11084 = vmatpush3.bf16.msra.mxu0 %v11552_v16  ;;  %s13579_s19 = scalar_lea.vmem %s11942_s15, %s6762_s26  ;;  %v11558_v22 = vld [vmem:[%s14417_s1 + $0x38] sm:$0xff]   ;;  %v11560_v32 = vld [vmem:[%s14417_s1 + $0x40] sm:$0xff]   ;;  %v11562_v36 = vld [vmem:[%s14417_s1 + $0x48] sm:$0xff]   ;;  %s7154_s23 = scalar_lea.vmem [#allocation2], %s6762_s26 }
 0x236   : >> { %11096 = vmatpush3.bf16.msra.mxu1 %v11553_v17  ;;  %11085 = vmatprep.subr.bf16.mxu0 %v11554_v18  ;;  %v6777_v23 = vld [vmem:[%s13579_s19 + $0x1] sm:$0xff]  ;;  %v6778_v24 = vld [vmem:[%s13579_s19 + $0x9] sm:$0xff]  ;;  %v11559_v26 = vld [vmem:[%s14417_s1 + $0x18] sm:$0xff]   ;;  %p6758_p13 = scmp.ge.s32.totalorder %s6761_s25, 20  }
 0x237   : >> { %11097 = vmatprep.subr.bf16.mxu1 %v11555_v19  ;;  %v6764_v25 = vld [vmem:[%s13579_s19] sm:$0xff]  ;;  %v6780_v27 = vpack.c.bf16 %v6778_v24, %v6777_v23  ;;  %v6765_v28 = vld [vmem:[%s13579_s19 + $0x8] sm:$0xff]  ;;  %v6779_v30 = vld [vmem:[%s13579_s19 + $0x11] sm:$0xf]  ;;  %s13641_s22 = smov (%p6758_p13), 0  }
 0x238   : >> { %v6767_v29 = vpack.c.bf16 %v6765_v28, %v6764_v25  ;;  %v6766_v31 = vld [vmem:[%s13579_s19 + $0x10] sm:$0xf]  ;;  %v11561_v33 = vld [vmem:[%s14417_s1 + $0x60] sm:$0xff]   ;;  %v6781_v34 = vpack.c.bf16 %v6779_v30, %v6779_v30  ;;  %v11563_v37 = vld [vmem:[%s14417_s1 + $0x68] sm:$0xff]  }
 0x239   : >> { %11086 = vmatpush3.bf16.msra.mxu0 %v11554_v18  ;;  %11091 = vmatprep.mubr.msk.bf16.mxu0 %vm6815_vm0, %v6780_v27  ;;  %v6768_v35 = vpack.c.bf16 %v6766_v31, %v6766_v31  ;;  %v10464_v38 = vld [vmem:[%s13579_s19 + $0x18] sm:$0xff]  ;;  %v10465_v39 = vld [vmem:[%s13579_s19 + $0x20] sm:$0xff]  ;;  %v11564_v43 = vld [vmem:[%s14417_s1 + $0x50] sm:$0xff]  }
 0x23a   : >> { %11098 = vmatpush3.bf16.msra.mxu1 %v11555_v19  ;;  %11087 = vmatprep.subr.bf16.mxu0 %v11556_v20  ;;  %v10481_v40 = vld [vmem:[%s13579_s19 + $0x19] sm:$0xff]  ;;  %v6954_v41 = vpack.c.bf16 %v10465_v39, %v10464_v38  ;;  %v10482_v42 = vld [vmem:[%s13579_s19 + $0x21] sm:$0xff]  ;;  %v11565_v45 = vld [vmem:[%s14417_s1 + $0x70] sm:$0xff]  }
 0x23b   : >> { %11099 = vmatprep.subr.bf16.mxu1 %v11557_v21  ;;  %11103 = vmatprep.mubr.msk.bf16.mxu1 %vm6815_vm0, %v6767_v29  ;;  %v7049_v44 = vpack.c.bf16 %v10482_v42, %v10481_v40  ;;  %v11566_v46 = vld [vmem:[%s14417_s1 + $0x58] sm:$0xff]   ;;  %v10466_v48 = vld [vmem:[%s13579_s19 + $0x28] sm:$0xf]  ;;  %v10498_v3 = vld [vmem:[%s14418_s2] ss:$0 sm:$0xff] }
 0x23c   : >> { %v11567_v47 = vld [vmem:[%s14417_s1 + $0x78] sm:$0xff]   ;;  %v10483_v49 = vld [vmem:[%s13579_s19 + $0x29] sm:$0xf]  ;;  %v6955_v50 = vpack.c.bf16 %v10466_v48, %v10466_v48 }
 0x23d   : >> { %11088 = vmatpush3.bf16.msra.mxu0 %v11556_v20  ;;  %v7050_v51 = vpack.c.bf16 %v10483_v49, %v10483_v49 }
 0x23e   : >> { %11100 = vmatpush3.bf16.msra.mxu1 %v11557_v21  ;;  %11089 = vmatprep.subr.bf16.mxu0 %v11558_v22 }
 0x23f   : >> { %11101 = vmatprep.subr.bf16.mxu1 %v11559_v26 }
 0x241   : >> { %11090 = vmatpush3.bf16.msra.mxu0 %v11558_v22 }
 0x242   : >> { %11102 = vmatpush3.bf16.msra.mxu1 %v11559_v26  ;;  %11107 = vmatprep.subr.bf16.mxu0 %v11560_v32 }
 0x243   : >> { %11119 = vmatprep.subr.bf16.mxu1 %v11561_v33 }
 0x244   : >> { %11092 = vmatmul.mubr.msk.bf16.vlgmr.msra.gmra.mrb[0].mxu0 %vm6815_vm0, %v6781_v34 }
 0x245   : >> { %11104 = vmatmul.mubr.msk.bf16.vlgmr.msra.gmra.mrb[0].mxu1 %vm6815_vm0, %v6768_v35  ;;  %11108 = vmatpush3.bf16.msra.mxu0 %v11560_v32 }
 0x246   : >> { %11120 = vmatpush3.bf16.msra.mxu1 %v11561_v33  ;;  %11109 = vmatprep.subr.bf16.mxu0 %v11562_v36 }
 0x247   : >> { %11121 = vmatprep.subr.bf16.mxu1 %v11563_v37  ;;  %11115 = vmatprep.mubr.msk.bf16.mxu0 %vm6815_vm0, %v6954_v41 }
 0x248   : >> { %11127 = vmatprep.mubr.msk.bf16.mxu1 %vm6815_vm0, %v7049_v44 }
 0x249   : >> { %11110 = vmatpush3.bf16.msra.mxu0 %v11562_v36 }
 0x24a   : >> { %11122 = vmatpush3.bf16.msra.mxu1 %v11563_v37  ;;  %11111 = vmatprep.subr.bf16.mxu0 %v11564_v43 }
 0x24b   : >> { %11123 = vmatprep.subr.bf16.mxu1 %v11565_v45 }
 0x24d   : >> { %11112 = vmatpush3.bf16.msra.mxu0 %v11564_v43 }
 0x24e   : >> { %11124 = vmatpush3.bf16.msra.mxu1 %v11565_v45  ;;  %11113 = vmatprep.subr.bf16.mxu0 %v11566_v46 }
 0x24f   : >> { %11125 = vmatprep.subr.bf16.mxu1 %v11567_v47 }
 0x251   : >> { %11114 = vmatpush3.bf16.msra.mxu0 %v11566_v46 }
 0x252   : >> { %11126 = vmatpush3.bf16.msra.mxu1 %v11567_v47 }
 0x254   : >> { %11116 = vmatmul.mubr.msk.bf16.vlgmr.msra.gmra.mrb[4].mxu0 %vm6815_vm0, %v6955_v50 }
 0x255   : >> { %11128 = vmatmul.mubr.msk.bf16.vlgmr.msra.gmra.mrb[4].mxu1 %vm6815_vm0, %v7050_v51 }
 0x317   : >> { %v11093_v52 = vpop.f32.mrb[0].mxu0 }
 0x318   : >> { %v11105_v53 = vpop.f32.mrb[0].mxu1  ;;  %v6856_v54 = vpop.f32.mrb[1].mxu0 }
 0x319   : >> { %v6943_v55 = vadd.f32 %v11105_v53, %v11093_v52  ;;  %v6934_v56 = vpop.f32.mrb[1].mxu1  ;;  %v11094_v57 = vpop.f32.mrb[2].mxu0 }
 0x31a   : >> { %v6935_v58 = vadd.f32 %v6934_v56, %v6856_v54  ;;  %v11106_v59 = vpop.f32.mrb[2].mxu1  ;;  %v6859_v60 = vpop.f32.mrb[3].mxu0 }
 0x31b   : >> { %v6937_v61 = vpop.f32.mrb[3].mxu1 }
 0x31c   : >> { %v6938_v62 = vadd.f32 %v6937_v61, %v6859_v60 }
 0x327   : >> { %v11117_v63 = vpop.f32.mrb[4].mxu0 }
 0x328   : >> { %v7045_v0 = vadd.f32 %v11117_v63, %v6943_v55  ;;  %v11129_v1 = vpop.f32.mrb[4].mxu1  ;;  %v7029_v2 = vpop.f32.mrb[5].mxu0 }
 0x329   : >> { %v7043_v4 = vadd.f32 %v7029_v2, %v6935_v58  ;;  %v7124_v5 = vpop.f32.mrb[5].mxu1  ;;  %v11118_v6 = vpop.f32.mrb[6].mxu0 }
 0x32a   : >> { %v7140_v7 = vadd.f32 %v11129_v1, %v7045_v0  ;;  %v11130_v8 = vpop.f32.mrb[6].mxu1  ;;  %v7032_v9 = vpop.f32.mrb[7].mxu0 }
 0x32b   : >> { %v7138_v10 = vadd.f32 %v7124_v5, %v7043_v4  ;;  %v7044_v11 = vadd.f32 %v7032_v9, %v6938_v62  ;;  %v7127_v12 = vpop.f32.mrb[7].mxu1 }
 0x32c   : >> { %v7150_v13 = vadd.f32 %v10498_v3, %v7140_v7 }
 0x32d   : >> { %v7148_v14 = vadd.f32 %v10498_v3, %v7138_v10  ;;  %v7139_v15 = vadd.f32 %v7127_v12, %v7044_v11  ;;  %6760 = sbr.rel (!%p6758_p13) target bundleno = 563 (0x233), region = 290 }
 0x32e   : >> { %v7153_v16 = vmax.f32 %v7150_v13, 0.0 }
 0x32f   : >> { %v7151_v17 = vmax.f32 %v7148_v14, 0.0  ;;  %v7149_v18 = vadd.f32 %v10498_v3, %v7139_v15 }
 0x330   : >> { %7159 = vst.msk [vmem:[%s7154_s23 + $0x10] sm:$0xf] %vm7158_vm1, %v7153_v16 }
 0x331   : >> { %7156 = vst.msk [vmem:[%s7154_s23] sm:$0xff] %vm7155_vm2, %v7151_v17  ;;  %v7152_v19 = vmax.f32 %v7149_v18, 0.0 }
 0x333   : >> { %7157 = vst.msk [vmem:[%s7154_s23 + $0x8] sm:$0xff] %vm7155_vm2, %v7152_v19 }
 0x334 LB: >> { %v11568_v20 = vld [vmem:[%s14419_s3 + $0x10] sm:$0xff]   ;;  %v11822_v21 = vmov 0.0   ;;  %v11569_v22 = vld [vmem:[%s14419_s3] sm:$0xff]   ;;  %v11570_v23 = vld [vmem:[%s14419_s3 + $0x18] sm:$0xff]   ;;  %vm11823_vm3 = vmmov 0   ;;  %s10500_s14 = smul.u32 48, %s11800_s22  ;;  %s11800_s22 = sphi %s13641_s22, %s7165_s22  }
 0x335   : >> { %11131 = vmatprep.subr.bf16.mxu0 %v11822_v21  ;;  %11139 = vmatprep.subr.bf16.mxu1 %v11822_v21  ;;  %v11571_v24 = vld [vmem:[%s14419_s3 + $0x8] sm:$0xff]   ;;  %v11572_v27 = vld [vmem:[%s14419_s3 + $0x20] sm:$0xff]   ;;  %v11573_v31 = vld [vmem:[%s14419_s3 + $0x30] sm:$0xff]   ;;  %s10647_s25 = sshll.u32 %s11800_s22, 4  ;;  %vm8273_vm4 = vcmask 516096   ;;  %s7165_s22 = sadd.s32 1, %s11800_s22  }
 0x336   : >> { %11132 = vmatpush3.bf16.msra.mxu0 %v11568_v20  ;;  %11135 = vmatprep.mubr.msk.bf16.mxu0 %vm11823_vm3, %v11822_v21  ;;  %s13667_s23 = scalar_lea.vmem [#allocation2], %s10500_s14  ;;  %v11574_v33 = vld [vmem:[%s14419_s3 + $0x28] sm:$0xff]   ;;  %v11575_v36 = vld [vmem:[%s14419_s3 + $0x38] sm:$0xff]   ;;  %v11576_v41 = vld [vmem:[%s14419_s3 + $0x40] sm:$0xff]   ;;  %s8270_s15 = scalar_lea.vmem [#allocation3], %s10647_s25 }
 0x337   : >> { %11140 = vmatpush3.bf16.msra.mxu1 %v11569_v22  ;;  %11133 = vmatprep.subr.bf16.mxu0 %v11822_v21  ;;  %v11577_v42 = vld [vmem:[%s14419_s3 + $0x50] sm:$0xff]   ;;  %v11578_v43 = vld [vmem:[%s14419_s3 + $0x48] sm:$0xff]   ;;  %v11579_v45 = vld [vmem:[%s14419_s3 + $0x58] sm:$0xff]   ;;  %p7162_p0 = scmp.ge.s32.totalorder %s7165_s22, 9  }
 0x338   : >> { %11141 = vmatprep.subr.bf16.mxu1 %v11822_v21  ;;  %11143 = vmatprep.mubr.msk.bf16.mxu1 %vm11823_vm3, %v11822_v21  ;;  %v11580_v50 = vld [vmem:[%s14419_s3 + $0x60] sm:$0xff]   ;;  %v11581_v51 = vld [vmem:[%s14419_s3 + $0x70] sm:$0xff]   ;;  %v11582_v53 = vld [vmem:[%s14419_s3 + $0x68] sm:$0xff]  }
 0x339   : >> { %v11583_v56 = vld [vmem:[%s14419_s3 + $0x78] sm:$0xff]   ;;  %v11584_v61 = vld [vmem:[%s14419_s3 + $0x80] sm:$0xff]   ;;  %v11585_v62 = vld [vmem:[%s14419_s3 + $0x90] sm:$0xff]  }
 0x33a   : >> { %v10502_v25 = vld [vmem:[%s13667_s23 + $0x1] ss:$2 sm:$0xff]  ;;  %v10503_v26 = vld [vmem:[%s13667_s23 + $0x11] ss:$2 sm:$0x1]  ;;  %11134 = vmatpush3.bf16.msra.mxu0 %v11570_v23  ;;  %v11587_v1 = vld [vmem:[%s14419_s3 + $0x98] sm:$0xff]  }
 0x33b   : >> { %v7181_v28 = vpack.c.bf16 %v10503_v26, %v10502_v25  ;;  %v7169_v29 = vld [vmem:[%s13667_s23] ss:$2 sm:$0xff]  ;;  %v10501_v30 = vld [vmem:[%s13667_s23 + $0x10] ss:$2 sm:$0x1]  ;;  %11142 = vmatpush3.bf16.msra.mxu1 %v11571_v24  ;;  %11147 = vmatprep.subr.bf16.mxu0 %v11822_v21  ;;  %v11591_v12 = vld [vmem:[%s14419_s3 + $0xb8] sm:$0xff]  }
 0x33c   : >> { %v7172_v32 = vpack.c.bf16 %v10501_v30, %v7169_v29  ;;  %11155 = vmatprep.subr.bf16.mxu1 %v11822_v21  ;;  %v10514_v34 = vld [vmem:[%s13667_s23 + $0x2] ss:$2 sm:$0xff]  ;;  %v10515_v35 = vld [vmem:[%s13667_s23 + $0x12] ss:$2 sm:$0x1]  ;;  %v11595_v23 = vld [vmem:[%s14419_s3 + $0xd8] sm:$0xff]  }
 0x33d   : >> { %11136 = vmatmul.mubr.msk.bf16.vlgmr.msra.gmra.mrb[0].mxu0 %vm7155_vm2, %v7181_v28  ;;  %v10523_v37 = vld [vmem:[%s13667_s23 + $0x3] ss:$2 sm:$0xff]  ;;  %v10524_v38 = vld [vmem:[%s13667_s23 + $0x13] ss:$2 sm:$0x1]  ;;  %v7304_v39 = vpack.c.bf16 %v10515_v35, %v10514_v34 }
 0x33e   : >> { %11144 = vmatmul.mubr.msk.bf16.vlgmr.msra.gmra.mrb[0].mxu1 %vm7155_vm2, %v7172_v32  ;;  %11148 = vmatpush3.bf16.msra.mxu0 %v11572_v27  ;;  %v7372_v40 = vpack.c.bf16 %v10524_v38, %v10523_v37  ;;  %v10535_v44 = vld [vmem:[%s13667_s23 + $0x28] ss:$2 sm:$0x1]  ;;  %v10544_v46 = vld [vmem:[%s13667_s23 + $0x29] ss:$2 sm:$0x1] }
 0x33f   : >> { %11156 = vmatpush3.bf16.msra.mxu1 %v11573_v31  ;;  %11149 = vmatprep.subr.bf16.mxu0 %v11822_v21  ;;  %v10534_v47 = vld [vmem:[%s13667_s23 + $0x18] ss:$2 sm:$0xff]  ;;  %v10543_v48 = vld [vmem:[%s13667_s23 + $0x19] ss:$2 sm:$0xff]  ;;  %v11586_v63 = vld [vmem:[%s14419_s3 + $0x88] sm:$0xff]  }
 0x340   : >> { %11157 = vmatprep.subr.bf16.mxu1 %v11822_v21  ;;  %11151 = vmatprep.mubr.msk.bf16.mxu0 %vm11823_vm3, %v11822_v21  ;;  %v7442_v49 = vpack.c.bf16 %v10535_v44, %v10534_v47  ;;  %v7510_v52 = vpack.c.bf16 %v10544_v46, %v10543_v48  ;;  %v10552_v54 = vld [vmem:[%s13667_s23 + $0x1a] ss:$2 sm:$0xff]  ;;  %v10553_v55 = vld [vmem:[%s13667_s23 + $0x2a] ss:$2 sm:$0x1]  ;;  %v11589_v7 = vld [vmem:[%s14419_s3 + $0xb0] sm:$0xff]  }
 0x341   : >> { %11159 = vmatprep.mubr.msk.bf16.mxu1 %vm11823_vm3, %v11822_v21  ;;  %v10561_v57 = vld [vmem:[%s13667_s23 + $0x1b] ss:$2 sm:$0xff]  ;;  %v10562_v58 = vld [vmem:[%s13667_s23 + $0x2b] ss:$2 sm:$0x1]  ;;  %v7578_v59 = vpack.c.bf16 %v10553_v55, %v10552_v54  ;;  %v11593_v18 = vld [vmem:[%s14419_s3 + $0xd0] sm:$0xff]  }
 0x342   : >> { %11150 = vmatpush3.bf16.msra.mxu0 %v11574_v33  ;;  %v7646_v60 = vpack.c.bf16 %v10562_v58, %v10561_v57  ;;  %v10573_v0 = vld [vmem:[%s13667_s23 + $0x40] ss:$2 sm:$0x1]  ;;  %v10582_v2 = vld [vmem:[%s13667_s23 + $0x41] ss:$2 sm:$0x1] }
 0x343   : >> { %11158 = vmatpush3.bf16.msra.mxu1 %v11575_v36  ;;  %11163 = vmatprep.subr.bf16.mxu0 %v11822_v21  ;;  %v10572_v3 = vld [vmem:[%s13667_s23 + $0x30] ss:$2 sm:$0xff]  ;;  %v10581_v4 = vld [vmem:[%s13667_s23 + $0x31] ss:$2 sm:$0xff]  ;;  %v11588_v6 = vld [vmem:[%s14419_s3 + $0xa0] sm:$0xff]  }
 0x344   : >> { %11171 = vmatprep.subr.bf16.mxu1 %v11822_v21  ;;  %v7716_v5 = vpack.c.bf16 %v10573_v0, %v10572_v3  ;;  %v7784_v8 = vpack.c.bf16 %v10582_v2, %v10581_v4  ;;  %v11590_v9 = vld [vmem:[%s14419_s3 + $0xa8] sm:$0xff]   ;;  %v10590_v10 = vld [vmem:[%s13667_s23 + $0x32] ss:$2 sm:$0xff]  ;;  %v10591_v11 = vld [vmem:[%s13667_s23 + $0x42] ss:$2 sm:$0x1] }
 0x345   : >> { %11152 = vmatmul.mubr.msk.bf16.vlgmr.msra.gmra.mrb[4].mxu0 %vm7155_vm2, %v7304_v39  ;;  %v10599_v13 = vld [vmem:[%s13667_s23 + $0x33] ss:$2 sm:$0xff]  ;;  %v10600_v14 = vld [vmem:[%s13667_s23 + $0x43] ss:$2 sm:$0x1]  ;;  %v7852_v15 = vpack.c.bf16 %v10591_v11, %v10590_v10  ;;  %v11594_v19 = vld [vmem:[%s14419_s3 + $0xc8] sm:$0xff]  }
 0x346   : >> { %11160 = vmatmul.mubr.msk.bf16.vlgmr.msra.gmra.mrb[4].mxu1 %vm7155_vm2, %v7372_v40  ;;  %11164 = vmatpush3.bf16.msra.mxu0 %v11576_v41  ;;  %v7920_v16 = vpack.c.bf16 %v10600_v14, %v10599_v13  ;;  %v11592_v17 = vld [vmem:[%s14419_s3 + $0xc0] sm:$0xff]   ;;  %v10610_v20 = vld [vmem:[%s13667_s23 + $0x48] ss:$2 sm:$0xff]  ;;  %v10611_v22 = vld [vmem:[%s13667_s23 + $0x58] ss:$2 sm:$0x1] }
 0x347   : >> { %11172 = vmatpush3.bf16.msra.mxu1 %v11577_v42  ;;  %11165 = vmatprep.subr.bf16.mxu0 %v11822_v21  ;;  %v10619_v24 = vld [vmem:[%s13667_s23 + $0x49] ss:$2 sm:$0xff]  ;;  %v10620_v25 = vld [vmem:[%s13667_s23 + $0x59] ss:$2 sm:$0x1]  ;;  %v7990_v26 = vpack.c.bf16 %v10611_v22, %v10610_v20  ;;  %v11596_v28 = vld [vmem:[%s14419_s3 + $0xe0] sm:$0xff]  }
 0x348   : >> { %11173 = vmatprep.subr.bf16.mxu1 %v11822_v21  ;;  %11167 = vmatprep.mubr.msk.bf16.mxu0 %vm11823_vm3, %v11822_v21  ;;  %v8058_v27 = vpack.c.bf16 %v10620_v25, %v10619_v24  ;;  %v11597_v29 = vld [vmem:[%s14419_s3 + $0xf0] sm:$0xff]   ;;  %v11598_v30 = vld [vmem:[%s14419_s3 + $0xe8] sm:$0xff]   ;;  %v10629_v32 = vld [vmem:[%s13667_s23 + $0x5a] ss:$2 sm:$0x1] }
 0x349   : >> { %11175 = vmatprep.mubr.msk.bf16.mxu1 %vm11823_vm3, %v11822_v21  ;;  %v10628_v31 = vld [vmem:[%s13667_s23 + $0x4a] ss:$2 sm:$0xff]  ;;  %v10637_v34 = vld [vmem:[%s13667_s23 + $0x4b] ss:$2 sm:$0xff] }
 0x34a   : >> { %11166 = vmatpush3.bf16.msra.mxu0 %v11578_v43  ;;  %v11599_v33 = vld [vmem:[%s14419_s3 + $0xf8] sm:$0xff]   ;;  %v8126_v36 = vpack.c.bf16 %v10629_v32, %v10628_v31 }
 0x34b   : >> { %11174 = vmatpush3.bf16.msra.mxu1 %v11579_v45  ;;  %11179 = vmatprep.subr.bf16.mxu0 %v11822_v21  ;;  %v10638_v35 = vld [vmem:[%s13667_s23 + $0x5b] ss:$2 sm:$0x1] }
 0x34c   : >> { %11187 = vmatprep.subr.bf16.mxu1 %v11822_v21  ;;  %v8194_v37 = vpack.c.bf16 %v10638_v35, %v10637_v34 }
 0x34d   : >> { %11168 = vmatmul.mubr.msk.bf16.vlgmr.msra.gmra.mrb[8].mxu0 %vm7155_vm2, %v7442_v49 }
 0x34e   : >> { %11176 = vmatmul.mubr.msk.bf16.vlgmr.msra.gmra.mrb[8].mxu1 %vm7155_vm2, %v7510_v52  ;;  %11180 = vmatpush3.bf16.msra.mxu0 %v11580_v50 }
 0x34f   : >> { %11188 = vmatpush3.bf16.msra.mxu1 %v11581_v51  ;;  %11181 = vmatprep.subr.bf16.mxu0 %v11822_v21 }
 0x350   : >> { %11189 = vmatprep.subr.bf16.mxu1 %v11822_v21  ;;  %11183 = vmatprep.mubr.msk.bf16.mxu0 %vm11823_vm3, %v11822_v21 }
 0x351   : >> { %11191 = vmatprep.mubr.msk.bf16.mxu1 %vm11823_vm3, %v11822_v21 }
 0x352   : >> { %11182 = vmatpush3.bf16.msra.mxu0 %v11582_v53 }
 0x353   : >> { %11190 = vmatpush3.bf16.msra.mxu1 %v11583_v56  ;;  %11195 = vmatprep.subr.bf16.mxu0 %v11822_v21 }
 0x354   : >> { %11203 = vmatprep.subr.bf16.mxu1 %v11822_v21 }
 0x355   : >> { %11184 = vmatmul.mubr.msk.bf16.vlgmr.msra.gmra.mrb[12].mxu0 %vm7155_vm2, %v7578_v59 }
 0x356   : >> { %11192 = vmatmul.mubr.msk.bf16.vlgmr.msra.gmra.mrb[12].mxu1 %vm7155_vm2, %v7646_v60  ;;  %11196 = vmatpush3.bf16.msra.mxu0 %v11584_v61 }
 0x357   : >> { %11204 = vmatpush3.bf16.msra.mxu1 %v11585_v62  ;;  %11197 = vmatprep.subr.bf16.mxu0 %v11822_v21 }
 0x358   : >> { %11205 = vmatprep.subr.bf16.mxu1 %v11822_v21  ;;  %11199 = vmatprep.mubr.msk.bf16.mxu0 %vm11823_vm3, %v11822_v21 }
 0x359   : >> { %11207 = vmatprep.mubr.msk.bf16.mxu1 %vm11823_vm3, %v11822_v21 }
 0x35a   : >> { %11198 = vmatpush3.bf16.msra.mxu0 %v11586_v63 }
 0x35b   : >> { %11206 = vmatpush3.bf16.msra.mxu1 %v11587_v1  ;;  %11211 = vmatprep.subr.bf16.mxu0 %v11822_v21 }
 0x35c   : >> { %11219 = vmatprep.subr.bf16.mxu1 %v11822_v21 }
 0x35d   : >> { %11200 = vmatmul.mubr.msk.bf16.vlgmr.msra.gmra.mrb[16].mxu0 %vm7155_vm2, %v7716_v5 }
 0x35e   : >> { %11208 = vmatmul.mubr.msk.bf16.vlgmr.msra.gmra.mrb[16].mxu1 %vm7155_vm2, %v7784_v8  ;;  %11212 = vmatpush3.bf16.msra.mxu0 %v11588_v6 }
 0x35f   : >> { %11220 = vmatpush3.bf16.msra.mxu1 %v11589_v7  ;;  %11213 = vmatprep.subr.bf16.mxu0 %v11822_v21 }
 0x360   : >> { %11221 = vmatprep.subr.bf16.mxu1 %v11822_v21  ;;  %11215 = vmatprep.mubr.msk.bf16.mxu0 %vm11823_vm3, %v11822_v21 }
 0x361   : >> { %11223 = vmatprep.mubr.msk.bf16.mxu1 %vm11823_vm3, %v11822_v21 }
 0x362   : >> { %11214 = vmatpush3.bf16.msra.mxu0 %v11590_v9 }
 0x363   : >> { %11222 = vmatpush3.bf16.msra.mxu1 %v11591_v12  ;;  %11227 = vmatprep.subr.bf16.mxu0 %v11822_v21 }
 0x364   : >> { %11235 = vmatprep.subr.bf16.mxu1 %v11822_v21 }
 0x365   : >> { %11216 = vmatmul.mubr.msk.bf16.vlgmr.msra.gmra.mrb[20].mxu0 %vm7155_vm2, %v7852_v15 }
 0x366   : >> { %11224 = vmatmul.mubr.msk.bf16.vlgmr.msra.gmra.mrb[20].mxu1 %vm7155_vm2, %v7920_v16  ;;  %11228 = vmatpush3.bf16.msra.mxu0 %v11592_v17 }
 0x367   : >> { %11236 = vmatpush3.bf16.msra.mxu1 %v11593_v18  ;;  %11229 = vmatprep.subr.bf16.mxu0 %v11822_v21 }
 0x368   : >> { %11237 = vmatprep.subr.bf16.mxu1 %v11822_v21  ;;  %11231 = vmatprep.mubr.msk.bf16.mxu0 %vm11823_vm3, %v11822_v21 }
 0x369   : >> { %11239 = vmatprep.mubr.msk.bf16.mxu1 %vm11823_vm3, %v11822_v21 }
 0x36a   : >> { %11230 = vmatpush3.bf16.msra.mxu0 %v11594_v19 }
 0x36b   : >> { %11238 = vmatpush3.bf16.msra.mxu1 %v11595_v23  ;;  %11243 = vmatprep.subr.bf16.mxu0 %v11822_v21 }
 0x36c   : >> { %11251 = vmatprep.subr.bf16.mxu1 %v11822_v21 }
 0x36d   : >> { %11232 = vmatmul.mubr.msk.bf16.vlgmr.msra.gmra.mrb[24].mxu0 %vm7155_vm2, %v7990_v26 }
 0x36e   : >> { %11240 = vmatmul.mubr.msk.bf16.vlgmr.msra.gmra.mrb[24].mxu1 %vm7155_vm2, %v8058_v27  ;;  %11244 = vmatpush3.bf16.msra.mxu0 %v11596_v28 }
 0x36f   : >> { %11252 = vmatpush3.bf16.msra.mxu1 %v11597_v29  ;;  %11245 = vmatprep.subr.bf16.mxu0 %v11822_v21 }
 0x370   : >> { %11253 = vmatprep.subr.bf16.mxu1 %v11822_v21  ;;  %11247 = vmatprep.mubr.msk.bf16.mxu0 %vm11823_vm3, %v11822_v21 }
 0x371   : >> { %11255 = vmatprep.mubr.msk.bf16.mxu1 %vm11823_vm3, %v11822_v21 }
 0x372   : >> { %11246 = vmatpush3.bf16.msra.mxu0 %v11598_v30 }
 0x373   : >> { %11254 = vmatpush3.bf16.msra.mxu1 %v11599_v33 }
 0x375   : >> { %11248 = vmatmul.mubr.msk.bf16.vlgmr.msra.gmra.mrb[28].mxu0 %vm7155_vm2, %v8126_v36 }
 0x376   : >> { %11256 = vmatmul.mubr.msk.bf16.vlgmr.msra.gmra.mrb[28].mxu1 %vm7155_vm2, %v8194_v37 }
 0x410   : >> { %v7237_v38 = vpop.f32.mrb[0].mxu0 }
 0x411   : >> { %v7293_v39 = vpop.f32.mrb[0].mxu1  ;;  %v11137_v40 = vpop.f32.mrb[1].mxu0 }
 0x412   : >> { %v7294_v41 = vadd.f32 %v7293_v39, %v7237_v38  ;;  %v11145_v42 = vpop.f32.mrb[1].mxu1  ;;  %v7240_v43 = vpop.f32.mrb[2].mxu0 }
 0x413   : >> { %v7296_v44 = vpop.f32.mrb[2].mxu1  ;;  %v11138_v45 = vpop.f32.mrb[3].mxu0 }
 0x414   : >> { %v7297_v46 = vadd.f32 %v7296_v44, %v7240_v43  ;;  %v11146_v47 = vpop.f32.mrb[3].mxu1 }
 0x418   : >> { %v7359_v48 = vpop.f32.mrb[4].mxu0 }
 0x419   : >> { %v7366_v21 = vadd.f32 %v7359_v48, %v7294_v41  ;;  %v7427_v49 = vpop.f32.mrb[4].mxu1  ;;  %v11153_v50 = vpop.f32.mrb[5].mxu0 }
 0x41a   : >> { %v11161_v51 = vpop.f32.mrb[5].mxu1  ;;  %v7362_v52 = vpop.f32.mrb[6].mxu0 }
 0x41b   : >> { %v7434_v53 = vadd.f32 %v7427_v49, %v7366_v21  ;;  %v7367_v54 = vadd.f32 %v7362_v52, %v7297_v46  ;;  %v7430_v55 = vpop.f32.mrb[6].mxu1  ;;  %v11154_v56 = vpop.f32.mrb[7].mxu0 }
 0x41c   : >> { %v11162_v57 = vpop.f32.mrb[7].mxu1 }
 0x41d   : >> { %v7435_v58 = vadd.f32 %v7430_v55, %v7367_v54 }
 0x420   : >> { %v7497_v59 = vpop.f32.mrb[8].mxu0 }
 0x421   : >> { %v7504_v60 = vadd.f32 %v7497_v59, %v7434_v53  ;;  %v7565_v61 = vpop.f32.mrb[8].mxu1  ;;  %v11169_v62 = vpop.f32.mrb[9].mxu0  ;;  %v10646_v59 = vld [vmem:[%s14420_s4] ss:$0 sm:$0xff] }
 0x422   : >> { %v11177_v63 = vpop.f32.mrb[9].mxu1  ;;  %v7500_v0 = vpop.f32.mrb[10].mxu0 }
 0x423   : >> { %v7572_v1 = vadd.f32 %v7565_v61, %v7504_v60  ;;  %v7505_v2 = vadd.f32 %v7500_v0, %v7435_v58  ;;  %v7568_v3 = vpop.f32.mrb[10].mxu1  ;;  %v11170_v4 = vpop.f32.mrb[11].mxu0 }
 0x424   : >> { %v11178_v5 = vpop.f32.mrb[11].mxu1 }
 0x425   : >> { %v7573_v6 = vadd.f32 %v7568_v3, %v7505_v2 }
 0x428   : >> { %v7633_v7 = vpop.f32.mrb[12].mxu0 }
 0x429   : >> { %v7640_v8 = vadd.f32 %v7633_v7, %v7572_v1  ;;  %v7701_v9 = vpop.f32.mrb[12].mxu1  ;;  %v11185_v10 = vpop.f32.mrb[13].mxu0 }
 0x42a   : >> { %v11193_v11 = vpop.f32.mrb[13].mxu1  ;;  %v7636_v12 = vpop.f32.mrb[14].mxu0 }
 0x42b   : >> { %v7708_v13 = vadd.f32 %v7701_v9, %v7640_v8  ;;  %v7641_v14 = vadd.f32 %v7636_v12, %v7573_v6  ;;  %v7704_v15 = vpop.f32.mrb[14].mxu1  ;;  %v11186_v16 = vpop.f32.mrb[15].mxu0 }
 0x42c   : >> { %v11194_v17 = vpop.f32.mrb[15].mxu1 }
 0x42d   : >> { %v7709_v18 = vadd.f32 %v7704_v15, %v7641_v14 }
 0x430   : >> { %v7771_v19 = vpop.f32.mrb[16].mxu0 }
 0x431   : >> { %v7778_v20 = vadd.f32 %v7771_v19, %v7708_v13  ;;  %v7839_v22 = vpop.f32.mrb[16].mxu1  ;;  %v11201_v23 = vpop.f32.mrb[17].mxu0 }
 0x432   : >> { %v11209_v24 = vpop.f32.mrb[17].mxu1  ;;  %v7774_v25 = vpop.f32.mrb[18].mxu0 }
 0x433   : >> { %v7846_v26 = vadd.f32 %v7839_v22, %v7778_v20  ;;  %v7779_v27 = vadd.f32 %v7774_v25, %v7709_v18  ;;  %v7842_v28 = vpop.f32.mrb[18].mxu1  ;;  %v11202_v29 = vpop.f32.mrb[19].mxu0 }
 0x434   : >> { %v11210_v30 = vpop.f32.mrb[19].mxu1 }
 0x435   : >> { %v7847_v31 = vadd.f32 %v7842_v28, %v7779_v27 }
 0x438   : >> { %v7907_v32 = vpop.f32.mrb[20].mxu0 }
 0x439   : >> { %v7914_v33 = vadd.f32 %v7907_v32, %v7846_v26  ;;  %v7975_v34 = vpop.f32.mrb[20].mxu1  ;;  %v11217_v35 = vpop.f32.mrb[21].mxu0 }
 0x43a   : >> { %v11225_v36 = vpop.f32.mrb[21].mxu1  ;;  %v7910_v37 = vpop.f32.mrb[22].mxu0 }
 0x43b   : >> { %v7982_v38 = vadd.f32 %v7975_v34, %v7914_v33  ;;  %v7915_v39 = vadd.f32 %v7910_v37, %v7847_v31  ;;  %v7978_v40 = vpop.f32.mrb[22].mxu1  ;;  %v11218_v41 = vpop.f32.mrb[23].mxu0 }
 0x43c   : >> { %v11226_v42 = vpop.f32.mrb[23].mxu1 }
 0x43d   : >> { %v7983_v43 = vadd.f32 %v7978_v40, %v7915_v39 }
 0x440   : >> { %v8045_v44 = vpop.f32.mrb[24].mxu0 }
 0x441   : >> { %v8052_v45 = vadd.f32 %v8045_v44, %v7982_v38  ;;  %v8113_v46 = vpop.f32.mrb[24].mxu1  ;;  %v11233_v47 = vpop.f32.mrb[25].mxu0 }
 0x442   : >> { %v11241_v48 = vpop.f32.mrb[25].mxu1  ;;  %v8048_v21 = vpop.f32.mrb[26].mxu0 }
 0x443   : >> { %v8120_v49 = vadd.f32 %v8113_v46, %v8052_v45  ;;  %v8053_v50 = vadd.f32 %v8048_v21, %v7983_v43  ;;  %v8116_v51 = vpop.f32.mrb[26].mxu1  ;;  %v11234_v52 = vpop.f32.mrb[27].mxu0 }
 0x444   : >> { %v11242_v53 = vpop.f32.mrb[27].mxu1 }
 0x445   : >> { %v8121_v54 = vadd.f32 %v8116_v51, %v8053_v50 }
 0x448   : >> { %v8181_v55 = vpop.f32.mrb[28].mxu0 }
 0x449   : >> { %v8188_v56 = vadd.f32 %v8181_v55, %v8120_v49  ;;  %v8249_v57 = vpop.f32.mrb[28].mxu1  ;;  %v11249_v58 = vpop.f32.mrb[29].mxu0 }
 0x44a   : >> { %v11257_v60 = vpop.f32.mrb[29].mxu1  ;;  %v8184_v61 = vpop.f32.mrb[30].mxu0 }
 0x44b   : >> { %v8256_v62 = vadd.f32 %v8249_v57, %v8188_v56  ;;  %v8189_v63 = vadd.f32 %v8184_v61, %v8121_v54  ;;  %v8252_v0 = vpop.f32.mrb[30].mxu1  ;;  %v11250_v1 = vpop.f32.mrb[31].mxu0 }
 0x44c   : >> { %v11258_v2 = vpop.f32.mrb[31].mxu1 }
 0x44d   : >> { %v8265_v3 = vadd.f32 %v10646_v59, %v8256_v62  ;;  %v8257_v4 = vadd.f32 %v8252_v0, %v8189_v63  ;;  %7164 = sbr.rel (!%p7162_p0) target bundleno = 820 (0x334), region = 301 }
 0x44f   : >> { %v8267_v5 = vmax.f32 %v8265_v3, 0.0  ;;  %v8266_v6 = vadd.f32 %v10646_v59, %v8257_v4 }
 0x451   : >> { %8272 = vst.msk [vmem:[%s8270_s15] sm:$0xff] %vm6815_vm0, %v8267_v5  ;;  %v8268_v7 = vmax.f32 %v8266_v6, 0.0 }
 0x453   : >> { %8274 = vst.msk [vmem:[%s8270_s15 + $0x8] sm:$0x1] %vm8273_vm4, %v8268_v7 }
 0x454   : > { %11756 = dma.done.wait [#allocation5], 100352 }
 0x455   : > { %11757 = vsyncadd [#allocation5], 4294866944  ;;  %v13865_v8 = vmov 0.0   ;;  %v13867_v9 = vmov 0.0   ;;  %v13869_v10 = vmov 0.0   ;;  %v13871_v11 = vmov 0.0  }
 0x456   : > { %s13873_s13 = smov 0  }
 0x457 LB: >> { %v11600_v12 = vld [vmem:[%s14421_s5 + $0x20] sm:$0xff]   ;;  %v11824_v13 = vmov 0.0   ;;  %v11602_v15 = vld [vmem:[%s14421_s5 + $0x28] sm:$0xff]   ;;  %vm11825_vm5 = vmmov 0   ;;  %s10648_s25 = sshll.u32 %s11820_s13, 4  ;;  %v11604_v17 = vld [vmem:[%s14421_s5 + $0x30] sm:$0xff]   ;;  %s11820_s13 = sphi %s13873_s13, %s8285_s13   ;;  %v11816_v11 = vphi %v13871_v11, %v14445_v11   ;;  %v11812_v10 = vphi %v13869_v10, %v14444_v10   ;;  %v11808_v9 = vphi %v13867_v9, %v14443_v9   ;;  %v11804_v8 = vphi %v13865_v8, %v14442_v8  }
 0x458   : >> { %11259 = vmatprep.subr.bf16.mxu0 %v11824_v13  ;;  %11271 = vmatprep.subr.bf16.mxu1 %v11824_v13  ;;  %v11601_v14 = vld [vmem:[%s14421_s5] sm:$0xff]   ;;  %v11603_v16 = vld [vmem:[%s14421_s5 + $0x8] sm:$0xff]   ;;  %v11605_v18 = vld [vmem:[%s14421_s5 + $0x10] sm:$0xff]   ;;  %s13925_s12 = scalar_lea.vmem [#allocation3], %s10648_s25  ;;  %s10921_s25 = smul.u32 896, %s11820_s13 }
 0x459   : >> { %11260 = vmatpush3.bf16.msra.mxu0 %v11600_v12  ;;  %11267 = vmatprep.mubr.msk.bf16.mxu0 %vm11825_vm5, %v11824_v13  ;;  %v11606_v19 = vld [vmem:[%s14421_s5 + $0x38] sm:$0xff]   ;;  %v11608_v26 = vld [vmem:[%s14421_s5 + $0x40] sm:$0xff]   ;;  %v11610_v28 = vld [vmem:[%s14421_s5 + $0x48] sm:$0xff]   ;;  %s8285_s13 = sadd.s32 1, %s11820_s13  }
 0x45a   : >> { %11272 = vmatpush3.bf16.msra.mxu1 %v11601_v14  ;;  %11261 = vmatprep.subr.bf16.mxu0 %v11824_v13  ;;  %v11607_v20 = vld [vmem:[%s14421_s5 + $0x18] sm:$0xff]   ;;  %v8302_v22 = vld [vmem:[%s13925_s12 + $0x1] sm:$0x7f]  ;;  %v11611_v29 = vld [vmem:[%s14421_s5 + $0x68] sm:$0xff]   ;;  %s14074_s14 = scalar_lea.vmem [#allocation4], %s10921_s25  ;;  %p8282_p1 = scmp.ge.s32.totalorder %s8285_s13, 7  }
 0x45b   : >> { %11273 = vmatprep.subr.bf16.mxu1 %v11824_v13  ;;  %11279 = vmatprep.mubr.msk.bf16.mxu1 %vm11825_vm5, %v11824_v13  ;;  %v8292_v23 = vld [vmem:[%s13925_s12] sm:$0x7f]  ;;  %v8303_v24 = vpack.c.bf16 %v8302_v22, %v8302_v22  ;;  %v11612_v30 = vld [vmem:[%s14421_s5 + $0x50] sm:$0xff]   ;;  %v11614_v32 = vld [vmem:[%s14421_s5 + $0x58] sm:$0xff]   ;;  %s10917_s24 = sshll.u32 (%p8282_p1), %s11909_s21, 4  ;;  %s10173_s23 = sshll.u32 (%p8282_p1), %s11946_s16, 4  ;;  %s14373_s23 = int_to_ptr.vmem [resolvable:$true] %s10173_s23 }
 0x45c   : >> { %v8293_v25 = vpack.c.bf16 %v8292_v23, %v8292_v23  ;;  %v11609_v27 = vld [vmem:[%s14421_s5 + $0x60] sm:$0xff]   ;;  %v11613_v31 = vld [vmem:[%s14421_s5 + $0x70] sm:$0xff]   ;;  %v11615_v33 = vld [vmem:[%s14421_s5 + $0x78] sm:$0xff]   ;;  %s14371_s25 = scalar_lea.hbm (%p8282_p1), %s14427_s11, %s10917_s24  ;;  %s11668_s13 = scalar_lea.vmem (%p8282_p1), %s14373_s23, 16 }
 0x45d   : >> { %11262 = vmatpush3.bf16.msra.mxu0 %v11602_v15  ;;  %v8448_v34 = vld [vmem:[%s13925_s12 + $0x2] sm:$0x7f]  ;;  %v10681_v35 = vld [vmem:[%s13925_s12 + $0x10] sm:$0x7f]  ;;  %v11622_v44 = vld [vmem:[%s14421_s5 + $0x98] sm:$0xff]   ;;  %p11669_p2 = scmp.ne.s32.totalorder (%p8282_p1), %s14373_s23, %s11668_s13  ;;  %s11827_s21 = smov (%p8282_p1), [#allocation6]  }
 0x45e   : >> { %11274 = vmatpush3.bf16.msra.mxu1 %v11603_v16  ;;  %11263 = vmatprep.subr.bf16.mxu0 %v11824_v13  ;;  %v8449_v36 = vpack.c.bf16 %v8448_v34, %v8448_v34  ;;  %v11616_v37 = vld [vmem:[%s14421_s5 + $0x80] sm:$0xff]   ;;  %v8531_v38 = vpack.c.bf16 %v10681_v35, %v10681_v35  ;;  %v11618_v40 = vld [vmem:[%s14421_s5 + $0x88] sm:$0xff]   ;;  %v11620_v42 = vld [vmem:[%s14421_s5 + $0x90] sm:$0xff]  }
 0x45f   : >> { %11275 = vmatprep.subr.bf16.mxu1 %v11824_v13  ;;  %v11617_v39 = vld [vmem:[%s14421_s5 + $0xa0] sm:$0xff]   ;;  %v11619_v41 = vld [vmem:[%s14421_s5 + $0xa8] sm:$0xff]   ;;  %v11621_v43 = vld [vmem:[%s14421_s5 + $0xb0] sm:$0xff]   ;;  %p11670_p3 = pnand (%p8282_p1), %p11669_p2, %p11926_p5 }
 0x460   : >> { %v10695_v45 = vld [vmem:[%s13925_s12 + $0x11] sm:$0x7f]  ;;  %v11623_v46 = vld [vmem:[%s14421_s5 + $0xb8] sm:$0xff]   ;;  %v11624_v21 = vld [vmem:[%s14421_s5 + $0xc0] sm:$0xff]  }
 0x461   : >> { %11264 = vmatpush3.bf16.msra.mxu0 %v11604_v17  ;;  %v10709_v47 = vld [vmem:[%s13925_s12 + $0x12] sm:$0x7f]  ;;  %v8610_v48 = vpack.c.bf16 %v10695_v45, %v10695_v45  ;;  %v11625_v50 = vld [vmem:[%s14421_s5 + $0xe0] sm:$0xff]   ;;  %v11626_v51 = vld [vmem:[%s14421_s5 + $0xc8] sm:$0xff]   ;;  %p11671_p4 = pneg (%p8282_p1), %p11670_p3 }
 0x462   : >> { %11276 = vmatpush3.bf16.msra.mxu1 %v11605_v18  ;;  %11265 = vmatprep.subr.bf16.mxu0 %v11824_v13  ;;  %v8689_v49 = vpack.c.bf16 %v10709_v47, %v10709_v47  ;;  %v11627_v52 = vld [vmem:[%s14421_s5 + $0xe8] sm:$0xff]   ;;  %v11628_v53 = vld [vmem:[%s14421_s5 + $0xd0] sm:$0xff]   ;;  %v11630_v55 = vld [vmem:[%s14421_s5 + $0xd8] sm:$0xff]  }
 0x463   : >> { %11277 = vmatprep.subr.bf16.mxu1 %v11824_v13  ;;  %v11629_v54 = vld [vmem:[%s14421_s5 + $0xf0] sm:$0xff]   ;;  %v10724_v56 = vld [vmem:[%s13925_s12 + $0x20] sm:$0x7f]  ;;  %v11631_v57 = vld [vmem:[%s14421_s5 + $0xf8] sm:$0xff]  }
 0x464   : >> { %v10738_v58 = vld [vmem:[%s13925_s12 + $0x21] sm:$0x7f]  ;;  %v8771_v59 = vpack.c.bf16 %v10724_v56, %v10724_v56  ;;  %v11633_v62 = vld [vmem:[%s14421_s5 + $0x108] sm:$0xff]   ;;  %v11634_v63 = vld [vmem:[%s14421_s5 + $0x110] sm:$0xff]  }
 0x465   : >> { %11266 = vmatpush3.bf16.msra.mxu0 %v11606_v19  ;;  %v11632_v60 = vld [vmem:[%s14421_s5 + $0x100] sm:$0xff]   ;;  %v8850_v61 = vpack.c.bf16 %v10738_v58, %v10738_v58  ;;  %v11635_v0 = vld [vmem:[%s14421_s5 + $0x118] sm:$0xff]   ;;  %v9022_v3 = vld [vmem:[%s14074_s14 + $0x8] sm:$0xff] }
 0x466   : >> { %11278 = vmatpush3.bf16.msra.mxu1 %v11607_v20  ;;  %11283 = vmatprep.subr.bf16.mxu0 %v11824_v13  ;;  %v10752_v1 = vld [vmem:[%s13925_s12 + $0x22] sm:$0x7f]  ;;  %v9024_v4 = vld [vmem:[%s14074_s14 + $0x18] sm:$0xff]  ;;  %v9023_v6 = vld [vmem:[%s14074_s14 + $0x10] sm:$0xff]  ;;  %s11672_s12 = sshll.u32 (%p8282_p1), %s11827_s21, 4  ;;  %s11673_s12 = int_to_ptr.vmem [resolvable:$false] %s11672_s12 }
 0x467   : >> { %11295 = vmatprep.subr.bf16.mxu1 %v11824_v13  ;;  %v8929_v2 = vpack.c.bf16 %v10752_v1, %v10752_v1  ;;  %v9021_v5 = vld [vmem:[%s14074_s14] sm:$0xff]  ;;  %v9026_v7 = vld [vmem:[%s14074_s14 + $0x28] sm:$0xff]  ;;  %v9028_v12 = vld [vmem:[%s14074_s14 + $0x38] sm:$0xff]  ;;  %s11674_s19 = scalar_lea.vmem (%p8282_p1), %s11673_s12, 32  ;;  %p11675_p7 = scmp.lt.s32.totalorder (%p8282_p1), %s14373_s23, %s11673_s12 }
 0x468   : >> { %11268 = vmatmul.mubr.msk.bf16.vlgmr.msra.gmra.mrb[0].mxu0 %vm6815_vm0, %v8303_v24  ;;  %v9027_v14 = vld [vmem:[%s14074_s14 + $0x30] sm:$0xff]  ;;  %v9030_v15 = vld [vmem:[%s14074_s14 + $0x48] sm:$0xff]  ;;  %v9032_v16 = vld [vmem:[%s14074_s14 + $0x58] sm:$0xff]  ;;  %p11676_p8 = scmp.lt.s32.totalorder (%p8282_p1), %s11674_s19, %s11668_s13 }
 0x469   : >> { %11280 = vmatmul.mubr.msk.bf16.vlgmr.msra.gmra.mrb[0].mxu1 %vm6815_vm0, %v8293_v25  ;;  %11284 = vmatpush3.bf16.msra.mxu0 %v11608_v26  ;;  %v9029_v17 = vld [vmem:[%s14074_s14 + $0x40] sm:$0xff]  ;;  %v9031_v18 = vld [vmem:[%s14074_s14 + $0x50] sm:$0xff]  ;;  %v9034_v19 = vld [vmem:[%s14074_s14 + $0x68] sm:$0xff]  ;;  %v11826_v26 = vmov 0  }
 0x46a   : >> { %11296 = vmatpush3.bf16.msra.mxu1 %v11609_v27  ;;  %11285 = vmatprep.subr.bf16.mxu0 %v11824_v13  ;;  %v9036_v20 = vld [vmem:[%s14074_s14 + $0x78] sm:$0xff]  ;;  %v9033_v22 = vld [vmem:[%s14074_s14 + $0x60] sm:$0xff]  ;;  %v9035_v23 = vld [vmem:[%s14074_s14 + $0x70] sm:$0xff]  ;;  %p11677_p9 = por (%p8282_p1), %p11676_p8, %p11675_p7 }
 0x46b   : >> { %11297 = vmatprep.subr.bf16.mxu1 %v11824_v13  ;;  %11291 = vmatprep.mubr.msk.bf16.mxu0 %vm11825_vm5, %v11824_v13  ;;  %v10773_v24 = vld [vmem:[%s14074_s14 + $0x88] sm:$0xff]  ;;  %v10775_v25 = vld [vmem:[%s14074_s14 + $0x98] sm:$0xff] }
 0x46c   : >> { %11303 = vmatprep.mubr.msk.bf16.mxu1 %vm11825_vm5, %v11824_v13  ;;  %p11678_p10 = pnand (%p8282_p1), %p11677_p9, %p11671_p4 }
 0x46d   : >> { %11286 = vmatpush3.bf16.msra.mxu0 %v11610_v28 }
 0x46e   : >> { %11298 = vmatpush3.bf16.msra.mxu1 %v11611_v29  ;;  %11287 = vmatprep.subr.bf16.mxu0 %v11824_v13 }
 0x46f   : >> { %11299 = vmatprep.subr.bf16.mxu1 %v11824_v13 }
 0x471   : >> { %11288 = vmatpush3.bf16.msra.mxu0 %v11612_v30 }
 0x472   : >> { %11300 = vmatpush3.bf16.msra.mxu1 %v11613_v31  ;;  %11289 = vmatprep.subr.bf16.mxu0 %v11824_v13 }
 0x473   : >> { %11301 = vmatprep.subr.bf16.mxu1 %v11824_v13 }
 0x475   : >> { %11290 = vmatpush3.bf16.msra.mxu0 %v11614_v32 }
 0x476   : >> { %11302 = vmatpush3.bf16.msra.mxu1 %v11615_v33  ;;  %11307 = vmatprep.subr.bf16.mxu0 %v11824_v13 }
 0x477   : >> { %11319 = vmatprep.subr.bf16.mxu1 %v11824_v13 }
 0x478   : >> { %11292 = vmatmul.mubr.msk.bf16.vlgmr.msra.gmra.mrb[4].mxu0 %vm6815_vm0, %v8449_v36 }
 0x479   : >> { %11308 = vmatpush3.bf16.msra.mxu0 %v11616_v37  ;;  %11304 = vmatmul.mubr.msk.bf16.vlgmr.msra.gmra.mrb[4].mxu1 %vm6815_vm0, %v8531_v38 }
 0x47a   : >> { %11320 = vmatpush3.bf16.msra.mxu1 %v11617_v39  ;;  %11309 = vmatprep.subr.bf16.mxu0 %v11824_v13 }
 0x47b   : >> { %11321 = vmatprep.subr.bf16.mxu1 %v11824_v13  ;;  %11315 = vmatprep.mubr.msk.bf16.mxu0 %vm11825_vm5, %v11824_v13 }
 0x47c   : >> { %11327 = vmatprep.mubr.msk.bf16.mxu1 %vm11825_vm5, %v11824_v13 }
 0x47d   : >> { %11310 = vmatpush3.bf16.msra.mxu0 %v11618_v40 }
 0x47e   : >> { %11322 = vmatpush3.bf16.msra.mxu1 %v11619_v41  ;;  %11311 = vmatprep.subr.bf16.mxu0 %v11824_v13 }
 0x47f   : >> { %11323 = vmatprep.subr.bf16.mxu1 %v11824_v13 }
 0x481   : >> { %11312 = vmatpush3.bf16.msra.mxu0 %v11620_v42 }
 0x482   : >> { %11324 = vmatpush3.bf16.msra.mxu1 %v11621_v43  ;;  %11313 = vmatprep.subr.bf16.mxu0 %v11824_v13 }
 0x483   : >> { %11325 = vmatprep.subr.bf16.mxu1 %v11824_v13 }
 0x485   : >> { %11314 = vmatpush3.bf16.msra.mxu0 %v11622_v44 }
 0x486   : >> { %11326 = vmatpush3.bf16.msra.mxu1 %v11623_v46  ;;  %11331 = vmatprep.subr.bf16.mxu0 %v11824_v13 }
 0x487   : >> { %11343 = vmatprep.subr.bf16.mxu1 %v11824_v13 }
 0x488   : >> { %11316 = vmatmul.mubr.msk.bf16.vlgmr.msra.gmra.mrb[8].mxu0 %vm6815_vm0, %v8610_v48 }
 0x489   : >> { %11332 = vmatpush3.bf16.msra.mxu0 %v11624_v21  ;;  %11328 = vmatmul.mubr.msk.bf16.vlgmr.msra.gmra.mrb[8].mxu1 %vm6815_vm0, %v8689_v49 }
 0x48a   : >> { %11344 = vmatpush3.bf16.msra.mxu1 %v11625_v50  ;;  %11333 = vmatprep.subr.bf16.mxu0 %v11824_v13 }
 0x48b   : >> { %11345 = vmatprep.subr.bf16.mxu1 %v11824_v13  ;;  %11339 = vmatprep.mubr.msk.bf16.mxu0 %vm11825_vm5, %v11824_v13 }
 0x48c   : >> { %11351 = vmatprep.mubr.msk.bf16.mxu1 %vm11825_vm5, %v11824_v13 }
 0x48d   : >> { %11334 = vmatpush3.bf16.msra.mxu0 %v11626_v51 }
 0x48e   : >> { %11346 = vmatpush3.bf16.msra.mxu1 %v11627_v52  ;;  %11335 = vmatprep.subr.bf16.mxu0 %v11824_v13 }
 0x48f   : >> { %11347 = vmatprep.subr.bf16.mxu1 %v11824_v13 }
 0x491   : >> { %11336 = vmatpush3.bf16.msra.mxu0 %v11628_v53 }
 0x492   : >> { %11348 = vmatpush3.bf16.msra.mxu1 %v11629_v54  ;;  %11337 = vmatprep.subr.bf16.mxu0 %v11824_v13 }
 0x493   : >> { %11349 = vmatprep.subr.bf16.mxu1 %v11824_v13 }
 0x495   : >> { %11338 = vmatpush3.bf16.msra.mxu0 %v11630_v55 }
 0x496   : >> { %11350 = vmatpush3.bf16.msra.mxu1 %v11631_v57  ;;  %11355 = vmatprep.subr.bf16.mxu0 %v11824_v13 }
 0x497   : >> { %9040 = vmatprep.subr.bf16.mxu1 %v9022_v3 }
 0x498   : >> { %11340 = vmatmul.mubr.msk.bf16.vlgmr.msra.gmra.mrb[12].mxu0 %vm6815_vm0, %v8771_v59 }
 0x499   : >> { %11356 = vmatpush3.bf16.msra.mxu0 %v11632_v60  ;;  %11352 = vmatmul.mubr.msk.bf16.vlgmr.msra.gmra.mrb[12].mxu1 %vm6815_vm0, %v8850_v61 }
 0x49a   : >> { %11357 = vmatprep.subr.bf16.mxu0 %v11824_v13  ;;  %11363 = vmatprep.mubr.msk.bf16.mxu0 %vm11825_vm5, %v11824_v13 }
 0x49b   : >> { %9041 = vmatpush1.bf16.msra.mxu1 %v9021_v5  ;;  %9072 = vmatprep.mubr.bf16.mxu1 %v11826_v26 }
 0x49c   : >> { %9042 = vmatprep.subr.bf16.mxu1 %v9026_v7 }
 0x49d   : >> { %11358 = vmatpush3.bf16.msra.mxu0 %v11633_v62 }
 0x49e   : >> { %11359 = vmatprep.subr.bf16.mxu0 %v11824_v13 }
 0x4a1   : >> { %11360 = vmatpush3.bf16.msra.mxu0 %v11634_v63 }
 0x4a2   : >> { %11361 = vmatprep.subr.bf16.mxu0 %v11824_v13  ;;  %v9025_v13 = vld [vmem:[%s14074_s14 + $0x20] sm:$0xff] }
 0x4a3   : >> { %9043 = vmatpush1.bf16.msra.mxu1 %v9025_v13 }
 0x4a4   : >> { %9044 = vmatprep.subr.bf16.mxu1 %v9030_v15  ;;  %v10774_v15 = vld [vmem:[%s14074_s14 + $0x90] sm:$0xff] }
 0x4a5   : >> { %11362 = vmatpush3.bf16.msra.mxu0 %v11635_v0 }
 0x4a6   : >> { %9081 = vmatprep.subr.bf16.mxu0 %v9024_v4 }
 0x4a7   : >> { %9045 = vmatpush1.bf16.msra.mxu1 %v9029_v17  ;;  %v10779_v17 = vld [vmem:[%s14074_s14 + $0xb8] sm:$0xff] }
 0x4a8   : >> { %11364 = vmatmul.mubr.msk.bf16.vlgmr.msra.gmra.mrb[16].mxu0 %vm6815_vm0, %v8929_v2  ;;  %9046 = vmatprep.subr.bf16.mxu1 %v9034_v19  ;;  %v10766_v2 = vld [vmem:[%s14422_s6] ss:$0 sm:$0xff]  ;;  %v10778_v19 = vld [vmem:[%s14074_s14 + $0xb0] sm:$0xff] }
 0x4a9   : >> { %9082 = vmatpush1.bf16.msra.mxu0 %v9023_v6  ;;  %9113 = vmatprep.mubr.bf16.mxu0 %v11826_v26 }
 0x4aa   : >> { %9083 = vmatprep.subr.bf16.mxu0 %v9028_v12 }
 0x4ab   : >> { %9047 = vmatpush1.bf16.msra.mxu1 %v9033_v22  ;;  %v10783_v22 = vld [vmem:[%s14074_s14 + $0xd8] sm:$0xff] }
 0x4ac   : >> { %9151 = vmatprep.subr.bf16.mxu1 %v10773_v24  ;;  %v10782_v24 = vld [vmem:[%s14074_s14 + $0xd0] sm:$0xff] }
 0x4ad   : >> { %9084 = vmatpush1.bf16.msra.mxu0 %v9027_v14  ;;  %v10772_v14 = vld [vmem:[%s14074_s14 + $0x80] sm:$0xff] }
 0x4ae   : >> { %9085 = vmatprep.subr.bf16.mxu0 %v9032_v16  ;;  %v10777_v16 = vld [vmem:[%s14074_s14 + $0xa8] sm:$0xff] }
 0x4b1   : >> { %9086 = vmatpush1.bf16.msra.mxu0 %v9031_v18  ;;  %v10776_v18 = vld [vmem:[%s14074_s14 + $0xa0] sm:$0xff] }
 0x4b2   : >> { %9087 = vmatprep.subr.bf16.mxu0 %v9036_v20  ;;  %v10781_v20 = vld [vmem:[%s14074_s14 + $0xc8] sm:$0xff] }
 0x4b5   : >> { %9088 = vmatpush1.bf16.msra.mxu0 %v9035_v23  ;;  %v10780_v23 = vld [vmem:[%s14074_s14 + $0xc0] sm:$0xff] }
 0x4b6   : >> { %9192 = vmatprep.subr.bf16.mxu0 %v10775_v25  ;;  %v10785_v25 = vld [vmem:[%s14074_s14 + $0xe8] sm:$0xff] }
 0x53b   : >> { %v8375_v27 = vpop.f32.mrb[0].mxu0 }
 0x53c   : >> { %v11269_v28 = vpop.f32.mrb[1].mxu0  ;;  %v8442_v29 = vpop.f32.mrb[0].mxu1 }
 0x53d   : >> { %v8443_v30 = vadd.f32 %v8442_v29, %v8375_v27  ;;  %v8378_v31 = vpop.f32.mrb[2].mxu0  ;;  %v11281_v32 = vpop.f32.mrb[1].mxu1  ;;  %v10787_v27 = vld [vmem:[%s14074_s14 + $0xf8] sm:$0xff]  ;;  %v10784_v28 = vld [vmem:[%s14074_s14 + $0xe0] sm:$0xff]  ;;  %v10786_v29 = vld [vmem:[%s14074_s14 + $0xf0] sm:$0xff] }
 0x53e   : >> { %v11270_v33 = vpop.f32.mrb[3].mxu0  ;;  %v8445_v34 = vpop.f32.mrb[2].mxu1  ;;  %v10794_v31 = vld [vmem:[%s14074_s14 + $0x118] sm:$0xff] }
 0x53f   : >> { %v11282_v35 = vpop.f32.mrb[3].mxu1  ;;  %v10791_v33 = vld [vmem:[%s14074_s14 + $0x100] sm:$0xff]  ;;  %v10793_v34 = vld [vmem:[%s14074_s14 + $0x110] sm:$0xff] }
 0x540   : >> { %v10796_v35 = vld [vmem:[%s14074_s14 + $0x128] sm:$0xff] }
 0x54b   : >> { %v8520_v36 = vpop.f32.mrb[4].mxu0 }
 0x54c   : >> { %v8526_v37 = vadd.f32 %v8520_v36, %v8443_v30  ;;  %v11293_v38 = vpop.f32.mrb[5].mxu0  ;;  %v8602_v39 = vpop.f32.mrb[4].mxu1  ;;  %v10792_v30 = vld [vmem:[%s14074_s14 + $0x108] sm:$0xff]  ;;  %v10798_v36 = vld [vmem:[%s14074_s14 + $0x138] sm:$0xff] }
 0x54d   : >> { %v8523_v40 = vpop.f32.mrb[6].mxu0  ;;  %v11305_v41 = vpop.f32.mrb[5].mxu1  ;;  %v10797_v38 = vld [vmem:[%s14074_s14 + $0x130] sm:$0xff] }
 0x54e   : >> { %v8608_v42 = vadd.f32 %v8602_v39, %v8526_v37  ;;  %v11294_v43 = vpop.f32.mrb[7].mxu0  ;;  %v8605_v44 = vpop.f32.mrb[6].mxu1  ;;  %v10795_v37 = vld [vmem:[%s14074_s14 + $0x120] sm:$0xff]  ;;  %v10800_v39 = vld [vmem:[%s14074_s14 + $0x148] sm:$0xff]  ;;  %v10802_v40 = vld [vmem:[%s14074_s14 + $0x158] sm:$0xff] }
 0x54f   : >> { %v11306_v45 = vpop.f32.mrb[7].mxu1  ;;  %v10799_v41 = vld [vmem:[%s14074_s14 + $0x140] sm:$0xff]  ;;  %v10804_v43 = vld [vmem:[%s14074_s14 + $0x168] sm:$0xff]  ;;  %v10806_v44 = vld [vmem:[%s14074_s14 + $0x178] sm:$0xff] }
 0x550   : >> { %v10803_v45 = vld [vmem:[%s14074_s14 + $0x160] sm:$0xff] }
 0x55b   : >> { %v8681_v46 = vpop.f32.mrb[8].mxu0 }
 0x55c   : >> { %v8687_v47 = vadd.f32 %v8681_v46, %v8608_v42  ;;  %v11317_v48 = vpop.f32.mrb[9].mxu0  ;;  %v8760_v21 = vpop.f32.mrb[8].mxu1  ;;  %v10801_v42 = vld [vmem:[%s14074_s14 + $0x150] sm:$0xff] }
 0x55d   : >> { %v8684_v49 = vpop.f32.mrb[10].mxu0  ;;  %v11329_v50 = vpop.f32.mrb[9].mxu1  ;;  %v10805_v46 = vld [vmem:[%s14074_s14 + $0x170] sm:$0xff]  ;;  %v10813_v48 = vld [vmem:[%s14074_s14 + $0x198] sm:$0xff] }
 0x55e   : >> { %v8766_v51 = vadd.f32 %v8760_v21, %v8687_v47  ;;  %v11318_v52 = vpop.f32.mrb[11].mxu0  ;;  %v8763_v53 = vpop.f32.mrb[10].mxu1  ;;  %v10811_v47 = vld [vmem:[%s14074_s14 + $0x188] sm:$0xff]  ;;  %v10810_v49 = vld [vmem:[%s14074_s14 + $0x180] sm:$0xff]  ;;  %v10812_v50 = vld [vmem:[%s14074_s14 + $0x190] sm:$0xff] }
 0x55f   : >> { %v11330_v54 = vpop.f32.mrb[11].mxu1  ;;  %v10817_v52 = vld [vmem:[%s14074_s14 + $0x1b8] sm:$0xff]  ;;  %v10814_v53 = vld [vmem:[%s14074_s14 + $0x1a0] sm:$0xff] }
 0x560   : >> { %v10816_v54 = vld [vmem:[%s14074_s14 + $0x1b0] sm:$0xff] }
 0x56b   : >> { %v8842_v55 = vpop.f32.mrb[12].mxu0 }
 0x56c   : >> { %v8848_v56 = vadd.f32 %v8842_v55, %v8766_v51  ;;  %v11341_v57 = vpop.f32.mrb[13].mxu0  ;;  %v8921_v58 = vpop.f32.mrb[12].mxu1  ;;  %v10815_v51 = vld [vmem:[%s14074_s14 + $0x1a8] sm:$0xff] }
 0x56d   : >> { %v8845_v59 = vpop.f32.mrb[14].mxu0  ;;  %v11353_v60 = vpop.f32.mrb[13].mxu1  ;;  %v10819_v55 = vld [vmem:[%s14074_s14 + $0x1c8] sm:$0xff]  ;;  %v10818_v57 = vld [vmem:[%s14074_s14 + $0x1c0] sm:$0xff] }
 0x56e   : >> { %v8927_v61 = vadd.f32 %v8921_v58, %v8848_v56  ;;  %v11342_v62 = vpop.f32.mrb[15].mxu0  ;;  %v8924_v63 = vpop.f32.mrb[14].mxu1  ;;  %v10821_v56 = vld [vmem:[%s14074_s14 + $0x1d8] sm:$0xff]  ;;  %v10820_v58 = vld [vmem:[%s14074_s14 + $0x1d0] sm:$0xff]  ;;  %v10823_v59 = vld [vmem:[%s14074_s14 + $0x1e8] sm:$0xff] }
 0x56f   : >> { %v11354_v0 = vpop.f32.mrb[15].mxu1  ;;  %v10825_v60 = vld [vmem:[%s14074_s14 + $0x1f8] sm:$0xff]  ;;  %v10824_v62 = vld [vmem:[%s14074_s14 + $0x1f0] sm:$0xff]  ;;  %v10830_v63 = vld [vmem:[%s14074_s14 + $0x208] sm:$0xff] }
 0x570   : >> { %v10832_v0 = vld [vmem:[%s14074_s14 + $0x218] sm:$0xff] }
 0x57b   : >> { %v9000_v1 = vpop.f32.mrb[16].mxu0 }
 0x57c   : >> { %v9006_v3 = vadd.f32 %v9000_v1, %v8927_v61  ;;  %v11365_v4 = vpop.f32.mrb[17].mxu0  ;;  %v10822_v61 = vld [vmem:[%s14074_s14 + $0x1e0] sm:$0xff] }
 0x57d   : >> { %v9003_v5 = vpop.f32.mrb[18].mxu0  ;;  %v10834_v4 = vld [vmem:[%s14074_s14 + $0x228] sm:$0xff] }
 0x57e   : >> { %v9014_v6 = vadd.f32 %v10766_v2, %v9006_v3  ;;  %v11366_v7 = vpop.f32.mrb[19].mxu0  ;;  %v10829_v2 = vld [vmem:[%s14074_s14 + $0x200] sm:$0xff]  ;;  %v10831_v3 = vld [vmem:[%s14074_s14 + $0x210] sm:$0xff]  ;;  %v10836_v5 = vld [vmem:[%s14074_s14 + $0x238] sm:$0xff] }
 0x57f   : >> { %v10835_v7 = vld [vmem:[%s14074_s14 + $0x230] sm:$0xff] }
 0x580   : >> { %v9015_v12 = vmax.f32 %v9014_v6, 0.0  ;;  %v10833_v6 = vld [vmem:[%s14074_s14 + $0x220] sm:$0xff] }
 0x582   : >> { %v14099_v13 = vpack.c.bf16 %v9015_v12, %v9015_v12  ;;  %v10838_v12 = vld [vmem:[%s14074_s14 + $0x248] sm:$0xff] }
 0x584   : >> { %10769 = vmatmul.mubr.msk.bf16.vlgmr.msra.gmra.mrb[16].mxu1 %vm6815_vm0, %v14099_v13  ;;  %10770 = vmatmul.mubr.msk.bf16.vlgmr.msra.gmra.mrb[20].mxu0 %vm6815_vm0, %v14099_v13  ;;  %v14124_v32 = vshrl.u32 %v14099_v13, 16  ;;  %v9258_v21 = vrot.slane %v14099_v13, 1 }
 0x585   : >> { %9152 = vmatpush1.bf16.msra.mxu1 %v10772_v14  ;;  %9193 = vmatpush1.bf16.msra.mxu0 %v10774_v15  ;;  %v10840_v14 = vld [vmem:[%s14074_s14 + $0x258] sm:$0xff]  ;;  %v10837_v15 = vld [vmem:[%s14074_s14 + $0x240] sm:$0xff] }
 0x586   : >> { %9153 = vmatprep.subr.bf16.mxu1 %v10777_v16  ;;  %9194 = vmatprep.subr.bf16.mxu0 %v10779_v17  ;;  %v9368_v1 = vrot.slane %v14124_v32, 1  ;;  %v10839_v16 = vld [vmem:[%s14074_s14 + $0x250] sm:$0xff]  ;;  %v10842_v17 = vld [vmem:[%s14074_s14 + $0x268] sm:$0xff] }
 0x587   : >> { %9183 = vmatprep.mubr.bf16.mxu1 %v11826_v26  ;;  %9224 = vmatprep.mubr.bf16.mxu0 %v11826_v26 }
 0x589   : >> { %9154 = vmatpush1.bf16.msra.mxu1 %v10776_v18  ;;  %9195 = vmatpush1.bf16.msra.mxu0 %v10778_v19  ;;  %v10844_v18 = vld [vmem:[%s14074_s14 + $0x278] sm:$0xff]  ;;  %v10841_v19 = vld [vmem:[%s14074_s14 + $0x260] sm:$0xff] }
 0x58a   : >> { %9155 = vmatprep.subr.bf16.mxu1 %v10781_v20  ;;  %9196 = vmatprep.subr.bf16.mxu0 %v10783_v22  ;;  %v10843_v20 = vld [vmem:[%s14074_s14 + $0x270] sm:$0xff]  ;;  %v10849_v22 = vld [vmem:[%s14074_s14 + $0x288] sm:$0xff] }
 0x58d   : >> { %9156 = vmatpush1.bf16.msra.mxu1 %v10780_v23  ;;  %9197 = vmatpush1.bf16.msra.mxu0 %v10782_v24  ;;  %v10851_v23 = vld [vmem:[%s14074_s14 + $0x298] sm:$0xff]  ;;  %v9478_v24 = vrot.slane %v14099_v13, 2 }
 0x58e   : >> { %9157 = vmatprep.subr.bf16.mxu1 %v10785_v25  ;;  %9198 = vmatprep.subr.bf16.mxu0 %v10787_v27  ;;  %v10848_v25 = vld [vmem:[%s14074_s14 + $0x280] sm:$0xff]  ;;  %v10850_v27 = vld [vmem:[%s14074_s14 + $0x290] sm:$0xff] }
 0x591   : >> { %9158 = vmatpush1.bf16.msra.mxu1 %v10784_v28  ;;  %9199 = vmatpush1.bf16.msra.mxu0 %v10786_v29  ;;  %v10853_v28 = vld [vmem:[%s14074_s14 + $0x2a8] sm:$0xff]  ;;  %v10855_v29 = vld [vmem:[%s14074_s14 + $0x2b8] sm:$0xff] }
 0x592   : >> { %9262 = vmatprep.subr.bf16.mxu1 %v10792_v30  ;;  %9303 = vmatprep.subr.bf16.mxu0 %v10794_v31  ;;  %v10852_v30 = vld [vmem:[%s14074_s14 + $0x2a0] sm:$0xff]  ;;  %v10854_v31 = vld [vmem:[%s14074_s14 + $0x2b0] sm:$0xff] }
 0x594   : >> { %10788 = vmatmul.mubr.msk.bf16.vlgmr.msra.gmra.mrb[16].mxu1 %vm6815_vm0, %v14124_v32  ;;  %10789 = vmatmul.mubr.msk.bf16.vlgmr.msra.gmra.mrb[20].mxu0 %vm6815_vm0, %v14124_v32 }
 0x595   : >> { %9263 = vmatpush1.bf16.msra.mxu1 %v10791_v33  ;;  %9304 = vmatpush1.bf16.msra.mxu0 %v10793_v34  ;;  %v10857_v33 = vld [vmem:[%s14074_s14 + $0x2c8] sm:$0xff]  ;;  %v10859_v34 = vld [vmem:[%s14074_s14 + $0x2d8] sm:$0xff] }
 0x596   : >> { %9264 = vmatprep.subr.bf16.mxu1 %v10796_v35  ;;  %9305 = vmatprep.subr.bf16.mxu0 %v10798_v36  ;;  %v10856_v35 = vld [vmem:[%s14074_s14 + $0x2c0] sm:$0xff]  ;;  %v10858_v36 = vld [vmem:[%s14074_s14 + $0x2d0] sm:$0xff] }
 0x597   : >> { %9294 = vmatprep.mubr.bf16.mxu1 %v11826_v26  ;;  %9335 = vmatprep.mubr.bf16.mxu0 %v11826_v26 }
 0x599   : >> { %9265 = vmatpush1.bf16.msra.mxu1 %v10795_v37  ;;  %9306 = vmatpush1.bf16.msra.mxu0 %v10797_v38  ;;  %v10861_v37 = vld [vmem:[%s14074_s14 + $0x2e8] sm:$0xff]  ;;  %v10863_v38 = vld [vmem:[%s14074_s14 + $0x2f8] sm:$0xff] }
 0x59a   : >> { %9266 = vmatprep.subr.bf16.mxu1 %v10800_v39  ;;  %9307 = vmatprep.subr.bf16.mxu0 %v10802_v40  ;;  %v10860_v39 = vld [vmem:[%s14074_s14 + $0x2e0] sm:$0xff]  ;;  %v10862_v40 = vld [vmem:[%s14074_s14 + $0x2f0] sm:$0xff] }
 0x59d   : >> { %9267 = vmatpush1.bf16.msra.mxu1 %v10799_v41  ;;  %9308 = vmatpush1.bf16.msra.mxu0 %v10801_v42  ;;  %v10868_v41 = vld [vmem:[%s14074_s14 + $0x308] sm:$0xff]  ;;  %v10870_v42 = vld [vmem:[%s14074_s14 + $0x318] sm:$0xff] }
 0x59e   : >> { %9268 = vmatprep.subr.bf16.mxu1 %v10804_v43  ;;  %9309 = vmatprep.subr.bf16.mxu0 %v10806_v44  ;;  %v9588_v43 = vrot.slane %v14124_v32, 2  ;;  %v10867_v44 = vld [vmem:[%s14074_s14 + $0x300] sm:$0xff] }
 0x59f   : >> { %v10871_v32 = vld [vmem:[%s14074_s14 + $0x320] sm:$0xff] }
 0x5a1   : >> { %9269 = vmatpush1.bf16.msra.mxu1 %v10803_v45  ;;  %9310 = vmatpush1.bf16.msra.mxu0 %v10805_v46  ;;  %v10869_v45 = vld [vmem:[%s14074_s14 + $0x310] sm:$0xff]  ;;  %v10872_v46 = vld [vmem:[%s14074_s14 + $0x328] sm:$0xff] }
 0x5a2   : >> { %9372 = vmatprep.subr.bf16.mxu1 %v10811_v47  ;;  %9413 = vmatprep.subr.bf16.mxu0 %v10813_v48  ;;  %v10874_v47 = vld [vmem:[%s14074_s14 + $0x338] sm:$0xff]  ;;  %v10873_v48 = vld [vmem:[%s14074_s14 + $0x330] sm:$0xff] }
 0x5a4   : >> { %10807 = vmatmul.mubr.msk.bf16.vlgmr.msra.gmra.mrb[16].mxu1 %vm6815_vm0, %v9258_v21  ;;  %10808 = vmatmul.mubr.msk.bf16.vlgmr.msra.gmra.mrb[20].mxu0 %vm6815_vm0, %v9258_v21  ;;  %v10876_v21 = vld [vmem:[%s14074_s14 + $0x348] sm:$0xff] }
 0x5a5   : >> { %9373 = vmatpush1.bf16.msra.mxu1 %v10810_v49  ;;  %9414 = vmatpush1.bf16.msra.mxu0 %v10812_v50  ;;  %v10878_v49 = vld [vmem:[%s14074_s14 + $0x358] sm:$0xff]  ;;  %v10875_v50 = vld [vmem:[%s14074_s14 + $0x340] sm:$0xff] }
 0x5a6   : >> { %9374 = vmatprep.subr.bf16.mxu1 %v10815_v51  ;;  %9415 = vmatprep.subr.bf16.mxu0 %v10817_v52  ;;  %v10877_v51 = vld [vmem:[%s14074_s14 + $0x350] sm:$0xff]  ;;  %v10880_v52 = vld [vmem:[%s14074_s14 + $0x368] sm:$0xff] }
 0x5a7   : >> { %9404 = vmatprep.mubr.bf16.mxu1 %v11826_v26  ;;  %9445 = vmatprep.mubr.bf16.mxu0 %v11826_v26 }
 0x5a9   : >> { %9375 = vmatpush1.bf16.msra.mxu1 %v10814_v53  ;;  %9416 = vmatpush1.bf16.msra.mxu0 %v10816_v54  ;;  %v10882_v53 = vld [vmem:[%s14074_s14 + $0x378] sm:$0xff]  ;;  %v10879_v54 = vld [vmem:[%s14074_s14 + $0x360] sm:$0xff] }
 0x5aa   : >> { %9376 = vmatprep.subr.bf16.mxu1 %v10819_v55  ;;  %9417 = vmatprep.subr.bf16.mxu0 %v10821_v56  ;;  %v10881_v55 = vld [vmem:[%s14074_s14 + $0x370] sm:$0xff]  ;;  %v9698_v56 = vrot.slane %v14099_v13, 3  ;;  %s10161_s14 = scalar_lea.sflag (%p8282_p1), [#allocation7], %s351_s29 }
 0x5ad   : >> { %9377 = vmatpush1.bf16.msra.mxu1 %v10818_v57  ;;  %9418 = vmatpush1.bf16.msra.mxu0 %v10820_v58 }
 0x5ae   : >> { %9378 = vmatprep.subr.bf16.mxu1 %v10823_v59  ;;  %9419 = vmatprep.subr.bf16.mxu0 %v10825_v60 }
 0x5b1   : >> { %9379 = vmatpush1.bf16.msra.mxu1 %v10822_v61  ;;  %9420 = vmatpush1.bf16.msra.mxu0 %v10824_v62 }
 0x5b2   : >> { %9482 = vmatprep.subr.bf16.mxu1 %v10830_v63  ;;  %9523 = vmatprep.subr.bf16.mxu0 %v10832_v0 }
 0x5b4   : >> { %10826 = vmatmul.mubr.msk.bf16.vlgmr.msra.gmra.mrb[16].mxu1 %vm6815_vm0, %v9368_v1  ;;  %10827 = vmatmul.mubr.msk.bf16.vlgmr.msra.gmra.mrb[20].mxu0 %vm6815_vm0, %v9368_v1 }
 0x5b5   : >> { %9483 = vmatpush1.bf16.msra.mxu1 %v10829_v2  ;;  %9524 = vmatpush1.bf16.msra.mxu0 %v10831_v3  ;;  %v11637_v3 = vld [vmem:[%s14425_s9 + $0xc0] sm:$0xff] (%p8282_p1)  }
 0x5b6   : >> { %9484 = vmatprep.subr.bf16.mxu1 %v10834_v4  ;;  %9525 = vmatprep.subr.bf16.mxu0 %v10836_v5  ;;  %v11638_v4 = vld [vmem:[%s14425_s9] sm:$0xff] (%p8282_p1)  }
 0x5b7   : >> { %9514 = vmatprep.mubr.bf16.mxu1 %v11826_v26  ;;  %9555 = vmatprep.mubr.bf16.mxu0 %v11826_v26  ;;  %v11639_v5 = vld [vmem:[%s14425_s9 + $0x80] sm:$0xff] (%p8282_p1)  }
 0x5b9   : >> { %9485 = vmatpush1.bf16.msra.mxu1 %v10833_v6  ;;  %9526 = vmatpush1.bf16.msra.mxu0 %v10835_v7  ;;  %v11643_v6 = vld [vmem:[%s14425_s9 + $0x88] sm:$0xff] (%p8282_p1)   ;;  %v11644_v7 = vld [vmem:[%s14425_s9 + $0x50] sm:$0xff] (%p8282_p1)  }
 0x5ba   : >> { %9486 = vmatprep.subr.bf16.mxu1 %v10838_v12  ;;  %9527 = vmatprep.subr.bf16.mxu0 %v10840_v14  ;;  %v11645_v12 = vld [vmem:[%s14425_s9 + $0xd0] sm:$0xff] (%p8282_p1)  }
 0x5bb   : > { %v11646_v14 = vld [vmem:[%s14425_s9 + $0x10] sm:$0xff] (%p8282_p1)  }
 0x5bd   : >> { %9487 = vmatpush1.bf16.msra.mxu1 %v10837_v15  ;;  %9528 = vmatpush1.bf16.msra.mxu0 %v10839_v16  ;;  %v11647_v15 = vld [vmem:[%s14425_s9 + $0x90] sm:$0xff] (%p8282_p1)   ;;  %v11648_v16 = vld [vmem:[%s14425_s9 + $0x58] sm:$0xff] (%p8282_p1)  }
 0x5be   : >> { %9488 = vmatprep.subr.bf16.mxu1 %v10842_v17  ;;  %9529 = vmatprep.subr.bf16.mxu0 %v10844_v18  ;;  %v11649_v17 = vld [vmem:[%s14425_s9 + $0xd8] sm:$0xff] (%p8282_p1)  }
 0x5bf   : > { %v11650_v18 = vld [vmem:[%s14425_s9 + $0x18] sm:$0xff] (%p8282_p1)  }
 0x5c1   : >> { %9489 = vmatpush1.bf16.msra.mxu1 %v10841_v19  ;;  %9530 = vmatpush1.bf16.msra.mxu0 %v10843_v20  ;;  %v11651_v19 = vld [vmem:[%s14425_s9 + $0x98] sm:$0xff] (%p8282_p1)   ;;  %v11652_v20 = vld [vmem:[%s14425_s9 + $0x60] sm:$0xff] (%p8282_p1)  }
 0x5c2   : >> { %9592 = vmatprep.subr.bf16.mxu1 %v10849_v22  ;;  %9633 = vmatprep.subr.bf16.mxu0 %v10851_v23  ;;  %v11653_v22 = vld [vmem:[%s14425_s9 + $0xe0] sm:$0xff] (%p8282_p1)  }
 0x5c3   : > { %v11654_v23 = vld [vmem:[%s14425_s9 + $0x20] sm:$0xff] (%p8282_p1)  }
 0x5c4   : >> { %10845 = vmatmul.mubr.msk.bf16.vlgmr.msra.gmra.mrb[16].mxu1 %vm6815_vm0, %v9478_v24  ;;  %10846 = vmatmul.mubr.msk.bf16.vlgmr.msra.gmra.mrb[20].mxu0 %vm6815_vm0, %v9478_v24  ;;  %v9790_v24 = vlaneseq (%p8282_p1) }
 0x5c5   : >> { %9593 = vmatpush1.bf16.msra.mxu1 %v10848_v25  ;;  %9634 = vmatpush1.bf16.msra.mxu0 %v10850_v27  ;;  %v11655_v25 = vld [vmem:[%s14425_s9 + $0xa0] sm:$0xff] (%p8282_p1)   ;;  %v11656_v27 = vld [vmem:[%s14425_s9 + $0x68] sm:$0xff] (%p8282_p1)  }
 0x5c6   : >> { %9594 = vmatprep.subr.bf16.mxu1 %v10853_v28  ;;  %9635 = vmatprep.subr.bf16.mxu0 %v10855_v29  ;;  %v11657_v28 = vld [vmem:[%s14425_s9 + $0xe8] sm:$0xff] (%p8282_p1)  }
 0x5c7   : >> { %9624 = vmatprep.mubr.bf16.mxu1 %v11826_v26  ;;  %9665 = vmatprep.mubr.bf16.mxu0 %v11826_v26  ;;  %v11658_v29 = vld [vmem:[%s14425_s9 + $0x28] sm:$0xff] (%p8282_p1)  }
 0x5c9   : >> { %9595 = vmatpush1.bf16.msra.mxu1 %v10852_v30  ;;  %9636 = vmatpush1.bf16.msra.mxu0 %v10854_v31  ;;  %v9791_v30 = vshrl.u32 (%p8282_p1), %v9790_v24, 7  ;;  %v11659_v31 = vld [vmem:[%s14425_s9 + $0xa8] sm:$0xff] (%p8282_p1)  }
 0x5ca   : >> { %9596 = vmatprep.subr.bf16.mxu1 %v10857_v33  ;;  %9637 = vmatprep.subr.bf16.mxu0 %v10859_v34  ;;  %v11660_v33 = vld [vmem:[%s14425_s9 + $0x70] sm:$0xff] (%p8282_p1)  }
 0x5cb   : > { %v11661_v34 = vld [vmem:[%s14425_s9 + $0xf0] sm:$0xff] (%p8282_p1)  }
 0x5cd   : >> { %9597 = vmatpush1.bf16.msra.mxu1 %v10856_v35  ;;  %9638 = vmatpush1.bf16.msra.mxu0 %v10858_v36  ;;  %v11662_v35 = vld [vmem:[%s14425_s9 + $0x30] sm:$0xff] (%p8282_p1)   ;;  %v9796_v36 = vsub.s32 (%p8282_p1), 1, %v9791_v30 }
 0x5ce   : >> { %9598 = vmatprep.subr.bf16.mxu1 %v10861_v37  ;;  %9639 = vmatprep.subr.bf16.mxu0 %v10863_v38  ;;  %v11663_v37 = vld [vmem:[%s14425_s9 + $0xb0] sm:$0xff] (%p8282_p1)   ;;  %v9804_v38 = vsub.s32 (%p8282_p1), 3, %v9791_v30 }
 0x5d1   : >> { %9599 = vmatpush1.bf16.msra.mxu1 %v10860_v39  ;;  %9640 = vmatpush1.bf16.msra.mxu0 %v10862_v40  ;;  %v11664_v39 = vld [vmem:[%s14425_s9 + $0x78] sm:$0xff] (%p8282_p1)   ;;  %v9792_v40 = vsub.s32 (%p8282_p1), 0, %v9791_v30 }
 0x5d2   : >> { %9702 = vmatprep.subr.bf16.mxu1 %v10868_v41  ;;  %9743 = vmatprep.subr.bf16.mxu0 %v10870_v42  ;;  %v11665_v41 = vld [vmem:[%s14425_s9 + $0xf8] sm:$0xff] (%p8282_p1)   ;;  %v9800_v42 = vsub.s32 (%p8282_p1), 2, %v9791_v30 }
 0x5d4   : >> { %10864 = vmatmul.mubr.msk.bf16.vlgmr.msra.gmra.mrb[16].mxu1 %vm6815_vm0, %v9588_v43  ;;  %10865 = vmatmul.mubr.msk.bf16.vlgmr.msra.gmra.mrb[20].mxu0 %vm6815_vm0, %v9588_v43  ;;  %v11666_v43 = vld [vmem:[%s14425_s9 + $0x38] sm:$0xff] (%p8282_p1)  }
 0x5d5   : >> { %9703 = vmatpush1.bf16.msra.mxu1 %v10867_v44  ;;  %9744 = vmatpush1.bf16.msra.mxu0 %v10869_v45  ;;  %v11667_v44 = vld [vmem:[%s14425_s9 + $0xb8] sm:$0xff] (%p8282_p1)   ;;  %v9788_v45 = vld [vmem:[%s14424_s8] sm:$0xf] (%p8282_p1) }
 0x5d6   : >> { %9704 = vmatprep.subr.bf16.mxu1 %v10872_v46  ;;  %9745 = vmatprep.subr.bf16.mxu0 %v10874_v47  ;;  %v9797_v46 = vrot.slane (%p8282_p1), %v9788_v45, %v9796_v36  ;;  %v9805_v47 = vrot.slane (%p8282_p1), %v9788_v45, %v9804_v38 }
 0x5d7   : >> { %9734 = vmatprep.mubr.bf16.mxu1 %v11826_v26  ;;  %9775 = vmatprep.mubr.bf16.mxu0 %v11826_v26 }
 0x5d9   : >> { %9705 = vmatpush1.bf16.msra.mxu1 %v10871_v32  ;;  %9746 = vmatpush1.bf16.msra.mxu0 %v10873_v48  ;;  %v9793_v32 = vrot.slane (%p8282_p1), %v9788_v45, %v9792_v40  ;;  %v9801_v48 = vrot.slane (%p8282_p1), %v9788_v45, %v9800_v42 }
 0x5da   : >> { %9706 = vmatprep.subr.bf16.mxu1 %v10876_v21  ;;  %9747 = vmatprep.subr.bf16.mxu0 %v10878_v49 }
 0x5dd   : >> { %9707 = vmatpush1.bf16.msra.mxu1 %v10875_v50  ;;  %9748 = vmatpush1.bf16.msra.mxu0 %v10877_v51 }
 0x5de   : >> { %9708 = vmatprep.subr.bf16.mxu1 %v10880_v52  ;;  %9749 = vmatprep.subr.bf16.mxu0 %v10882_v53 }
 0x5e1   : >> { %9709 = vmatpush1.bf16.msra.mxu1 %v10879_v54  ;;  %9750 = vmatpush1.bf16.msra.mxu0 %v10881_v55 }
 0x5e2   : > { %11061 = vmatprep.subr.bf16.mxu1 (%p8282_p1), %v11637_v3 }
 0x5e4   : >> { %10883 = vmatmul.mubr.msk.bf16.vlgmr.msra.gmra.mrb[16].mxu1 %vm6815_vm0, %v9698_v56  ;;  %10884 = vmatmul.mubr.msk.bf16.vlgmr.msra.gmra.mrb[20].mxu0 %vm6815_vm0, %v9698_v56 }
 0x5e5   : > { %11062 = vmatpush3.bf16.msra.mxu1 (%p8282_p1), %v11639_v5 }
 0x6b6   : > { %8284 = sbr.rel (!%p8282_p1) target bundleno = 1111 (0x457), region = 312 }
 0x6b7   : >> { %v9736_v26 = vpop.f32.mrb[16].mxu1  ;;  %v9777_v57 = vpop.f32.mrb[20].mxu0 }
 0x6b8   : >> { %v14234_v11 = vadd.f32 %v11816_v11, %v9736_v26   ;;  %v14237_v9 = vadd.f32 %v11808_v9, %v9777_v57   ;;  %v9738_v60 = vpop.f32.mrb[17].mxu1  ;;  %v9779_v61 = vpop.f32.mrb[21].mxu0 }
 0x6b9   : >> { %v14240_v10 = vadd.f32 %v11812_v10, %v9738_v60   ;;  %v14243_v8 = vadd.f32 %v11804_v8, %v9779_v61   ;;  %v9740_v63 = vpop.f32.mrb[18].mxu1  ;;  %v9781_v0 = vpop.f32.mrb[22].mxu0 }
 0x6ba   : >> { %v14438_v58 = vmov %v14234_v11  ;;  %v14439_v59 = vmov %v14237_v9  ;;  %v9741_v1 = vpop.f32.mrb[19].mxu1  ;;  %v9782_v2 = vpop.f32.mrb[23].mxu0 }
 0x6bb   : >> { %v14440_v62 = vmov %v14240_v10  ;;  %v14441_v13 = vmov %v14243_v8  ;;  %v14443_v9 = vmov %v14439_v59  ;;  %v14445_v11 = vmov %v14438_v58 }
 0x6bc   : >> { %v14442_v8 = vmov %v14441_v13  ;;  %v14444_v10 = vmov %v14440_v62  ;;  %v11636_v11 = vld [vmem:[%s14425_s9 + $0x40] sm:$0xff] (%p8282_p1)   ;;  %v11641_v9 = vld [vmem:[%s14425_s9 + $0xc8] sm:$0xff] (%p8282_p1)   ;;  %v9811_v21 = vadd.f32 (%p8282_p1), %v14440_v62, %v9797_v46  ;;  %v9813_v49 = vadd.f32 (%p8282_p1), %v14441_v13, %v9805_v47 }
 0x6bd   : > { %11039 = vmatprep.subr.bf16.mxu0 %v11636_v11  ;;  %v11640_v8 = vld [vmem:[%s14425_s9 + $0x48] sm:$0xff]   ;;  %11063 = vmatprep.subr.bf16.mxu1 %v11641_v9  ;;  %v9810_v50 = vadd.f32 %v14438_v58, %v9793_v32  ;;  %v9812_v51 = vadd.f32 %v14439_v59, %v9801_v48  ;;  %v9886_v58 = vld [vmem:[%s14426_s10] sm:$0x1] }
 0x6be   : > { %11040 = vmatpush3.bf16.msra.mxu0 %v11638_v4  ;;  %v11642_v10 = vld [vmem:[%s14425_s9 + $0x8] sm:$0xff]   ;;  %11064 = vmatpush3.bf16.msra.mxu1 %v11643_v6  ;;  %v9815_v52 = vmax.f32 %v9811_v21, 0.0  ;;  %v9817_v53 = vmax.f32 %v9813_v49, 0.0 }
 0x6bf   : > { %11041 = vmatprep.subr.bf16.mxu0 %v11640_v8  ;;  %11065 = vmatprep.subr.bf16.mxu1 %v11645_v12  ;;  %v9814_v54 = vmax.f32 %v9810_v50, 0.0  ;;  %v9816_v55 = vmax.f32 %v9812_v51, 0.0 }
 0x6c0   : > { %v9819_v56 = vpack.c.bf16 %v9815_v52, %v9815_v52  ;;  %v9821_v26 = vpack.c.bf16 %v9817_v53, %v9817_v53 }
 0x6c1   : > { %v9818_v57 = vpack.c.bf16 %v9814_v54, %v9814_v54  ;;  %v9820_v60 = vpack.c.bf16 %v9816_v55, %v9816_v55 }
 0x6c2   : > { %11042 = vmatpush3.bf16.msra.mxu0 %v11642_v10  ;;  %11066 = vmatpush3.bf16.msra.mxu1 %v11647_v15 }
 0x6c3   : > { %11043 = vmatprep.subr.bf16.mxu0 %v11644_v7  ;;  %11067 = vmatprep.subr.bf16.mxu1 %v11649_v17 }
 0x6c4   : > { %10111 = vmatprep.mubr.bf16.mxu0 %v9819_v56  ;;  %10151 = vmatprep.mubr.bf16.mxu1 %v9821_v26 }
 0x6c6   : > { %11044 = vmatpush3.bf16.msra.mxu0 %v11646_v14  ;;  %11068 = vmatpush3.bf16.msra.mxu1 %v11651_v19 }
 0x6c7   : > { %11045 = vmatprep.subr.bf16.mxu0 %v11648_v16  ;;  %11069 = vmatprep.subr.bf16.mxu1 %v11653_v22 }
 0x6ca   : > { %11046 = vmatpush3.bf16.msra.mxu0 %v11650_v18  ;;  %11070 = vmatpush3.bf16.msra.mxu1 %v11655_v25 }
 0x6cb   : > { %11047 = vmatprep.subr.bf16.mxu0 %v11652_v20  ;;  %11071 = vmatprep.subr.bf16.mxu1 %v11657_v28 }
 0x6ce   : > { %11048 = vmatpush3.bf16.msra.mxu0 %v11654_v23  ;;  %11072 = vmatpush3.bf16.msra.mxu1 %v11659_v31 }
 0x6cf   : > { %11049 = vmatprep.subr.bf16.mxu0 %v11656_v27  ;;  %11073 = vmatprep.subr.bf16.mxu1 %v11661_v34 }
 0x6d2   : > { %11050 = vmatpush3.bf16.msra.mxu0 %v11658_v29  ;;  %11074 = vmatpush3.bf16.msra.mxu1 %v11663_v37 }
 0x6d3   : > { %11051 = vmatprep.subr.bf16.mxu0 %v11660_v33  ;;  %11075 = vmatprep.subr.bf16.mxu1 %v11665_v41 }
 0x6d6   : > { %11052 = vmatpush3.bf16.msra.mxu0 %v11662_v35  ;;  %11076 = vmatpush3.bf16.msra.mxu1 %v11667_v44 }
 0x6d7   : > { %11053 = vmatprep.subr.bf16.mxu0 %v11664_v39 }
 0x6d9   : > { %10152 = vmatmul.mubr.bf16.vlgmr.msra.gmra.mrb[0].mxu1 %v9820_v60 }
 0x6da   : > { %11054 = vmatpush3.bf16.msra.mxu0 %v11666_v43 }
 0x6dd   : > { %10112 = vmatmul.mubr.bf16.vlgmr.msra.gmra.mrb[0].mxu0 %v9818_v57 }
 0x7ac   : > { %v11077_v62 = vpop.f32.mrb[0].mxu1 }
 0x7ad   : > { %v11078_v13 = vpop.f32.mrb[1].mxu1 }
 0x7ae   : > { %v11079_v0 = vadd.f32 %v11078_v13, %v11077_v62  ;;  %v11080_v2 = vpop.f32.mrb[2].mxu1 }
 0x7af   : > { %v11081_v3 = vpop.f32.mrb[3].mxu1 }
 0x7b0   : > { %v11055_v61 = vpop.f32.mrb[0].mxu0 }
 0x7b1   : > { %v11056_v59 = vpop.f32.mrb[1].mxu0 }
 0x7b2   : > { %v11057_v63 = vadd.f32 %v11056_v59, %v11055_v61  ;;  %v11058_v1 = vpop.f32.mrb[2].mxu0 }
 0x7b3   : > { %v11059_v11 = vpop.f32.mrb[3].mxu0 }
 0x7b4   : > { %v10114_v4 = vadd.f32 %v11057_v63, %v9886_v58 }
 0x7b6   : > { %v10154_v5 = vadd.f32 %v11079_v0, %v10114_v4 }
 0x7b8   : > { %10159 = vst [vmem:[%s11946_s16] sm:$0x1] %v10154_v5 }
 0x7b9   : > { %11681 = shalt.err (!%p11678_p10)
}
 0x7ba   : > { %s11682_s29 = scalar_lea.hbm %s14371_s25, 16  ;;  %s11686_s26 = scalar_lea.hbm %s14427_s11, 32 }
 0x7bb   : > { %p11683_p11 = scmp.ne.s32.totalorder %s14371_s25, %s11682_s29  ;;  %p11687_p0 = scmp.lt.u32.totalorder %s14371_s25, %s14427_s11 }
 0x7bc   : > { %p11688_p1 = scmp.lt.u32.totalorder %s11686_s26, %s11682_s29  ;;  %p11690_p3 = scmp.lt.u32.totalorder %s11682_s29, %s14371_s25 }
 0x7bd   : > { %p11684_p12 = pnand %p11683_p11, %p11926_p5 }
 0x7be   : > { %p11689_p2 = por %p11688_p1, %p11687_p0 }
 0x7bf   : > { %p11685_p13 = pneg %p11684_p12 }
 0x7c0   : > { %p11691_p4 = por %p11690_p3, %p11689_p2 }
 0x7c2   : > { %p11692_p7 = pnand %p11691_p4, %p11685_p13 }
 0x7c4   : > { %11695 = shalt.err (!%p11692_p7)
}
 0x7c5   : > { %11420 = dma.vmem_to_hbm [thread:$0]  (%p11926_p5), %s14373_s23, 16, %s14371_s25, %s10161_s14  }
 0x7c6 PF: > { %p11426_p8 = scmp.ge.s32.totalorder %s11776_s20, 2  ;;  %s10185_s22 = sand.u32 1, %s11764_s17  }
 0x7c7   : > { %s10186_s13 = scalar_lea.sflag [#allocation7], %s10185_s22 }
 0x7c8   : > { %p11423_p9 = pnand %p11426_p8, %p11930_p6 }
 0x7ca   : > { %11759 = dma.done.wait (!%p11423_p9), %s10186_s13, 16  }
 0x7cb   : > { %11761 = vsyncadd (!%p11423_p9), %s10186_s13, 4294967280  ;;  %s14446_s20 = sld [smem:[#allocation12_spill]]  ;;  %s14447_s21 = sld [smem:[#allocation11_spill]] }
 0x7cc   : > { %s14448_s19 = sld [smem:[#allocation13_spill]]  ;;  %s14449_s17 = smov %s11768_s18 }
 0x7d1   : > { %p21_p10 = scmp.ge.s32.totalorder %s14446_s20, 4   ;;  %s14450_s18 = smov %s14447_s21 }
 0x7d3   :  { %23 = sbr.rel (!%p21_p10) target bundleno = 3 (0x3), region = 323 }
 0x7da   :  { %10190 = vsyncpa [#allocation7], 1 }
 0x7db   :  { %10192 = vsyncpa [#allocation7 + $0x1], 1 }
 0x7dc   :  { %10193 = vsyncmov [#allocation5] }
 0x7df   :  { %s10194_s27 = vpop.sfrf %10193 }
 0x7e0   :  { %p10920_p5 = scmp.ne.s32.totalorder %s10194_s27, 0 }
 0x7e2   :  { %10198 = shalt.err (%p10920_p5)  }

</bundles_post_ra>
